<compile_context>
chip_gen: v6e
topology: v6e:2x2x1
jax: 0.10.0
libtpu: 0.0.40
codegen_flags: <defaults>
</compile_context>

<pallas_src>
import functools

import jax
import jax.numpy as jnp
from jax.experimental import pallas as pl
from jax.experimental.pallas import tpu as pltpu

EPS = 1e-5
LANE = 128


# --------------------------- fused Pallas kernel ----------------------------

def _c3_fused_kernel(x_ref, w1_ref, b1_ref, w2_ref, b2_ref, w3_ref, b3_ref,
                     o_ref, *, dims):
    """Fused 3-stage conv+BN+ReLU for one batch block.

    x_ref : (B_TILE, Hin, Win, Cin)        bf16 (space-to-depth'd if stride 2)
    wX_ref: (kX*kX, CinX_pad, CoutX_pad)   bf16 per-tap weights, BN scale folded
    bX_ref: (1, CoutX_pad)                 f32 folded BN bias
    o_ref : (B_TILE, H3*W3, Cout3_pad)     f32, lane-dense last dim (128 mult.)
    dims  : static ((k, Hout, Wout), ...) for the 3 stages
    """

    def stage(x, w_ref, b_ref, k, hout, wout):
        bt, _, _, cin = x.shape
        m = bt * hout * wout
        cout = w_ref.shape[-1]
        acc = jnp.zeros((m, cout), jnp.float32)
        # Per-tap full-slab matmuls on the MXU (no lane-axis im2col concat).
        for kh in range(k):
            for kw in range(k):
                patch = x[:, kh:kh + hout, kw:kw + wout, :].reshape(m, cin)
                acc += jnp.dot(patch, w_ref[kh * k + kw],
                               preferred_element_type=jnp.float32)
        return jnp.maximum(acc + b_ref[...], 0.0)          # folded BN + ReLU

    (k1, ho1, wo1), (k2, ho2, wo2), (k3, ho3, wo3) = dims
    x = x_ref[...]
    bt = x.shape[0]

    y1 = stage(x, w1_ref, b1_ref, k1, ho1, wo1)
    y1 = y1.reshape(bt, ho1, wo1, -1).astype(jnp.bfloat16)  # lane-dense handoff
    y2 = stage(y1, w2_ref, b2_ref, k2, ho2, wo2)
    y2 = y2.reshape(bt, ho2, wo2, -1).astype(jnp.bfloat16)
    y3 = stage(y2, w3_ref, b3_ref, k3, ho3, wo3)            # (bt*H3*W3, C3p) f32
    o_ref[...] = y3.reshape(bt, ho3 * wo3, -1).astype(o_ref.dtype)  # bulk store


# ------------------------- host-side parameter prep -------------------------

def _round_up(v, m):
    return (v + m - 1) // m * m


def _pad_axis(a, axis, size):
    pad = size - a.shape[axis]
    if pad <= 0:
        return a
    widths = [(0, 0)] * a.ndim
    widths[axis] = (0, pad)
    return jnp.pad(a, widths)


def _fold_bn(p):
    """Fold inference-mode BatchNorm (running stats) into conv weight + bias."""
    scale = p["gamma"] * jax.lax.rsqrt(p["var"] + EPS)       # (cout,)
    bias = (p["b"] - p["mean"]) * scale + p["beta"]          # (cout,)
    w = p["w"] * scale                                       # (3,3,cin,cout)
    return w, bias


def _space_to_depth_taps(w):
    """(3,3,cin,cout) stride-2 weights -> (2*2 taps, 4*cin, cout) per-tap
    weights of the equivalent stride-1 2x2 conv over a factor-2
    space-to-depth input whose channel order is (di, dj, c)."""
    cin, cout = w.shape[2], w.shape[3]
    taps = jnp.zeros((2, 2, 2, 2, cin, cout), w.dtype)       # (dh, dw, di, dj, c, cout)
    for dh in range(2):
        for dw in range(2):
            for di in range(2):
                for dj in range(2):
                    kh, kw = 2 * dh + di, 2 * dw + dj
                    if kh < 3 and kw < 3:
                        taps = taps.at[dh, dw, di, dj].set(w[kh, kw])
    return taps.reshape(4, 4 * cin, cout)


def _pick_batch_tile(n, m_per_image, target_m):
    """Largest divisor of n with B_TILE*M <= target and >=2 grid steps."""
    best = 1
    for bt in range(1, n + 1):
        if n % bt:
            continue
        if n >= 2 and n // bt < 2:
            break  # keep >=2 parallel grid steps so both v7x TCs stay busy
        if bt * m_per_image <= target_m:
            best = bt
    return best


# ----------------------------- C3 forward (Pallas) --------------------------

def c3_forward(x_nchw, params, forward=True, target_m=512):
    n, cin0, h0, w0 = x_nchw.shape
    first_stride = 2 if forward else 1

    xb = x_nchw.astype(jnp.bfloat16)
    if first_stride == 2:
        assert h0 % 2 == 0 and w0 % 2 == 0, "stride-2 path needs even H, W"
        # Fused NCHW->NHWC + factor-2 space-to-depth (channel order (di,dj,c)).
        x = xb.reshape(n, cin0, h0 // 2, 2, w0 // 2, 2)
        x = x.transpose(0, 2, 4, 3, 5, 1).reshape(n, h0 // 2, w0 // 2, 4 * cin0)
    else:
        x = jnp.transpose(xb, (0, 2, 3, 1))                  # NCHW -> NHWC

    hk, wk, ck = x.shape[1], x.shape[2], x.shape[3]

    ws, bs, dims = [], [], []
    hin, win = h0, w0
    c_prev = ck                       # channels the kernel sees entering the stage
    for idx, p in enumerate(params):
        w, bias = _fold_bn(p)                                # f32 fold first
        cin, cout = w.shape[2], w.shape[3]
        cout_pad = _round_up(cout, LANE)                     # lane-dense channels
        stride = first_stride if idx == 0 else 1
        hout = (hin - 3) // stride + 1
        wout = (win - 3) // stride + 1
        if idx == 0 and stride == 2:
            wt, k = _space_to_depth_taps(w), 2               # (4, 4*cin, cout)
        else:
            wt, k = w.reshape(9, cin, cout), 3               # tap index = kh*3+kw
        wt = _pad_axis(wt, 1, c_prev)                        # match padded input chans
        wt = _pad_axis(wt, 2, cout_pad)
        ws.append(wt.astype(jnp.bfloat16))                   # cast AFTER BN fold
        bs.append(_pad_axis(bias.reshape(1, cout), 1, cout_pad).astype(jnp.float32))
        dims.append((k, hout, wout))
        hin, win, c_prev = hout, wout, cout_pad

    (_, ho1, wo1), _, (_, h3, w3) = dims
    c3p = ws[-1].shape[-1]
    cout3 = params[-1]["w"].shape[-1]

    b_tile = _pick_batch_tile(n, ho1 * wo1, target_m)
    grid = (n // b_tile,)

    flops = sum(2 * n * ho * wo * wt.shape[0] * wt.shape[1] * wt.shape[2]
                for (_, ho, wo), wt in zip(dims, ws))
    bytes_accessed = (x.size * 2 + sum(wt.size * 2 for wt in ws)
                      + sum(bb.size * 4 for bb in bs) + n * h3 * w3 * c3p * 4)

    kernel = functools.partial(_c3_fused_kernel, dims=tuple(dims))
    out_flat = pl.pallas_call(
        kernel,
        out_shape=jax.ShapeDtypeStruct((n, h3 * w3, c3p), jnp.float32),
        grid=grid,
        in_specs=[
            pl.BlockSpec((b_tile, hk, wk, ck), lambda b: (b, 0, 0, 0)),
            pl.BlockSpec(ws[0].shape, lambda b: (0, 0, 0)),
            pl.BlockSpec(bs[0].shape, lambda b: (0, 0)),
            pl.BlockSpec(ws[1].shape, lambda b: (0, 0, 0)),
            pl.BlockSpec(bs[1].shape, lambda b: (0, 0)),
            pl.BlockSpec(ws[2].shape, lambda b: (0, 0, 0)),
            pl.BlockSpec(bs[2].shape, lambda b: (0, 0)),
        ],
        out_specs=pl.BlockSpec((b_tile, h3 * w3, c3p), lambda b: (b, 0, 0)),
        compiler_params=pltpu.CompilerParams(
            dimension_semantics=("parallel",),
            vmem_limit_bytes=32 * 1024 * 1024),
        cost_estimate=pl.CostEstimate(
            flops=int(flops), transcendentals=0,
            bytes_accessed=int(bytes_accessed)),
    )(x, ws[0], bs[0], ws[1], bs[1], ws[2], bs[2])

    out = out_flat.reshape(n, h3, w3, c3p)[..., :cout3]      # drop lane padding
    return jnp.transpose(out, (0, 3, 1, 2))                  # NHWC -> NCHW


# ---------------- parameter setup (deterministic, synthetic) ----------------

def init_c_params(key, cin, cout):
    kw, kb, kg, kbe, km, kv = jax.random.split(key, 6)
    fan_in = 3 * 3 * cin
    return dict(
        w=jax.random.normal(kw, (3, 3, cin, cout), jnp.float32) / jnp.sqrt(fan_in),
        b=0.1 * jax.random.normal(kb, (cout,), jnp.float32),
        gamma=1.0 + 0.1 * jax.random.normal(kg, (cout,), jnp.float32),
        beta=0.1 * jax.random.normal(kbe, (cout,), jnp.float32),
        mean=0.1 * jax.random.normal(km, (cout,), jnp.float32),
        var=0.5 + jnp.abs(jax.random.normal(kv, (cout,), jnp.float32)),
    )


def init_c3_params(key, in_channels, out_channels,
                   mid_channels_first=None, mid_channels_second=None):
    mid_channels_first = mid_channels_first or out_channels
    mid_channels_second = mid_channels_second or out_channels
    k1, k2, k3 = jax.random.split(key, 3)
    return [
        init_c_params(k1, in_channels, mid_channels_first),
        init_c_params(k2, mid_channels_first, mid_channels_second),
        init_c_params(k3, mid_channels_second, out_channels),
    ]


# ------------------------------ pure-JAX reference --------------------------

def c3_reference(x_nchw, params, forward=True):
    strides = (2 if forward else 1, 1, 1)
    x = jnp.transpose(x_nchw, (0, 2, 3, 1))
    for p, s in zip(params, strides):
        y = jax.lax.conv_general_dilated(
            x, p["w"], (s, s), "VALID",
            dimension_numbers=("NHWC", "HWIO", "NHWC")) + p["b"]
        y = (y - p["mean"]) / jnp.sqrt(p["var"] + EPS) * p["gamma"] + p["beta"]
        x = jnp.maximum(y, 0.0)
    return jnp.transpose(x, (0, 3, 1, 2))


if __name__ == "__main__":
    key = jax.random.PRNGKey(0)
    kx, kp = jax.random.split(key)

    x = jax.random.normal(kx, (2, 4, 16, 16), jnp.float32)   # NCHW input
    params = init_c3_params(kp, in_channels=4, out_channels=8)

    out = jax.block_until_ready(c3_forward(x, params))
    ref = jax.block_until_ready(c3_reference(x, params))

    # 16 --(k3,s2)--> 7 --(k3,s1)--> 5 --(k3,s1)--> 3
    assert out.shape == (2, 8, 3, 3), out.shape
    # bf16 matmul operands (f32 accumulation) vs f32 reference -> relaxed tol.
    err = float(jnp.max(jnp.abs(out - ref)))
    assert jnp.allclose(out, ref, atol=1e-1, rtol=1e-1), err

    print("KERNEL_OK")
</pallas_src>

<mosaic_0001>
module attributes {stable_mosaic.version = 11 : i64} {
  func.func @_c3_fused_kernel(%arg0: i32, %arg1: memref<1x8x8x16xbf16, #tpu.memory_space<vmem>>, %arg2: memref<4x16x128xbf16, #tpu.memory_space<vmem>>, %arg3: memref<1x128xf32, #tpu.memory_space<vmem>>, %arg4: memref<9x128x128xbf16, #tpu.memory_space<vmem>>, %arg5: memref<1x128xf32, #tpu.memory_space<vmem>>, %arg6: memref<9x128x128xbf16, #tpu.memory_space<vmem>>, %arg7: memref<1x128xf32, #tpu.memory_space<vmem>>, %arg8: memref<1x9x128xf32, #tpu.memory_space<vmem>>) attributes {dimension_semantics = [#tpu.dimension_semantics<parallel>], iteration_bounds = array<i64: 2>, scalar_prefetch = 0 : i64, scratch_operands = 0 : i64, tpu.core_type = #tpu.core_type<tc>, window_params = [{transform_indices = @transform_0, window_bounds = array<i64: 1, 8, 8, 16>}, {pipeline_mode = #tpu.pipeline_mode<synchronous>, transform_indices = @transform_1, window_bounds = array<i64: 4, 16, 128>}, {pipeline_mode = #tpu.pipeline_mode<synchronous>, transform_indices = @transform_2, window_bounds = array<i64: 1, 128>}, {pipeline_mode = #tpu.pipeline_mode<synchronous>, transform_indices = @transform_3, window_bounds = array<i64: 9, 128, 128>}, {pipeline_mode = #tpu.pipeline_mode<synchronous>, transform_indices = @transform_4, window_bounds = array<i64: 1, 128>}, {pipeline_mode = #tpu.pipeline_mode<synchronous>, transform_indices = @transform_5, window_bounds = array<i64: 9, 128, 128>}, {pipeline_mode = #tpu.pipeline_mode<synchronous>, transform_indices = @transform_6, window_bounds = array<i64: 1, 128>}, {transform_indices = @transform_7, window_bounds = array<i64: 1, 9, 128>}]} {
    %c0 = arith.constant 0 : index
    %c0_0 = arith.constant 0 : index
    %c0_1 = arith.constant 0 : index
    %c0_2 = arith.constant 0 : index
    %0 = vector.load %arg1[%c0, %c0_0, %c0_1, %c0_2] : memref<1x8x8x16xbf16, #tpu.memory_space<vmem>>, vector<1x8x8x16xbf16>
    %cst = arith.constant 0.000000e+00 : f32
    %1 = vector.broadcast %cst : f32 to vector<49x128xf32>
    %2 = vector.extract_strided_slice %0 {offsets = [0, 0, 0, 0], sizes = [1, 7, 7, 16], strides = [1, 1, 1, 1]} : vector<1x8x8x16xbf16> to vector<1x7x7x16xbf16>
    %3 = vector.shape_cast %2 : vector<1x7x7x16xbf16> to vector<49x16xbf16>
    %c0_3 = arith.constant 0 : index
    %c0_4 = arith.constant 0 : index
    %c0_5 = arith.constant 0 : index
    %4 = vector.load %arg2[%c0_3, %c0_4, %c0_5] : memref<4x16x128xbf16, #tpu.memory_space<vmem>>, vector<1x16x128xbf16>
    %5 = vector.shape_cast %4 : vector<1x16x128xbf16> to vector<16x128xbf16>
    %cst_6 = arith.constant dense<0.000000e+00> : vector<49x128xf32>
    %6 = tpu.matmul %3, %5, %cst_6 {dimension_numbers = #tpu.dot_dimension_numbers<[1], [0], [0], [1], [0, 0, 1, 1], [], []>} : vector<49x16xbf16>, vector<16x128xbf16>, vector<49x128xf32> -> vector<49x128xf32>
    %7 = arith.addf %1, %6 : vector<49x128xf32>
    %8 = vector.extract_strided_slice %0 {offsets = [0, 0, 1, 0], sizes = [1, 7, 7, 16], strides = [1, 1, 1, 1]} : vector<1x8x8x16xbf16> to vector<1x7x7x16xbf16>
    %9 = vector.shape_cast %8 : vector<1x7x7x16xbf16> to vector<49x16xbf16>
    %c1 = arith.constant 1 : index
    %c0_7 = arith.constant 0 : index
    %c0_8 = arith.constant 0 : index
    %10 = vector.load %arg2[%c1, %c0_7, %c0_8] : memref<4x16x128xbf16, #tpu.memory_space<vmem>>, vector<1x16x128xbf16>
    %11 = vector.shape_cast %10 : vector<1x16x128xbf16> to vector<16x128xbf16>
    %cst_9 = arith.constant dense<0.000000e+00> : vector<49x128xf32>
    %12 = tpu.matmul %9, %11, %cst_9 {dimension_numbers = #tpu.dot_dimension_numbers<[1], [0], [0], [1], [0, 0, 1, 1], [], []>} : vector<49x16xbf16>, vector<16x128xbf16>, vector<49x128xf32> -> vector<49x128xf32>
    %13 = arith.addf %7, %12 : vector<49x128xf32>
    %14 = vector.extract_strided_slice %0 {offsets = [0, 1, 0, 0], sizes = [1, 7, 7, 16], strides = [1, 1, 1, 1]} : vector<1x8x8x16xbf16> to vector<1x7x7x16xbf16>
    %15 = vector.shape_cast %14 : vector<1x7x7x16xbf16> to vector<49x16xbf16>
    %c2 = arith.constant 2 : index
    %c0_10 = arith.constant 0 : index
    %c0_11 = arith.constant 0 : index
    %16 = vector.load %arg2[%c2, %c0_10, %c0_11] : memref<4x16x128xbf16, #tpu.memory_space<vmem>>, vector<1x16x128xbf16>
    %17 = vector.shape_cast %16 : vector<1x16x128xbf16> to vector<16x128xbf16>
    %cst_12 = arith.constant dense<0.000000e+00> : vector<49x128xf32>
    %18 = tpu.matmul %15, %17, %cst_12 {dimension_numbers = #tpu.dot_dimension_numbers<[1], [0], [0], [1], [0, 0, 1, 1], [], []>} : vector<49x16xbf16>, vector<16x128xbf16>, vector<49x128xf32> -> vector<49x128xf32>
    %19 = arith.addf %13, %18 : vector<49x128xf32>
    %20 = vector.extract_strided_slice %0 {offsets = [0, 1, 1, 0], sizes = [1, 7, 7, 16], strides = [1, 1, 1, 1]} : vector<1x8x8x16xbf16> to vector<1x7x7x16xbf16>
    %21 = vector.shape_cast %20 : vector<1x7x7x16xbf16> to vector<49x16xbf16>
    %c3 = arith.constant 3 : index
    %c0_13 = arith.constant 0 : index
    %c0_14 = arith.constant 0 : index
    %22 = vector.load %arg2[%c3, %c0_13, %c0_14] : memref<4x16x128xbf16, #tpu.memory_space<vmem>>, vector<1x16x128xbf16>
    %23 = vector.shape_cast %22 : vector<1x16x128xbf16> to vector<16x128xbf16>
    %cst_15 = arith.constant dense<0.000000e+00> : vector<49x128xf32>
    %24 = tpu.matmul %21, %23, %cst_15 {dimension_numbers = #tpu.dot_dimension_numbers<[1], [0], [0], [1], [0, 0, 1, 1], [], []>} : vector<49x16xbf16>, vector<16x128xbf16>, vector<49x128xf32> -> vector<49x128xf32>
    %25 = arith.addf %19, %24 : vector<49x128xf32>
    %c0_16 = arith.constant 0 : index
    %c0_17 = arith.constant 0 : index
    %26 = vector.load %arg3[%c0_16, %c0_17] : memref<1x128xf32, #tpu.memory_space<vmem>>, vector<1x128xf32>
    %27 = vector.broadcast %26 : vector<1x128xf32> to vector<49x128xf32>
    %28 = arith.addf %25, %27 : vector<49x128xf32>
    %cst_18 = arith.constant 0.000000e+00 : f32
    %29 = vector.broadcast %cst_18 : f32 to vector<49x128xf32>
    %30 = arith.maximumf %28, %29 : vector<49x128xf32>
    %31 = vector.shape_cast %30 : vector<49x128xf32> to vector<1x7x7x128xf32>
    %32 = arith.truncf %31 : vector<1x7x7x128xf32> to vector<1x7x7x128xbf16>
    %cst_19 = arith.constant 0.000000e+00 : f32
    %33 = vector.broadcast %cst_19 : f32 to vector<25x128xf32>
    %34 = vector.extract_strided_slice %32 {offsets = [0, 0, 0, 0], sizes = [1, 5, 5, 128], strides = [1, 1, 1, 1]} : vector<1x7x7x128xbf16> to vector<1x5x5x128xbf16>
    %35 = vector.shape_cast %34 : vector<1x5x5x128xbf16> to vector<25x128xbf16>
    %c0_20 = arith.constant 0 : index
    %c0_21 = arith.constant 0 : index
    %c0_22 = arith.constant 0 : index
    %36 = vector.load %arg4[%c0_20, %c0_21, %c0_22] : memref<9x128x128xbf16, #tpu.memory_space<vmem>>, vector<1x128x128xbf16>
    %37 = vector.shape_cast %36 : vector<1x128x128xbf16> to vector<128x128xbf16>
    %cst_23 = arith.constant dense<0.000000e+00> : vector<25x128xf32>
    %38 = tpu.matmul %35, %37, %cst_23 {dimension_numbers = #tpu.dot_dimension_numbers<[1], [0], [0], [1], [0, 0, 1, 1], [], []>} : vector<25x128xbf16>, vector<128x128xbf16>, vector<25x128xf32> -> vector<25x128xf32>
    %39 = arith.addf %33, %38 : vector<25x128xf32>
    %40 = vector.extract_strided_slice %32 {offsets = [0, 0, 1, 0], sizes = [1, 5, 5, 128], strides = [1, 1, 1, 1]} : vector<1x7x7x128xbf16> to vector<1x5x5x128xbf16>
    %41 = vector.shape_cast %40 : vector<1x5x5x128xbf16> to vector<25x128xbf16>
    %c1_24 = arith.constant 1 : index
    %c0_25 = arith.constant 0 : index
    %c0_26 = arith.constant 0 : index
    %42 = vector.load %arg4[%c1_24, %c0_25, %c0_26] : memref<9x128x128xbf16, #tpu.memory_space<vmem>>, vector<1x128x128xbf16>
    %43 = vector.shape_cast %42 : vector<1x128x128xbf16> to vector<128x128xbf16>
    %cst_27 = arith.constant dense<0.000000e+00> : vector<25x128xf32>
    %44 = tpu.matmul %41, %43, %cst_27 {dimension_numbers = #tpu.dot_dimension_numbers<[1], [0], [0], [1], [0, 0, 1, 1], [], []>} : vector<25x128xbf16>, vector<128x128xbf16>, vector<25x128xf32> -> vector<25x128xf32>
    %45 = arith.addf %39, %44 : vector<25x128xf32>
    %46 = vector.extract_strided_slice %32 {offsets = [0, 0, 2, 0], sizes = [1, 5, 5, 128], strides = [1, 1, 1, 1]} : vector<1x7x7x128xbf16> to vector<1x5x5x128xbf16>
    %47 = vector.shape_cast %46 : vector<1x5x5x128xbf16> to vector<25x128xbf16>
    %c2_28 = arith.constant 2 : index
    %c0_29 = arith.constant 0 : index
    %c0_30 = arith.constant 0 : index
    %48 = vector.load %arg4[%c2_28, %c0_29, %c0_30] : memref<9x128x128xbf16, #tpu.memory_space<vmem>>, vector<1x128x128xbf16>
    %49 = vector.shape_cast %48 : vector<1x128x128xbf16> to vector<128x128xbf16>
    %cst_31 = arith.constant dense<0.000000e+00> : vector<25x128xf32>
    %50 = tpu.matmul %47, %49, %cst_31 {dimension_numbers = #tpu.dot_dimension_numbers<[1], [0], [0], [1], [0, 0, 1, 1], [], []>} : vector<25x128xbf16>, vector<128x128xbf16>, vector<25x128xf32> -> vector<25x128xf32>
    %51 = arith.addf %45, %50 : vector<25x128xf32>
    %52 = vector.extract_strided_slice %32 {offsets = [0, 1, 0, 0], sizes = [1, 5, 5, 128], strides = [1, 1, 1, 1]} : vector<1x7x7x128xbf16> to vector<1x5x5x128xbf16>
    %53 = vector.shape_cast %52 : vector<1x5x5x128xbf16> to vector<25x128xbf16>
    %c3_32 = arith.constant 3 : index
    %c0_33 = arith.constant 0 : index
    %c0_34 = arith.constant 0 : index
    %54 = vector.load %arg4[%c3_32, %c0_33, %c0_34] : memref<9x128x128xbf16, #tpu.memory_space<vmem>>, vector<1x128x128xbf16>
    %55 = vector.shape_cast %54 : vector<1x128x128xbf16> to vector<128x128xbf16>
    %cst_35 = arith.constant dense<0.000000e+00> : vector<25x128xf32>
    %56 = tpu.matmul %53, %55, %cst_35 {dimension_numbers = #tpu.dot_dimension_numbers<[1], [0], [0], [1], [0, 0, 1, 1], [], []>} : vector<25x128xbf16>, vector<128x128xbf16>, vector<25x128xf32> -> vector<25x128xf32>
    %57 = arith.addf %51, %56 : vector<25x128xf32>
    %58 = vector.extract_strided_slice %32 {offsets = [0, 1, 1, 0], sizes = [1, 5, 5, 128], strides = [1, 1, 1, 1]} : vector<1x7x7x128xbf16> to vector<1x5x5x128xbf16>
    %59 = vector.shape_cast %58 : vector<1x5x5x128xbf16> to vector<25x128xbf16>
    %c4 = arith.constant 4 : index
    %c0_36 = arith.constant 0 : index
    %c0_37 = arith.constant 0 : index
    %60 = vector.load %arg4[%c4, %c0_36, %c0_37] : memref<9x128x128xbf16, #tpu.memory_space<vmem>>, vector<1x128x128xbf16>
    %61 = vector.shape_cast %60 : vector<1x128x128xbf16> to vector<128x128xbf16>
    %cst_38 = arith.constant dense<0.000000e+00> : vector<25x128xf32>
    %62 = tpu.matmul %59, %61, %cst_38 {dimension_numbers = #tpu.dot_dimension_numbers<[1], [0], [0], [1], [0, 0, 1, 1], [], []>} : vector<25x128xbf16>, vector<128x128xbf16>, vector<25x128xf32> -> vector<25x128xf32>
    %63 = arith.addf %57, %62 : vector<25x128xf32>
    %64 = vector.extract_strided_slice %32 {offsets = [0, 1, 2, 0], sizes = [1, 5, 5, 128], strides = [1, 1, 1, 1]} : vector<1x7x7x128xbf16> to vector<1x5x5x128xbf16>
    %65 = vector.shape_cast %64 : vector<1x5x5x128xbf16> to vector<25x128xbf16>
    %c5 = arith.constant 5 : index
    %c0_39 = arith.constant 0 : index
    %c0_40 = arith.constant 0 : index
    %66 = vector.load %arg4[%c5, %c0_39, %c0_40] : memref<9x128x128xbf16, #tpu.memory_space<vmem>>, vector<1x128x128xbf16>
    %67 = vector.shape_cast %66 : vector<1x128x128xbf16> to vector<128x128xbf16>
    %cst_41 = arith.constant dense<0.000000e+00> : vector<25x128xf32>
    %68 = tpu.matmul %65, %67, %cst_41 {dimension_numbers = #tpu.dot_dimension_numbers<[1], [0], [0], [1], [0, 0, 1, 1], [], []>} : vector<25x128xbf16>, vector<128x128xbf16>, vector<25x128xf32> -> vector<25x128xf32>
    %69 = arith.addf %63, %68 : vector<25x128xf32>
    %70 = vector.extract_strided_slice %32 {offsets = [0, 2, 0, 0], sizes = [1, 5, 5, 128], strides = [1, 1, 1, 1]} : vector<1x7x7x128xbf16> to vector<1x5x5x128xbf16>
    %71 = vector.shape_cast %70 : vector<1x5x5x128xbf16> to vector<25x128xbf16>
    %c6 = arith.constant 6 : index
    %c0_42 = arith.constant 0 : index
    %c0_43 = arith.constant 0 : index
    %72 = vector.load %arg4[%c6, %c0_42, %c0_43] : memref<9x128x128xbf16, #tpu.memory_space<vmem>>, vector<1x128x128xbf16>
    %73 = vector.shape_cast %72 : vector<1x128x128xbf16> to vector<128x128xbf16>
    %cst_44 = arith.constant dense<0.000000e+00> : vector<25x128xf32>
    %74 = tpu.matmul %71, %73, %cst_44 {dimension_numbers = #tpu.dot_dimension_numbers<[1], [0], [0], [1], [0, 0, 1, 1], [], []>} : vector<25x128xbf16>, vector<128x128xbf16>, vector<25x128xf32> -> vector<25x128xf32>
    %75 = arith.addf %69, %74 : vector<25x128xf32>
    %76 = vector.extract_strided_slice %32 {offsets = [0, 2, 1, 0], sizes = [1, 5, 5, 128], strides = [1, 1, 1, 1]} : vector<1x7x7x128xbf16> to vector<1x5x5x128xbf16>
    %77 = vector.shape_cast %76 : vector<1x5x5x128xbf16> to vector<25x128xbf16>
    %c7 = arith.constant 7 : index
    %c0_45 = arith.constant 0 : index
    %c0_46 = arith.constant 0 : index
    %78 = vector.load %arg4[%c7, %c0_45, %c0_46] : memref<9x128x128xbf16, #tpu.memory_space<vmem>>, vector<1x128x128xbf16>
    %79 = vector.shape_cast %78 : vector<1x128x128xbf16> to vector<128x128xbf16>
    %cst_47 = arith.constant dense<0.000000e+00> : vector<25x128xf32>
    %80 = tpu.matmul %77, %79, %cst_47 {dimension_numbers = #tpu.dot_dimension_numbers<[1], [0], [0], [1], [0, 0, 1, 1], [], []>} : vector<25x128xbf16>, vector<128x128xbf16>, vector<25x128xf32> -> vector<25x128xf32>
    %81 = arith.addf %75, %80 : vector<25x128xf32>
    %82 = vector.extract_strided_slice %32 {offsets = [0, 2, 2, 0], sizes = [1, 5, 5, 128], strides = [1, 1, 1, 1]} : vector<1x7x7x128xbf16> to vector<1x5x5x128xbf16>
    %83 = vector.shape_cast %82 : vector<1x5x5x128xbf16> to vector<25x128xbf16>
    %c8 = arith.constant 8 : index
    %c0_48 = arith.constant 0 : index
    %c0_49 = arith.constant 0 : index
    %84 = vector.load %arg4[%c8, %c0_48, %c0_49] : memref<9x128x128xbf16, #tpu.memory_space<vmem>>, vector<1x128x128xbf16>
    %85 = vector.shape_cast %84 : vector<1x128x128xbf16> to vector<128x128xbf16>
    %cst_50 = arith.constant dense<0.000000e+00> : vector<25x128xf32>
    %86 = tpu.matmul %83, %85, %cst_50 {dimension_numbers = #tpu.dot_dimension_numbers<[1], [0], [0], [1], [0, 0, 1, 1], [], []>} : vector<25x128xbf16>, vector<128x128xbf16>, vector<25x128xf32> -> vector<25x128xf32>
    %87 = arith.addf %81, %86 : vector<25x128xf32>
    %c0_51 = arith.constant 0 : index
    %c0_52 = arith.constant 0 : index
    %88 = vector.load %arg5[%c0_51, %c0_52] : memref<1x128xf32, #tpu.memory_space<vmem>>, vector<1x128xf32>
    %89 = vector.broadcast %88 : vector<1x128xf32> to vector<25x128xf32>
    %90 = arith.addf %87, %89 : vector<25x128xf32>
    %cst_53 = arith.constant 0.000000e+00 : f32
    %91 = vector.broadcast %cst_53 : f32 to vector<25x128xf32>
    %92 = arith.maximumf %90, %91 : vector<25x128xf32>
    %93 = vector.shape_cast %92 : vector<25x128xf32> to vector<1x5x5x128xf32>
    %94 = arith.truncf %93 : vector<1x5x5x128xf32> to vector<1x5x5x128xbf16>
    %cst_54 = arith.constant 0.000000e+00 : f32
    %95 = vector.broadcast %cst_54 : f32 to vector<9x128xf32>
    %96 = vector.extract_strided_slice %94 {offsets = [0, 0, 0, 0], sizes = [1, 3, 3, 128], strides = [1, 1, 1, 1]} : vector<1x5x5x128xbf16> to vector<1x3x3x128xbf16>
    %97 = vector.shape_cast %96 : vector<1x3x3x128xbf16> to vector<9x128xbf16>
    %c0_55 = arith.constant 0 : index
    %c0_56 = arith.constant 0 : index
    %c0_57 = arith.constant 0 : index
    %98 = vector.load %arg6[%c0_55, %c0_56, %c0_57] : memref<9x128x128xbf16, #tpu.memory_space<vmem>>, vector<1x128x128xbf16>
    %99 = vector.shape_cast %98 : vector<1x128x128xbf16> to vector<128x128xbf16>
    %cst_58 = arith.constant dense<0.000000e+00> : vector<9x128xf32>
    %100 = tpu.matmul %97, %99, %cst_58 {dimension_numbers = #tpu.dot_dimension_numbers<[1], [0], [0], [1], [0, 0, 1, 1], [], []>} : vector<9x128xbf16>, vector<128x128xbf16>, vector<9x128xf32> -> vector<9x128xf32>
    %101 = arith.addf %95, %100 : vector<9x128xf32>
    %102 = vector.extract_strided_slice %94 {offsets = [0, 0, 1, 0], sizes = [1, 3, 3, 128], strides = [1, 1, 1, 1]} : vector<1x5x5x128xbf16> to vector<1x3x3x128xbf16>
    %103 = vector.shape_cast %102 : vector<1x3x3x128xbf16> to vector<9x128xbf16>
    %c1_59 = arith.constant 1 : index
    %c0_60 = arith.constant 0 : index
    %c0_61 = arith.constant 0 : index
    %104 = vector.load %arg6[%c1_59, %c0_60, %c0_61] : memref<9x128x128xbf16, #tpu.memory_space<vmem>>, vector<1x128x128xbf16>
    %105 = vector.shape_cast %104 : vector<1x128x128xbf16> to vector<128x128xbf16>
    %cst_62 = arith.constant dense<0.000000e+00> : vector<9x128xf32>
    %106 = tpu.matmul %103, %105, %cst_62 {dimension_numbers = #tpu.dot_dimension_numbers<[1], [0], [0], [1], [0, 0, 1, 1], [], []>} : vector<9x128xbf16>, vector<128x128xbf16>, vector<9x128xf32> -> vector<9x128xf32>
    %107 = arith.addf %101, %106 : vector<9x128xf32>
    %108 = vector.extract_strided_slice %94 {offsets = [0, 0, 2, 0], sizes = [1, 3, 3, 128], strides = [1, 1, 1, 1]} : vector<1x5x5x128xbf16> to vector<1x3x3x128xbf16>
    %109 = vector.shape_cast %108 : vector<1x3x3x128xbf16> to vector<9x128xbf16>
    %c2_63 = arith.constant 2 : index
    %c0_64 = arith.constant 0 : index
    %c0_65 = arith.constant 0 : index
    %110 = vector.load %arg6[%c2_63, %c0_64, %c0_65] : memref<9x128x128xbf16, #tpu.memory_space<vmem>>, vector<1x128x128xbf16>
    %111 = vector.shape_cast %110 : vector<1x128x128xbf16> to vector<128x128xbf16>
    %cst_66 = arith.constant dense<0.000000e+00> : vector<9x128xf32>
    %112 = tpu.matmul %109, %111, %cst_66 {dimension_numbers = #tpu.dot_dimension_numbers<[1], [0], [0], [1], [0, 0, 1, 1], [], []>} : vector<9x128xbf16>, vector<128x128xbf16>, vector<9x128xf32> -> vector<9x128xf32>
    %113 = arith.addf %107, %112 : vector<9x128xf32>
    %114 = vector.extract_strided_slice %94 {offsets = [0, 1, 0, 0], sizes = [1, 3, 3, 128], strides = [1, 1, 1, 1]} : vector<1x5x5x128xbf16> to vector<1x3x3x128xbf16>
    %115 = vector.shape_cast %114 : vector<1x3x3x128xbf16> to vector<9x128xbf16>
    %c3_67 = arith.constant 3 : index
    %c0_68 = arith.constant 0 : index
    %c0_69 = arith.constant 0 : index
    %116 = vector.load %arg6[%c3_67, %c0_68, %c0_69] : memref<9x128x128xbf16, #tpu.memory_space<vmem>>, vector<1x128x128xbf16>
    %117 = vector.shape_cast %116 : vector<1x128x128xbf16> to vector<128x128xbf16>
    %cst_70 = arith.constant dense<0.000000e+00> : vector<9x128xf32>
    %118 = tpu.matmul %115, %117, %cst_70 {dimension_numbers = #tpu.dot_dimension_numbers<[1], [0], [0], [1], [0, 0, 1, 1], [], []>} : vector<9x128xbf16>, vector<128x128xbf16>, vector<9x128xf32> -> vector<9x128xf32>
    %119 = arith.addf %113, %118 : vector<9x128xf32>
    %120 = vector.extract_strided_slice %94 {offsets = [0, 1, 1, 0], sizes = [1, 3, 3, 128], strides = [1, 1, 1, 1]} : vector<1x5x5x128xbf16> to vector<1x3x3x128xbf16>
    %121 = vector.shape_cast %120 : vector<1x3x3x128xbf16> to vector<9x128xbf16>
    %c4_71 = arith.constant 4 : index
    %c0_72 = arith.constant 0 : index
    %c0_73 = arith.constant 0 : index
    %122 = vector.load %arg6[%c4_71, %c0_72, %c0_73] : memref<9x128x128xbf16, #tpu.memory_space<vmem>>, vector<1x128x128xbf16>
    %123 = vector.shape_cast %122 : vector<1x128x128xbf16> to vector<128x128xbf16>
    %cst_74 = arith.constant dense<0.000000e+00> : vector<9x128xf32>
    %124 = tpu.matmul %121, %123, %cst_74 {dimension_numbers = #tpu.dot_dimension_numbers<[1], [0], [0], [1], [0, 0, 1, 1], [], []>} : vector<9x128xbf16>, vector<128x128xbf16>, vector<9x128xf32> -> vector<9x128xf32>
    %125 = arith.addf %119, %124 : vector<9x128xf32>
    %126 = vector.extract_strided_slice %94 {offsets = [0, 1, 2, 0], sizes = [1, 3, 3, 128], strides = [1, 1, 1, 1]} : vector<1x5x5x128xbf16> to vector<1x3x3x128xbf16>
    %127 = vector.shape_cast %126 : vector<1x3x3x128xbf16> to vector<9x128xbf16>
    %c5_75 = arith.constant 5 : index
    %c0_76 = arith.constant 0 : index
    %c0_77 = arith.constant 0 : index
    %128 = vector.load %arg6[%c5_75, %c0_76, %c0_77] : memref<9x128x128xbf16, #tpu.memory_space<vmem>>, vector<1x128x128xbf16>
    %129 = vector.shape_cast %128 : vector<1x128x128xbf16> to vector<128x128xbf16>
    %cst_78 = arith.constant dense<0.000000e+00> : vector<9x128xf32>
    %130 = tpu.matmul %127, %129, %cst_78 {dimension_numbers = #tpu.dot_dimension_numbers<[1], [0], [0], [1], [0, 0, 1, 1], [], []>} : vector<9x128xbf16>, vector<128x128xbf16>, vector<9x128xf32> -> vector<9x128xf32>
    %131 = arith.addf %125, %130 : vector<9x128xf32>
    %132 = vector.extract_strided_slice %94 {offsets = [0, 2, 0, 0], sizes = [1, 3, 3, 128], strides = [1, 1, 1, 1]} : vector<1x5x5x128xbf16> to vector<1x3x3x128xbf16>
    %133 = vector.shape_cast %132 : vector<1x3x3x128xbf16> to vector<9x128xbf16>
    %c6_79 = arith.constant 6 : index
    %c0_80 = arith.constant 0 : index
    %c0_81 = arith.constant 0 : index
    %134 = vector.load %arg6[%c6_79, %c0_80, %c0_81] : memref<9x128x128xbf16, #tpu.memory_space<vmem>>, vector<1x128x128xbf16>
    %135 = vector.shape_cast %134 : vector<1x128x128xbf16> to vector<128x128xbf16>
    %cst_82 = arith.constant dense<0.000000e+00> : vector<9x128xf32>
    %136 = tpu.matmul %133, %135, %cst_82 {dimension_numbers = #tpu.dot_dimension_numbers<[1], [0], [0], [1], [0, 0, 1, 1], [], []>} : vector<9x128xbf16>, vector<128x128xbf16>, vector<9x128xf32> -> vector<9x128xf32>
    %137 = arith.addf %131, %136 : vector<9x128xf32>
    %138 = vector.extract_strided_slice %94 {offsets = [0, 2, 1, 0], sizes = [1, 3, 3, 128], strides = [1, 1, 1, 1]} : vector<1x5x5x128xbf16> to vector<1x3x3x128xbf16>
    %139 = vector.shape_cast %138 : vector<1x3x3x128xbf16> to vector<9x128xbf16>
    %c7_83 = arith.constant 7 : index
    %c0_84 = arith.constant 0 : index
    %c0_85 = arith.constant 0 : index
    %140 = vector.load %arg6[%c7_83, %c0_84, %c0_85] : memref<9x128x128xbf16, #tpu.memory_space<vmem>>, vector<1x128x128xbf16>
    %141 = vector.shape_cast %140 : vector<1x128x128xbf16> to vector<128x128xbf16>
    %cst_86 = arith.constant dense<0.000000e+00> : vector<9x128xf32>
    %142 = tpu.matmul %139, %141, %cst_86 {dimension_numbers = #tpu.dot_dimension_numbers<[1], [0], [0], [1], [0, 0, 1, 1], [], []>} : vector<9x128xbf16>, vector<128x128xbf16>, vector<9x128xf32> -> vector<9x128xf32>
    %143 = arith.addf %137, %142 : vector<9x128xf32>
    %144 = vector.extract_strided_slice %94 {offsets = [0, 2, 2, 0], sizes = [1, 3, 3, 128], strides = [1, 1, 1, 1]} : vector<1x5x5x128xbf16> to vector<1x3x3x128xbf16>
    %145 = vector.shape_cast %144 : vector<1x3x3x128xbf16> to vector<9x128xbf16>
    %c8_87 = arith.constant 8 : index
    %c0_88 = arith.constant 0 : index
    %c0_89 = arith.constant 0 : index
    %146 = vector.load %arg6[%c8_87, %c0_88, %c0_89] : memref<9x128x128xbf16, #tpu.memory_space<vmem>>, vector<1x128x128xbf16>
    %147 = vector.shape_cast %146 : vector<1x128x128xbf16> to vector<128x128xbf16>
    %cst_90 = arith.constant dense<0.000000e+00> : vector<9x128xf32>
    %148 = tpu.matmul %145, %147, %cst_90 {dimension_numbers = #tpu.dot_dimension_numbers<[1], [0], [0], [1], [0, 0, 1, 1], [], []>} : vector<9x128xbf16>, vector<128x128xbf16>, vector<9x128xf32> -> vector<9x128xf32>
    %149 = arith.addf %143, %148 : vector<9x128xf32>
    %c0_91 = arith.constant 0 : index
    %c0_92 = arith.constant 0 : index
    %150 = vector.load %arg7[%c0_91, %c0_92] : memref<1x128xf32, #tpu.memory_space<vmem>>, vector<1x128xf32>
    %151 = vector.broadcast %150 : vector<1x128xf32> to vector<9x128xf32>
    %152 = arith.addf %149, %151 : vector<9x128xf32>
    %cst_93 = arith.constant 0.000000e+00 : f32
    %153 = vector.broadcast %cst_93 : f32 to vector<9x128xf32>
    %154 = arith.maximumf %152, %153 : vector<9x128xf32>
    %155 = vector.shape_cast %154 : vector<9x128xf32> to vector<1x9x128xf32>
    %c0_94 = arith.constant 0 : index
    %c0_95 = arith.constant 0 : index
    %c0_96 = arith.constant 0 : index
    %156 = vector.load %arg8[%c0_94, %c0_95, %c0_96] : memref<1x9x128xf32, #tpu.memory_space<vmem>>, vector<1x9x128xf32>
    tpu.vector_store %arg8[%c0_94, %c0_95, %c0_96], %155 {strides = array<i32>} : memref<1x9x128xf32, #tpu.memory_space<vmem>>, vector<1x9x128xf32>,
    return
  }
  func.func @transform_0(%arg0: i32) -> (i32, i32, i32, i32) {
    %c0_i32 = arith.constant 0 : i32
    %c0_i32_0 = arith.constant 0 : i32
    %c0_i32_1 = arith.constant 0 : i32
    %c0_i32_2 = arith.constant 0 : i32
    return %arg0, %c0_i32, %c0_i32_0, %c0_i32_1 : i32, i32, i32, i32
  }
  func.func @transform_1(%arg0: i32) -> (i32, i32, i32) {
    %c0_i32 = arith.constant 0 : i32
    %c0_i32_0 = arith.constant 0 : i32
    %c0_i32_1 = arith.constant 0 : i32
    %c0_i32_2 = arith.constant 0 : i32
    return %c0_i32, %c0_i32_0, %c0_i32_1 : i32, i32, i32
  }
  func.func @transform_2(%arg0: i32) -> (i32, i32) {
    %c0_i32 = arith.constant 0 : i32
    %c0_i32_0 = arith.constant 0 : i32
    %c0_i32_1 = arith.constant 0 : i32
    return %c0_i32, %c0_i32_0 : i32, i32
  }
  func.func @transform_3(%arg0: i32) -> (i32, i32, i32) {
    %c0_i32 = arith.constant 0 : i32
    %c0_i32_0 = arith.constant 0 : i32
    %c0_i32_1 = arith.constant 0 : i32
    %c0_i32_2 = arith.constant 0 : i32
    return %c0_i32, %c0_i32_0, %c0_i32_1 : i32, i32, i32
  }
  func.func @transform_4(%arg0: i32) -> (i32, i32) {
    %c0_i32 = arith.constant 0 : i32
    %c0_i32_0 = arith.constant 0 : i32
    %c0_i32_1 = arith.constant 0 : i32
    return %c0_i32, %c0_i32_0 : i32, i32
  }
  func.func @transform_5(%arg0: i32) -> (i32, i32, i32) {
    %c0_i32 = arith.constant 0 : i32
    %c0_i32_0 = arith.constant 0 : i32
    %c0_i32_1 = arith.constant 0 : i32
    %c0_i32_2 = arith.constant 0 : i32
    return %c0_i32, %c0_i32_0, %c0_i32_1 : i32, i32, i32
  }
  func.func @transform_6(%arg0: i32) -> (i32, i32) {
    %c0_i32 = arith.constant 0 : i32
    %c0_i32_0 = arith.constant 0 : i32
    %c0_i32_1 = arith.constant 0 : i32
    return %c0_i32, %c0_i32_0 : i32, i32
  }
  func.func @transform_7(%arg0: i32) -> (i32, i32, i32) {
    %c0_i32 = arith.constant 0 : i32
    %c0_i32_0 = arith.constant 0 : i32
    %c0_i32_1 = arith.constant 0 : i32
    return %arg0, %c0_i32, %c0_i32_0 : i32, i32, i32
  }
}

</mosaic_0001>

<bundles_post_ra>
// kernel: tpu_custom_call.1
= control target key start
LH: loop header
LB: loop body
LE: loop exit
PB: predicated region body
PF: predicated region fallthrough
CT: control target
= control target key end

     0   :  { %12 = vsyncpa [#allocation3], 0  ;;  %s9224_s0 = inlined_call_operand.hbm [shape: bf16[2,8,8,16], index: 0, kind: input, shape index: {}]   ;;  %s9225_s1 = inlined_call_operand.hbm [shape: bf16[4,16,128], index: 1, kind: input, shape index: {}]   ;;  %s9226_s2 = inlined_call_operand.vmem [shape: f32[1,128], index: 2, kind: input, shape index: {}]   ;;  %s9227_s3 = inlined_call_operand.hbm [shape: bf16[9,128,128], index: 3, kind: input, shape index: {}]   ;;  %s9228_s4 = inlined_call_operand.vmem [shape: f32[1,128], index: 4, kind: input, shape index: {}]   ;;  %s9229_s5 = inlined_call_operand.hbm [shape: bf16[9,128,128], index: 5, kind: input, shape index: {}]   ;;  %s9230_s6 = inlined_call_operand.vmem [shape: f32[1,128], index: 6, kind: input, shape index: {}]   ;;  %s9231_s7 = inlined_call_operand.vmem [shape: f32[2,9,128], index: 7, kind: output, shape index: {}]  }
   0x1   :  { %14 = vsyncpa [#allocation3 + $0x1], 0 }
   0x2   :  { %15 = vsyncpa [#allocation5], 0 }
   0x3   :  { %16 = vsyncpa [#allocation8], 0  ;;  %s7743_s24 = smov 0   ;;  %s7745_s25 = smov 0  }
   0x4   :  { %s7747_s26 = smov 0   ;;  %s7749_s27 = smov 0  }
   0x5 LB: > { %s7762_s28 = sadd.s32 4294967295, %s7692_s27   ;;  %p42_p0 = scmp.ne.s32.totalorder %s7684_s25, %s7680_s24  ;;  %s7692_s27 = sphi %s7749_s27, %s9248_s27   ;;  %s7688_s26 = sphi %s7747_s26, %s9247_s26   ;;  %s7684_s25 = sphi %s7745_s25, %s9246_s25   ;;  %s7680_s24 = sphi %s7743_s24, %s9245_s24  }
   0x6   : > { %p9232_p1 = scmp.eq.s32.totalorder %s7762_s28, 0  ;;  %p6452_p2 = scmp.ge.s32.totalorder %s7692_s27, 1 }
   0x7   : > { %p205_p3 = scmp.lt.s32.totalorder %s7692_s27, 3  ;;  %s7694_s8 = smov [#allocation4]  }
   0x8   : > { %p7770_p4 = por %p9232_p1, %p42_p0  ;;  %s217_s9 = sshll.u32 %s7694_s8, 4  ;;  %s218_s9 = int_to_ptr.vmem [resolvable:$true] %s217_s9 }
   0x9   : > { %p7774_p5 = pnand %p6452_p2, %p205_p3  ;;  %s7695_s11 = smov [#allocation6]  }
   0xa   : > { %s9235_s29 = scalar_select %p7770_p4, 1, 0 }
   0xb   : > { %s9236_s30 = scalar_select %p7774_p5, 1, 0 }
   0xc   : > { %p7335_p6 = pneg %p7774_p5  ;;  %s233_s12 = sshll.u32 %s7695_s11, 4  ;;  %s234_s12 = int_to_ptr.vmem [resolvable:$true] %s233_s12 }
   0xd   : > { %s7696_s13 = smov [#allocation7]   ;;  %s7555_s15 = scalar_lea.vmem %s218_s9, 512 }
   0xe   : > { %p7782_p7 = pnand %p7335_p6, %p9232_p1  ;;  %s249_s14 = sshll.u32 %s7696_s13, 4  ;;  %s250_s14 = int_to_ptr.vmem [resolvable:$true] %s249_s14 }
   0xf   : > { %p7556_p9 = scmp.ne.s32.totalorder %s218_s9, %s7555_s15  ;;  %p7563_p12 = scmp.lt.s32.totalorder %s218_s9, %s218_s9 }
  0x10   : > { %p7546_p8 = pneg %p7782_p7  ;;  %p7564_p13 = scmp.lt.s32.totalorder %s7555_s15, %s7555_s15 }
  0x12   : > { %p7558_p10 = pnand %p7556_p9, %p7546_p8  ;;  %p7565_p0 = por %p7564_p13, %p7563_p12 }
  0x14   : > { %p7559_p11 = pneg %p7558_p10 }
  0x16   : > { %p7566_p2 = pnand %p7565_p0, %p7559_p11 }
  0x18   : > { %7569 = shalt.err (!%p7566_p2)
}
  0x19   : > { %s7697_s16 = smov 64   ;;  %s7698_s17 = smov 4  }
  0x1a   : > { %7338 = dma.hbm_to_vmem [thread:$0]  (!%p7782_p7), %s9225_s1, 512, %s218_s9, [#allocation5], %s7697_s16, %s7697_s16, %s7698_s17  }
  0x1b   : > { %s7581_s20 = scalar_lea.vmem %s234_s12, 9216  ;;  %p7589_p10 = scmp.lt.s32.totalorder %s234_s12, %s234_s12 }
  0x1c   : > { %p7582_p3 = scmp.ne.s32.totalorder %s234_s12, %s7581_s20  ;;  %p7590_p11 = scmp.lt.s32.totalorder %s7581_s20, %s7581_s20 }
  0x1e   : > { %p7584_p6 = pnand %p7582_p3, %p7546_p8  ;;  %p7591_p12 = por %p7590_p11, %p7589_p10 }
  0x20   : > { %p7585_p9 = pneg %p7584_p6 }
  0x22   : > { %p7592_p13 = pnand %p7591_p12, %p7585_p9 }
  0x24   : > { %7595 = shalt.err (!%p7592_p13)
}
  0x25   : > { %7341 = dma.hbm_to_vmem [thread:$0]  (!%p7782_p7), %s9227_s3, 9216, %s234_s12, [#allocation5], %s7697_s16, %s7697_s16, %s7698_s17  }
  0x26   : > { %s7607_s23 = scalar_lea.vmem %s250_s14, 9216  ;;  %p7615_p6 = scmp.lt.s32.totalorder %s250_s14, %s250_s14 }
  0x27   : > { %p7608_p0 = scmp.ne.s32.totalorder %s250_s14, %s7607_s23  ;;  %p7616_p9 = scmp.lt.s32.totalorder %s7607_s23, %s7607_s23 }
  0x29   : > { %p7610_p2 = pnand %p7608_p0, %p7546_p8  ;;  %p7617_p10 = por %p7616_p9, %p7615_p6 }
  0x2b   : > { %p7611_p3 = pneg %p7610_p2 }
  0x2d   : > { %p7618_p11 = pnand %p7617_p10, %p7611_p3 }
  0x2f   : > { %7621 = shalt.err (!%p7618_p11)
}
  0x30   : > { %7344 = dma.hbm_to_vmem [thread:$0]  (!%p7782_p7), %s9229_s5, 9216, %s250_s14, [#allocation8], %s7697_s16, %s7697_s16, %s7698_s17  }
  0x31   : > { %s7822_s9 = sadd.s32 1, %s7692_s27   ;;  %s29_s11 = sadd.s32 1, %s7688_s26 }
  0x32   : > { %s26_s10 = ssub.s32 %s7692_s27, %s7822_s9  ;;  %p36_p12 = scmp.ne.s32.totalorder %s7688_s26, %s7684_s25 }
  0x33   : > { %p27_p8 = scmp.eq.s32.totalorder %s26_s10, 0  ;;  %p37_p13 = scmp.eq.s32.totalorder %s7692_s27, 0 }
  0x34   : > { %p7352_p0 = scmp.lt.s32.totalorder %s7692_s27, 2  ;;  %s266_s13 = sand.u32 1, %s7688_s26  }
  0x35   : > { %s7832_s12 = scalar_select %p27_p8, %s7688_s26, %s29_s11  }
  0x36   : > { %p38_p2 = por %p37_p13, %p36_p12  ;;  %s6457_s15 = sshll.u32 %s266_s13, 5 }
  0x37   : > { %s6728_s18 = sshll.u32 %s7692_s27, 9  ;;  %s270_s14 = scalar_lea.vmem [#allocation2], %s6457_s15 }
  0x38   : > { %s7839_s21 = scalar_lea.hbm %s9224_s0, %s6728_s18  ;;  %s277_s22 = sshll.u32 %s270_s14, 4  ;;  %s7841_s22 = int_to_ptr.vmem [resolvable:$true] %s277_s22 }
  0x39   : > { %p7843_p7 = pnand %p7352_p0, %p38_p2  ;;  %s7847_s24 = scalar_lea.sflag [#allocation3], %s266_s13 }
  0x3a   : > { %s7622_s27 = scalar_lea.hbm %s7839_s21, 512  ;;  %s7627_s11 = scalar_lea.hbm %s9224_s0, 1024 }
  0x3b   : > { %p7623_p3 = scmp.ne.s32.totalorder %s7839_s21, %s7622_s27  ;;  %p7624_p6 = pneg %p7843_p7 }
  0x3c   : > { %p7628_p11 = scmp.lt.s32.totalorder %s7839_s21, %s9224_s0  ;;  %p7629_p8 = scmp.lt.s32.totalorder %s7627_s11, %s7622_s27 }
  0x3d   : > { %p7625_p9 = pnand %p7624_p6, %p7623_p3 }
  0x3e   : > { %p7630_p12 = por %p7629_p8, %p7628_p11 }
  0x3f   : > { %p7626_p10 = pneg %p7625_p9 }
  0x41   : > { %p7631_p13 = pnand %p7630_p12, %p7626_p10 }
  0x43   : > { %7634 = shalt.err (!%p7631_p13)
}
  0x44   : > { %s7635_s13 = scalar_lea.vmem %s7841_s22, 512  ;;  %s7699_s19 = smov [#allocation2]  }
  0x45   : > { %p7636_p0 = scmp.ne.s32.totalorder %s7841_s22, %s7635_s13  ;;  %s7640_s20 = sshll.u32 %s7699_s19, 4  ;;  %s7641_s20 = int_to_ptr.vmem [resolvable:$false] %s7640_s20 }
  0x46   : > { %s7642_s14 = scalar_lea.vmem %s7641_s20, 1024  ;;  %p7643_p9 = scmp.lt.s32.totalorder %s7841_s22, %s7641_s20 }
  0x47   : > { %p7638_p2 = pnand %p7636_p0, %p7624_p6  ;;  %p7644_p1 = scmp.lt.s32.totalorder %s7642_s14, %s7635_s13 }
  0x49   : > { %p7639_p3 = pneg %p7638_p2  ;;  %p7645_p4 = por %p7644_p1, %p7643_p9 }
  0x4b   : > { %p7646_p5 = pnand %p7645_p4, %p7639_p3 }
  0x4d   : > { %7649 = shalt.err (!%p7646_p5)
}
  0x4e   : > { %7348 = dma.hbm_to_vmem [thread:$0]  (!%p7843_p7), %s7839_s21, 512, %s7841_s22, %s7847_s24, %s7697_s16, %s7697_s16, %s7698_s17  }
  0x4f   : > { %p9239_p6 = scmp.ne.s32.totalorder %s9236_s30, 0 }
  0x50   : > { %s291_s27 = sand.u32 (!%p9239_p6), 1, %s7684_s25   ;;  %p9240_p1 = scmp.ne.s32.totalorder (!%p9239_p6), %s9235_s29, 0 }
  0x51   : > { %289 = sbr.rel (%p9239_p6) target bundleno = 1143 (0x477), region = 48  ;;  %s6461_s8 = sshll.u32 (!%p9239_p6), %s291_s27, 5 }
  0x52   : > { %s292_s10 = scalar_lea.sflag (!%p9239_p6), [#allocation3], %s291_s27  ;;  %s7874_s11 = scalar_lea.vmem (!%p9239_p6), [#allocation2], %s6461_s8 }
  0x56   : > { %7667 = dma.done.wait (%p9240_p1), %s292_s10, 512  }
  0x57   : > { %7669 = vsyncadd (%p9240_p1), %s292_s10, 4294966784  ;;  %p9241_p4 = scmp.eq.s32.totalorder %s7762_s28, 0 }
  0x59   : > { %7671 = dma.done.wait (%p9241_p4), [#allocation5], 9728   ;;  %p9242_p5 = pmov %p9241_p4 }
  0x5a   : > { %p9243_p7 = pmov %p9241_p4 }
  0x5b   : > { %7673 = vsyncadd (%p9242_p5), [#allocation5], 4294957568 }
  0x5c   : > { %7675 = dma.done.wait (%p9243_p7), [#allocation8], 9216   ;;  %p9244_p10 = pmov %p9241_p4 }
  0x5d   : > { %v370_v0 = vlaneseq  ;;  %v7700_v1 = vmov 1966171168   ;;  %v7396_v5 = vld [vmem:[#allocation4] sm:$0xff]   ;;  %v7397_v7 = vld [vmem:[#allocation4 + $0x8] sm:$0xff]   ;;  %v7899_v15 = vld [vmem:[#allocation4 + $0x10] sm:$0xff]   ;;  %vm780_vm0 = vcmask 130048  }
  0x5e   : > { %7677 = vsyncadd (%p9244_p10), [#allocation8], 4294958080  ;;  %v368_v2 = vunpack.c.l.s4 %v7700_v1  ;;  %6931 = vmatprep.subr.bf16.mxu1 %v7396_v5  ;;  %v6467_v8 = vld.sshfl [vmem:[%s7874_s11] sm:$0x33 pattern:$0x75316420]  ;;  %6921 = vmatprep.subr.bf16.mxu0 %v7397_v7 }
  0x5f   : > { %v371_v4 = vshrl.u32 %v370_v0, 7  ;;  %6932 = vmatpush3.bf16.msra.mxu1 %v7396_v5  ;;  %v6468_v9 = vld.sshfl [vmem:[%s7874_s11 + $0x4] sm:$0x33 pattern:$0x75316420]  ;;  %v366_v10 = vcombine.high %v6467_v8, %v6467_v8  ;;  %6922 = vmatpush3.bf16.msra.mxu0 %v7397_v7  ;;  %v7901_v16 = vld [vmem:[#allocation4 + $0x18] sm:$0xff]  }
  0x60   : > { %v369_v3 = vunpack.c.0.s8 %v368_v2  ;;  %v6469_v12 = vld.sshfl [vmem:[%s7874_s11 + $0x8] sm:$0x33 pattern:$0x75316420]  ;;  %v390_v13 = vcombine.high %v6468_v9, %v6468_v9  ;;  %6941 = vmatprep.subr.bf16.mxu0 %v7899_v15  ;;  %6951 = vmatprep.subr.bf16.mxu1 %v7901_v16  ;;  %vm7702_vm1 = vmmov 0   ;;  %p338_p11 = scmp.lt.s32.totalorder %s7762_s28, 1 }
  0x61   : > { %v414_v19 = vcombine.high %v6469_v12, %v6469_v12  ;;  %v6470_v21 = vld.sshfl [vmem:[%s7874_s11 + $0xc] sm:$0x33 pattern:$0x75316420] }
  0x62   : > { %v7888_v6 = vsub.s32 %v369_v3, %v371_v4  ;;  %v438_v25 = vcombine.high %v6470_v21, %v6470_v21  ;;  %v6471_v34 = vld.sshfl [vmem:[%s7874_s11 + $0x10] sm:$0x33 pattern:$0x75316420]  ;;  %s9250_s28 = smov (!%p338_p11, %s7762_s28), 1 }
  0x63   : > { %v462_v45 = vcombine.high %v6471_v34, %v6471_v34  ;;  %s6729_s23 = sshll.u32 %s9250_s28, 4 }
  0x64   : > { %v7893_v11 = vrot.slane %v6467_v8, %v7888_v6  ;;  %v7897_v14 = vrot.slane %v6468_v9, %v7888_v6  ;;  %v7904_v17 = vrot.slane %v366_v10, %v7888_v6  ;;  %v7911_v20 = vrot.slane %v6469_v12, %v7888_v6  ;;  %s342_s18 = scalar_lea.vmem %s9231_s7, %s6729_s23 }
  0x65   : > { %v7915_v22 = vrot.slane %v390_v13, %v7888_v6  ;;  %v7929_v27 = vrot.slane %v414_v19, %v7888_v6  ;;  %v7959_v42 = vrot.slane %v6470_v21, %v7888_v6  ;;  %v7963_v44 = vrot.slane %v438_v25, %v7888_v6 }
  0x66   : > { %v7908_v18 = vcombine.high %v7893_v11, %v7893_v11  ;;  %v7919_v23 = vcombine.high %v7897_v14, %v7897_v14  ;;  %v535_v24 = vunpack.i.h.s16 %v7897_v14  ;;  %v7926_v26 = vcombine.high %v7904_v17, %v7904_v17 }
  0x67   : > { %v542_v28 = vunpack.i.h.s16 %v7911_v20  ;;  %v882_v29 = vcombine.low %v7893_v11, %v7904_v17  ;;  %v7936_v30 = vcombine.high %v7915_v22, %v7915_v22  ;;  %v537_v31 = vunpack.i.h.s16 %v7915_v22 }
  0x68   : > { %v539_v32 = vunpack.i.h.s16 %v7919_v23  ;;  %v6493_v33 = vpack.i.b16 %v7915_v22, %v535_v24  ;;  %v6492_v35 = vpack.i.b16 %v7897_v14, %v7926_v26  ;;  %v7949_v37 = vcombine.high %v7911_v20, %v7911_v20 }
  0x69   : > { %v892_v36 = vrot.slane %v882_v29, %v7888_v6  ;;  %v7953_v38 = vcombine.high %v7929_v27, %v7929_v27  ;;  %v579_v39 = vunpack.i.h.s16 %v7936_v30  ;;  %v6494_v40 = vpack.i.b16 %v7919_v23, %v537_v31 }
  0x6a   : > { %v6495_v41 = vpack.i.b16 %v7936_v30, %v539_v32  ;;  %v883_v43 = vcombine.low %v7908_v18, %v6492_v35  ;;  %v7966_v46 = vrot.slane %v6471_v34, %v7888_v6  ;;  %v7973_v50 = vcombine.high %v7959_v42, %v7959_v42 }
  0x6b   : > { %v884_v47 = vcombine.low %v6493_v33, %v6494_v40  ;;  %v1424_v49 = vpack.i.b16 %v542_v28, %v579_v39  ;;  %v7978_v52 = vcombine.high %v7963_v44, %v7963_v44  ;;  %v7981_v53 = vrot.slane %v462_v45, %v7888_v6 }
  0x6c   : > { %v885_v48 = vcombine.low %v6495_v41, %v7911_v20  ;;  %v899_v51 = vrot.slane %v883_v43, %v7888_v6  ;;  %v549_v54 = vunpack.i.h.s16 %v7959_v42  ;;  %v551_v58 = vunpack.i.h.s16 %v7963_v44 }
  0x6d   : > { %v7985_v55 = vrot.slane %v884_v47, %v7888_v6  ;;  %v1434_v57 = vcombine.low %v6495_v41, %v1424_v49  ;;  %v553_v60 = vunpack.i.h.s16 %v7973_v50  ;;  %v556_v61 = vunpack.i.h.s16 %v7966_v46 }
  0x6e   : > { %v913_v56 = vrot.slane %v885_v48, %v7888_v6  ;;  %v914_v59 = vcombine.low %v892_v36, %v899_v51  ;;  %v581_v62 = vunpack.i.h.s16 %v7978_v52  ;;  %v6496_v1 = vpack.i.b16 %v7959_v42, %v7953_v38 }
  0x6f   : > { %v7994_v0 = vrot.slane %v1434_v57, %v7888_v6  ;;  %v8001_v2 = vpack.i.b16 %v7963_v44, %v549_v54  ;;  %v6498_v4 = vpack.i.b16 %v7973_v50, %v551_v58  ;;  %v6499_v5 = vpack.i.b16 %v7978_v52, %v553_v60 }
  0x70   : > { %v915_v63 = vcombine.low %v7985_v55, %v913_v56  ;;  %v922_v3 = vrot.slane %v914_v59, %v7888_v6  ;;  %v931_v7 = vcombine.low %v7929_v27, %v7949_v37  ;;  %v934_v12 = vcombine.low %v7966_v46, %v7981_v53 }
  0x71   : > { %v1450_v9 = vcombine.low %v7985_v55, %v7994_v0  ;;  %v932_v10 = vcombine.low %v6496_v1, %v8001_v2  ;;  %v933_v13 = vcombine.low %v6498_v4, %v6499_v5  ;;  %v1426_v21 = vpack.i.b16 %v556_v61, %v581_v62 }
  0x72   : > { %v929_v8 = vrot.slane %v915_v63, %v7888_v6  ;;  %v8015_v19 = vrot.slane %v931_v7, %v7888_v6  ;;  %v528_v25 = vunpack.i.h.s16 %v7893_v11  ;;  %v962_v32 = vrot.slane %v934_v12, %v7888_v6  ;;  %v6473_v12 = vld.sshfl [vmem:[%s7874_s11 + $0x18] sm:$0x33 pattern:$0x75316420] }
  0x73   : > { %v948_v31 = vrot.slane %v932_v10, %v7888_v6  ;;  %v530_v33 = vunpack.i.h.s16 %v7904_v17  ;;  %v955_v34 = vrot.slane %v933_v13, %v7888_v6  ;;  %v1467_v35 = vcombine.low %v1426_v21, %v7981_v53  ;;  %v6472_v10 = vld.sshfl [vmem:[%s7874_s11 + $0x14] sm:$0x33 pattern:$0x75316420] }
  0x74   : > { %v930_v29 = vcombine.low %v922_v3, %v929_v8  ;;  %v532_v36 = vunpack.i.h.s16 %v7908_v18  ;;  %v544_v39 = vunpack.i.h.s16 %v7929_v27  ;;  %v578_v11 = vunpack.i.h.s16 %v7926_v26 }
  0x75   : > { %v963_v40 = vcombine.low %v8015_v19, %v948_v31  ;;  %v6474_v41 = vpack.i.b16 %v7904_v17, %v528_v25  ;;  %v6475_v43 = vpack.i.b16 %v7908_v18, %v530_v33  ;;  %v964_v45 = vcombine.low %v955_v34, %v962_v32 }
  0x76   : > { %6933 = vmatprep.mubr.msk.bf16.mxu1 %vm780_vm0, %v930_v29  ;;  %v1475_v47 = vrot.slane %v1467_v35, %v7888_v6  ;;  %v6476_v48 = vpack.i.b16 %v7926_v26, %v532_v36  ;;  %v8035_v49 = vpack.i.b16 %v7929_v27, %v542_v28  ;;  %v591_v56 = vpack.i.b16 %v535_v24, %v578_v11 }
  0x77   : > { %v971_v51 = vrot.slane %v963_v40, %v7888_v6  ;;  %v8041_v57 = vpack.i.b16 %v7949_v37, %v544_v39  ;;  %v613_v17 = vcombine.low %v6474_v41, %v6475_v43  ;;  %v978_v18 = vrot.slane %v964_v45, %v7888_v6 }
  0x78   : > { %v1483_v58 = vcombine.low %v955_v34, %v1475_v47  ;;  %v615_v26 = vcombine.low %v7915_v22, %v7919_v23  ;;  %v616_v27 = vcombine.low %v7936_v30, %v8035_v49  ;;  %v614_v28 = vcombine.low %v6476_v48, %v591_v56 }
  0x79   : > { %v623_v59 = vrot.slane %v613_v17, %v7888_v6  ;;  %v1172_v24 = vcombine.low %v8035_v49, %v8041_v57  ;;  %v8053_v60 = vcombine.high %v7966_v46, %v7966_v46  ;;  %v979_v62 = vcombine.low %v971_v51, %v978_v18 }
  0x7a   : > { %v8056_v63 = vrot.slane %v1483_v58, %v7888_v6  ;;  %v637_v1 = vrot.slane %v615_v26, %v7888_v6  ;;  %v644_v3 = vrot.slane %v616_v27, %v7888_v6  ;;  %v630_v4 = vrot.slane %v614_v28, %v7888_v6 }
  0x7b   : > { %v546_v5 = vunpack.i.h.s16 %v7949_v37  ;;  %v558_v7 = vunpack.i.h.s16 %v7981_v53  ;;  %v580_v8 = vunpack.i.h.s16 %v7953_v38  ;;  %6934 = vmatmul.mubr.msk.bf16.vlgmr.msra.gmra.mxu1 %vm780_vm0, %v979_v62  ;;  %v6480_v21 = vpack.i.b16 %v7981_v53, %v556_v61 }
  0x7c   : > { %v646_v13 = vcombine.low %v637_v1, %v644_v3  ;;  %v6486_v25 = vcombine.high %v7959_v42, %v7963_v44  ;;  %v6511_v29 = vpack.i.b16 %v7966_v46, %v7978_v52  ;;  %v645_v31 = vcombine.low %v623_v59, %v630_v4  ;;  %6952 = vmatpush3.bf16.msra.mxu1 %v7901_v16 }
  0x7d   : > { %v8073_v37 = vpack.i.b16 %v7953_v38, %v546_v5  ;;  %v598_v32 = vpack.i.b16 %v549_v54, %v580_v8  ;;  %v8078_v33 = vpack.i.b16 %v8053_v60, %v558_v7  ;;  %v478_v52 = vcombine.high %v7981_v53, %v7981_v53 }
  0x7e   : > { %v660_v61 = vrot.slane %v646_v13, %v7888_v6  ;;  %v686_v34 = vrot.slane %v6486_v25, %v7888_v6  ;;  %v8083_v35 = vcombine.low %v6511_v29, %v6480_v21  ;;  %v653_v36 = vrot.slane %v645_v31, %v7888_v6 }
  0x7f   : > { %v662_v39 = vcombine.low %v8041_v57, %v8073_v37  ;;  %v663_v54 = vcombine.low %v598_v32, %v7963_v44  ;;  %v665_v40 = vcombine.low %v6480_v21, %v8078_v33  ;;  %v486_v11 = vcombine.high %v6472_v10, %v6472_v10 }
  0x80   : > { %v1236_v16 = vrot.slane %v8083_v35, %v7888_v6  ;;  %v8095_v41 = vrot.slane %v6472_v10, %v7888_v6  ;;  %v510_v43 = vcombine.high %v6473_v12, %v6473_v12  ;;  %v661_v45 = vcombine.low %v653_v36, %v660_v61 }
  0x81   : > { %v672_v47 = vrot.slane %v662_v39, %v7888_v6  ;;  %v679_v48 = vrot.slane %v663_v54, %v7888_v6  ;;  %v693_v51 = vrot.slane %v665_v40, %v7888_v6  ;;  %v8101_v56 = vrot.slane %v486_v11, %v7888_v6 }
  0x82   : > { %v8105_v17 = vcombine.high %v8095_v41, %v8095_v41  ;;  %v8108_v18 = vrot.slane %v6473_v12, %v7888_v6  ;;  %v524_v58 = vrot.slane %v510_v43, %v7888_v6  ;;  %6923 = vmatprep.mubr.msk.bf16.mxu0 %vm780_vm0, %v661_v45  ;;  %v563_v28 = vunpack.i.h.s16 %v8095_v41 }
  0x83   : > { %v694_v26 = vcombine.low %v672_v47, %v679_v48  ;;  %v695_v27 = vcombine.low %v686_v34, %v693_v51  ;;  %v6500_v59 = vpack.i.b16 %v8095_v41, %v478_v52  ;;  %v8116_v62 = vcombine.high %v8101_v56, %v8101_v56 }
  0x84   : > { %v525_v1 = vcombine.high %v8108_v18, %v8108_v18  ;;  %v565_v3 = vunpack.i.h.s16 %v8101_v56  ;;  %v567_v4 = vunpack.i.h.s16 %v8105_v17  ;;  %v6501_v8 = vpack.i.b16 %v8101_v56, %v563_v28 }
  0x85   : > { %v702_v5 = vrot.slane %v694_v26, %v7888_v6  ;;  %v709_v7 = vrot.slane %v695_v27, %v7888_v6  ;;  %v980_v10 = vcombine.low %v8053_v60, %v6500_v59  ;;  %v6521_v25 = vcombine.high %v7966_v46, %v7981_v53 }
  0x86   : > { %v6502_v12 = vpack.i.b16 %v8105_v17, %v565_v3  ;;  %v8128_v13 = vpack.i.b16 %v8116_v62, %v567_v4  ;;  %v983_v21 = vcombine.low %v524_v58, %v525_v1  ;;  %v8133_v32 = vcombine.high %v524_v58, %v524_v58 }
  0x87   : > { %v710_v29 = vcombine.low %v702_v5, %v709_v7  ;;  %v990_v31 = vrot.slane %v980_v10, %v7888_v6  ;;  %v560_v61 = vunpack.i.h.s16 %v8053_v60  ;;  %v1482_v54 = vrot.slane %v6521_v25, %v7888_v6 }
  0x88   : > { %v981_v34 = vcombine.low %v6501_v8, %v6502_v12  ;;  %v982_v36 = vcombine.low %v8128_v13, %v8108_v18  ;;  %v8139_v39 = vrot.slane %v983_v21, %v7888_v6  ;;  %v575_v46 = vunpack.i.l.s16 %v8133_v32 }
  0x89   : > { %6924 = vmatmul.mubr.msk.bf16.vlgmr.msra.gmra.mxu0 %vm780_vm0, %v710_v29  ;;  %v570_v53 = vunpack.i.h.s16 %v8108_v18  ;;  %v572_v40 = vunpack.i.h.s16 %v524_v58  ;;  %v574_v11 = vunpack.i.h.s16 %v525_v1  ;;  %v582_v45 = vunpack.i.h.s16 %v478_v52 }
  0x8a   : > { %6942 = vmatpush3.bf16.msra.mxu0 %v7899_v15  ;;  %v997_v60 = vrot.slane %v981_v34, %v7888_v6  ;;  %v1004_v43 = vrot.slane %v982_v36, %v7888_v6  ;;  %v6482_v47 = vpack.i.b16 %v478_v52, %v560_v61  ;;  %v1035_v48 = vrot.slane %v575_v46, %v7888_v6 }
  0x8b   : > { %v8151_v51 = vpack.i.b16 %v524_v58, %v570_v53  ;;  %v8153_v26 = vpack.i.b16 %v525_v1, %v572_v40  ;;  %v8156_v27 = vpack.i.b16 %v8133_v32, %v574_v11  ;;  %v605_v4 = vpack.i.b16 %v563_v28, %v582_v45 }
  0x8c   : > { %v1012_v59 = vcombine.low %v990_v31, %v997_v60  ;;  %v1013_v15 = vcombine.low %v1004_v43, %v8139_v39  ;;  %v1484_v3 = vcombine.low %v1482_v54, %v997_v60  ;;  %v1042_v5 = vrot.slane %v1035_v48, %v7888_v6 }
  0x8d   : > { %v712_v52 = vcombine.low %v8101_v56, %v8105_v17  ;;  %v713_v7 = vcombine.low %v8116_v62, %v8151_v51  ;;  %v714_v58 = vcombine.low %v8153_v26, %v8156_v27  ;;  %v711_v12 = vcombine.low %v6482_v47, %v605_v4 }
  0x8e   : > { %v1020_v1 = vrot.slane %v1012_v59, %v7888_v6  ;;  %v1027_v8 = vrot.slane %v1013_v15, %v7888_v6  ;;  %v1498_v10 = vrot.slane %v1484_v3, %v7888_v6  ;;  %v1221_v29 = vcombine.low %v8078_v33, %v6482_v47 }
  0x8f   : > { %v728_v28 = vrot.slane %v712_v52, %v7888_v6  ;;  %v735_v21 = vrot.slane %v713_v7, %v7888_v6  ;;  %v742_v25 = vrot.slane %v714_v58, %v7888_v6  ;;  %v721_v61 = vrot.slane %v711_v12, %v7888_v6 }
  0x90   : > { %v1028_v31 = vcombine.low %v1020_v1, %v1027_v8  ;;  %v584_v34 = vunpack.i.h.s16 %v8133_v32  ;;  %v1435_v36 = vcombine.low %v7953_v38, %v8001_v2  ;;  %v1243_v46 = vrot.slane %v1221_v29, %v7888_v6  ;;  %v6509_v2 = vld.sshfl [vmem:[%s7874_s11 + $0x1c] sm:$0x33 pattern:$0x75316420] }
  0x91   : > { %v744_v54 = vcombine.low %v735_v21, %v742_v25  ;;  %v1458_v40 = vrot.slane %v1450_v9, %v7888_v6  ;;  %v1499_v11 = vcombine.low %v8056_v63, %v1498_v10  ;;  %v743_v33 = vcombine.low %v721_v61, %v728_v28 }
  0x92   : > { %6937 = vmatprep.mubr.msk.bf16.mxu1 %vm780_vm0, %v1028_v31  ;;  %v766_v60 = vrot.slane %v584_v34, %v7888_v6  ;;  %v1449_v43 = vrot.slane %v1435_v36, %v7888_v6  ;;  %v6510_v38 = vpack.i.b16 %v7911_v20, %v7936_v30  ;;  %v1170_v55 = vcombine.low %v7897_v14, %v7915_v22 }
  0x93   : > { %6938 = vmatmul.mubr.msk.bf16.gmra.mxu1 %vm780_vm0, %v1042_v5  ;;  %v758_v45 = vrot.slane %v744_v54, %v7888_v6  ;;  %v1173_v0 = vcombine.low %v8073_v37, %v7959_v42  ;;  %v1194_v9 = vrot.slane %v1172_v24, %v7888_v6  ;;  %v751_v63 = vrot.slane %v743_v33, %v7888_v6 }
  0x94   : > { %v773_v20 = vrot.slane %v766_v60, %v7888_v6  ;;  %v1451_v30 = vcombine.low %v8015_v19, %v1449_v43  ;;  %v1171_v47 = vcombine.low %v7919_v23, %v6510_v38  ;;  %v1180_v48 = vrot.slane %v1170_v55, %v7888_v6 }
  0x95   : > { %v1201_v14 = vrot.slane %v1173_v0, %v7888_v6  ;;  %v1219_v22 = vcombine.low %v7963_v44, %v7973_v50  ;;  %v1222_v42 = vcombine.low %v8095_v41, %v8101_v56  ;;  %v759_v49 = vcombine.low %v751_v63, %v758_v45 }
  0x96   : > { %v1465_v57 = vrot.slane %v1451_v30, %v7888_v6  ;;  %v1187_v24 = vrot.slane %v1171_v47, %v7888_v6  ;;  %v583_v37 = vunpack.i.h.s16 %v8116_v62  ;;  %v1133_v15 = vcombine.high %v6509_v2, %v6509_v2 }
  0x97   : > { %v1203_v19 = vcombine.low %v1194_v9, %v1201_v14  ;;  %v1229_v23 = vrot.slane %v1219_v22, %v7888_v6  ;;  %v1250_v59 = vrot.slane %v1222_v42, %v7888_v6  ;;  %6927 = vmatprep.mubr.msk.bf16.mxu0 %vm780_vm0, %v759_v49  ;;  %v1140_v50 = vrot.slane %v6509_v2, %v7888_v6  ;;  %v7400_v14 = vld [vmem:[#allocation6 + $0x38] sm:$0xff]   ;;  %v7402_v42 = vld [vmem:[#allocation6 + $0x30] sm:$0xff]  }
  0x98   : > { %v1466_v3 = vcombine.low %v1458_v40, %v1465_v57  ;;  %v1202_v44 = vcombine.low %v1180_v48, %v1187_v24  ;;  %v1428_v41 = vpack.i.b16 %v570_v53, %v583_v37  ;;  %6928 = vmatmul.mubr.msk.bf16.gmra.mxu0 %vm780_vm0, %v773_v20  ;;  %v1147_v52 = vrot.slane %v1133_v15, %v7888_v6  ;;  %v7401_v22 = vld [vmem:[#allocation6 + $0x78] sm:$0xff]   ;;  %v7403_v49 = vld [vmem:[#allocation6 + $0x70] sm:$0xff]   ;;  %v7404_v57 = vld [vmem:[#allocation6 + $0x28] sm:$0xff]  }
  0x99   : > { %v1217_v56 = vrot.slane %v1203_v19, %v7888_v6  ;;  %v1251_v4 = vcombine.low %v1229_v23, %v1236_v16  ;;  %v1252_v5 = vcombine.low %v1243_v46, %v1250_v59  ;;  %v1148_v58 = vcombine.high %v1140_v50, %v1140_v50  ;;  %6981 = vmatprep.subr.bf16.mxu1 %v7400_v14  ;;  %v7405_v24 = vld [vmem:[#allocation6 + $0x68] sm:$0xff]   ;;  %v7406_v37 = vld [vmem:[#allocation6 + $0x20] sm:$0xff]   ;;  %v7408_v23 = vld [vmem:[#allocation6 + $0x18] sm:$0xff]  }
  0x9a   : > { %6953 = vmatprep.mubr.msk.bf16.mxu1 %vm780_vm0, %v1466_v3  ;;  %v1210_v7 = vrot.slane %v1202_v44, %v7888_v6  ;;  %v1151_v1 = vunpack.i.h.s16 %v1140_v50  ;;  %v1500_v8 = vcombine.low %v8128_v13, %v1428_v41  ;;  %v1149_v12 = vcombine.high %v1147_v52, %v1147_v52  ;;  %6961 = vmatprep.subr.bf16.mxu0 %v7401_v22  ;;  %v7407_v19 = vld [vmem:[#allocation6 + $0x60] sm:$0xff]   ;;  %v7409_v59 = vld [vmem:[#allocation6 + $0x58] sm:$0xff]   ;;  %v7410_v15 = vld [vmem:[#allocation6 + $0x10] sm:$0xff]  }
  0x9b   : > { %6954 = vmatmul.mubr.msk.bf16.vlgmr.msra.gmra.mxu1 %vm780_vm0, %v1499_v11  ;;  %v1259_v53 = vrot.slane %v1251_v4, %v7888_v6  ;;  %v1266_v10 = vrot.slane %v1252_v5, %v7888_v6  ;;  %v1153_v35 = vunpack.i.h.s16 %v1147_v52  ;;  %v1155_v28 = vunpack.i.h.s16 %v1148_v58  ;;  %v7411_v3 = vld [vmem:[#allocation6 + $0x50] sm:$0xff]   ;;  %v7412_v44 = vld [vmem:[#allocation6 + $0x8] sm:$0xff]   ;;  %v7414_v41 = vld [vmem:[#allocation6] sm:$0xff]  }
  0x9c   : > { %v1218_v16 = vcombine.low %v1210_v7, %v1217_v56  ;;  %v6518_v21 = vpack.i.b16 %v1147_v52, %v1151_v1  ;;  %v1509_v25 = vrot.slane %v1500_v8, %v7888_v6  ;;  %v6512_v61 = vpack.i.b16 %v8108_v18, %v8116_v62  ;;  %6982 = vmatpush3.bf16.msra.mxu1 %v7400_v14  ;;  %v7415_v56 = vld [vmem:[#allocation6 + $0x40] sm:$0xff]   ;;  %v8259_v4 = vld [vmem:[#allocation6 + $0xf8] sm:$0xff]  }
  0x9d   : > { %v1267_v29 = vcombine.low %v1259_v53, %v1266_v10  ;;  %v6519_v31 = vpack.i.b16 %v1148_v58, %v1153_v35  ;;  %v6520_v13 = vpack.i.b16 %v1149_v12, %v1155_v28  ;;  %v1269_v36 = vcombine.low %v8151_v51, %v8153_v26  ;;  %6983 = vmatprep.subr.bf16.mxu1 %v7402_v42  ;;  %v8262_v5 = vld [vmem:[#allocation6 + $0xb8] sm:$0xff]  }
  0x9e   : > { %6943 = vmatprep.mubr.msk.bf16.mxu0 %vm780_vm0, %v1218_v16  ;;  %v1501_v34 = vcombine.low %v8133_v32, %v6518_v21  ;;  %v1420_v54 = vunpack.i.h.s16 %v1149_v12  ;;  %v1268_v46 = vcombine.low %v8105_v17, %v6512_v61  ;;  %v1270_v40 = vcombine.low %v8156_v27, %v1140_v50  ;;  %v7413_v50 = vld [vmem:[#allocation6 + $0x48] sm:$0xff]  }
  0x9f   : > { %v1271_v11 = vcombine.low %v1147_v52, %v1148_v58  ;;  %v1502_v33 = vcombine.low %v6519_v31, %v6520_v13  ;;  %v1524_v43 = vcombine.low %v1509_v25, %v8139_v39  ;;  %v1285_v18 = vrot.slane %v1269_v36, %v7888_v6 }
  0xa0   : > { %v1516_v60 = vrot.slane %v1501_v34, %v7888_v6  ;;  %6944 = vmatmul.mubr.msk.bf16.vlgmr.msra.gmra.mxu0 %vm780_vm0, %v1267_v29  ;;  %v1278_v62 = vrot.slane %v1268_v46, %v7888_v6  ;;  %v1292_v32 = vrot.slane %v1270_v40, %v7888_v6  ;;  %v1156_v26 = vunpack.i.l.s16 %v1149_v12  ;;  %6984 = vmatpush3.bf16.msra.mxu1 %v7402_v42 }
  0xa1   : > { %v1299_v51 = vrot.slane %v1271_v11, %v7888_v6  ;;  %v1523_v17 = vrot.slane %v1502_v33, %v7888_v6  ;;  %v1547_v27 = vrot.slane %v1420_v54, %v7888_v6  ;;  %v1532_v39 = vrot.slane %v1524_v43, %v7888_v6  ;;  %6962 = vmatpush3.bf16.msra.mxu0 %v7401_v22 }
  0xa2   : > { %v1300_v38 = vcombine.low %v1278_v62, %v1285_v18  ;;  %v1323_v55 = vrot.slane %v1156_v26, %v7888_v6  ;;  %6963 = vmatprep.subr.bf16.mxu0 %v7403_v49  ;;  %6985 = vmatprep.subr.bf16.mxu1 %v7404_v57 }
  0xa3   : > { %v1301_v2 = vcombine.low %v1292_v32, %v1299_v51  ;;  %v1525_v45 = vcombine.low %v1516_v60, %v1523_v17  ;;  %v1554_v30 = vrot.slane %v1547_v27, %v7888_v6  ;;  %v8270_v60 = vld [vmem:[%s9226_s2] ss:$0 sm:$0xff] }
  0xa4   : > { %v1308_v0 = vrot.slane %v1300_v38, %v7888_v6  ;;  %v1330_v20 = vrot.slane %v1323_v55, %v7888_v6  ;;  %6986 = vmatpush3.bf16.msra.mxu1 %v7404_v57 }
  0xa5   : > { %v1315_v9 = vrot.slane %v1301_v2, %v7888_v6  ;;  %v1539_v63 = vrot.slane %v1525_v45, %v7888_v6  ;;  %6964 = vmatpush3.bf16.msra.mxu0 %v7403_v49  ;;  %6987 = vmatprep.subr.bf16.mxu1 %v7406_v37 }
  0xa6   : > { %6965 = vmatprep.subr.bf16.mxu0 %v7405_v24 }
  0xa7   : > { %v1316_v47 = vcombine.low %v1308_v0, %v1315_v9  ;;  %v1540_v48 = vcombine.low %v1532_v39, %v1539_v63 }
  0xa8   : > { %6988 = vmatpush3.bf16.msra.mxu1 %v7406_v37 }
  0xa9   : > { %6947 = vmatprep.mubr.msk.bf16.mxu0 %vm780_vm0, %v1316_v47  ;;  %6957 = vmatprep.mubr.msk.bf16.mxu1 %vm780_vm0, %v1540_v48 }
  0xaa   : > { %6948 = vmatmul.mubr.msk.bf16.gmra.mxu0 %vm780_vm0, %v1330_v20  ;;  %6958 = vmatmul.mubr.msk.bf16.gmra.mxu1 %vm780_vm0, %v1554_v30 }
  0xab   : > { %6966 = vmatpush3.bf16.msra.mxu0 %v7405_v24  ;;  %6989 = vmatprep.subr.bf16.mxu1 %v7408_v23 }
  0xac   : > { %6967 = vmatprep.subr.bf16.mxu0 %v7407_v19  ;;  %6990 = vmatpush3.bf16.msra.mxu1 %v7408_v23 }
  0xad   : > { %6991 = vmatprep.subr.bf16.mxu1 %v7410_v15 }
  0xaf   : > { %6968 = vmatpush3.bf16.msra.mxu0 %v7407_v19 }
  0xb0   : > { %6969 = vmatprep.subr.bf16.mxu0 %v7409_v59  ;;  %6992 = vmatpush3.bf16.msra.mxu1 %v7410_v15 }
  0xb1   : > { %6993 = vmatprep.subr.bf16.mxu1 %v7412_v44 }
  0xb3   : > { %6970 = vmatpush3.bf16.msra.mxu0 %v7409_v59 }
  0xb4   : > { %6971 = vmatprep.subr.bf16.mxu0 %v7411_v3  ;;  %6994 = vmatpush3.bf16.msra.mxu1 %v7412_v44 }
  0xb5   : > { %6995 = vmatprep.subr.bf16.mxu1 %v7414_v41 }
  0xb7   : > { %6972 = vmatpush3.bf16.msra.mxu0 %v7411_v3 }
  0xb8   : > { %6973 = vmatprep.subr.bf16.mxu0 %v7413_v50  ;;  %6996 = vmatpush3.bf16.msra.mxu1 %v7414_v41 }
  0xb9   : > { %7021 = vmatprep.subr.bf16.mxu1 %v8259_v4 }
  0xbb   : > { %6974 = vmatpush3.bf16.msra.mxu0 %v7413_v50 }
  0xbc   : > { %6975 = vmatprep.subr.bf16.mxu0 %v7415_v56 }
  0xbf   : > { %6976 = vmatpush3.bf16.msra.mxu0 %v7415_v56 }
  0xc0   : > { %7001 = vmatprep.subr.bf16.mxu0 %v8262_v5 }
 0x13b   : > { %v6935_v52 = vpop.f32.mrf.mxu1 }
 0x13d   : > { %v1095_v7 = vpop.f32.mrf.mxu1 }
 0x13f   : > { %v6936_v1 = vpop.f32.mrf.mxu1 }
 0x141   : > { %v1098_v53 = vpop.f32.mrf.mxu1 }
 0x149   : > { %v6925_v58 = vpop.f32.mrf.mxu0 }
 0x14a   : > { %v1104_v54 = vadd.f32 %v6935_v52, %v6925_v58 }
 0x14b   : > { %v827_v8 = vpop.f32.mrf.mxu0 }
 0x14c   : > { %v1096_v11 = vadd.f32 %v1095_v7, %v827_v8 }
 0x14d   : > { %v6926_v10 = vpop.f32.mrf.mxu0 }
 0x14e   : > { %v1107_v62 = vadd.f32 %v6936_v1, %v6926_v10 }
 0x14f   : > { %v830_v35 = vpop.f32.mrf.mxu0 }
 0x150   : > { %v1099_v26 = vadd.f32 %v1098_v53, %v830_v35 }
 0x153   : > { %v6939_v12 = vpop.f32.mrf.mxu1 }
 0x155   : > { %v1111_v16 = vpop.f32.mrf.mxu1 }
 0x157   : > { %v6940_v28 = vpop.f32.mrf.mxu1 }
 0x158   : > { %v6929_v21 = vpop.f32.mrf.mxu0 }
 0x159   : > { %v1114_v25 = vpop.f32.mrf.mxu1  ;;  %v1120_v29 = vadd.f32 %v6939_v12, %v6929_v21 }
 0x15a   : > { %v843_v31 = vpop.f32.mrf.mxu0 }
 0x15b   : > { %v6955_v61 = vpop.f32.mrf.mxu1  ;;  %v8290_v58 = vadd.f32 %v1111_v16, %v843_v31 }
 0x15c   : > { %v6930_v13 = vpop.f32.mrf.mxu0 }
 0x15d   : > { %v1607_v36 = vpop.f32.mrf.mxu1 }
 0x15e   : > { %v846_v34 = vpop.f32.mrf.mxu0 }
 0x15f   : > { %v8265_v46 = vadd.f32 %v1114_v25, %v846_v34  ;;  %v6956_v18 = vpop.f32.mrf.mxu1 }
 0x160   : > { %v6945_v40 = vpop.f32.mrf.mxu0 }
 0x161   : > { %v1415_v33 = vadd.f32 %v6945_v40, %v1104_v54  ;;  %v1610_v45 = vpop.f32.mrf.mxu1 }
 0x162   : > { %v1383_v43 = vpop.f32.mrf.mxu0 }
 0x163   : > { %v1639_v32 = vadd.f32 %v6955_v61, %v1415_v33  ;;  %v1413_v51 = vadd.f32 %v1383_v43, %v1096_v11 }
 0x164   : > { %v6946_v17 = vpop.f32.mrf.mxu0 }
 0x165   : > { %v1653_v27 = vadd.f32 %v8270_v60, %v1639_v32  ;;  %v1637_v38 = vadd.f32 %v1607_v36, %v1413_v51  ;;  %v1416_v2 = vadd.f32 %v6946_v17, %v1107_v62 }
 0x166   : > { %v1386_v39 = vpop.f32.mrf.mxu0 }
 0x167   : > { %v1660_v55 = vmax.f32 %v1653_v27, 0.0  ;;  %v1651_v0 = vadd.f32 %v8270_v60, %v1637_v38  ;;  %v1640_v9 = vadd.f32 %v6956_v18, %v1416_v2  ;;  %v1414_v63 = vadd.f32 %v1386_v39, %v1099_v26 }
 0x169   : > { %v1770_v20 = vcombine.high %v1660_v55, %v1660_v55  ;;  %v1777_v30 = vrot.slane %v1660_v55, %v7888_v6  ;;  %v1658_v47 = vmax.f32 %v1651_v0, 0.0  ;;  %v1654_v48 = vadd.f32 %v8270_v60, %v1640_v9 }
 0x16a   : > { %v6949_v14 = vpop.f32.mrf.mxu0  ;;  %v6959_v22 = vpop.f32.mrf.mxu1  ;;  %v1638_v37 = vadd.f32 %v1610_v45, %v1414_v63 }
 0x16b   : > { %v1419_v42 = vadd.f32 %v6949_v14, %v1120_v29  ;;  %v1784_v49 = vrot.slane %v1770_v20, %v7888_v6  ;;  %v1785_v57 = vcombine.high %v1777_v30, %v1777_v30  ;;  %v1672_v24 = vcombine.high %v1658_v47, %v1658_v47 }
 0x16c   : > { %v8277_v19 = vpop.f32.mrf.mxu0  ;;  %v1793_v23 = vrot.slane %v1777_v30, %v7888_v6  ;;  %v1679_v59 = vrot.slane %v1658_v47, %v7888_v6  ;;  %v1661_v15 = vmax.f32 %v1654_v48, 0.0  ;;  %v8283_v44 = vpop.f32.mrf.mxu1  ;;  %v1652_v36 = vadd.f32 %v8270_v60, %v1638_v37 }
 0x16d   : > { %v8281_v3 = vadd.f32 %v6959_v22, %v1419_v42  ;;  %v1786_v50 = vcombine.high %v1784_v49, %v1784_v49  ;;  %v8286_v41 = vrot.slane %v1784_v49, %v7888_v6  ;;  %v1807_v56 = vrot.slane %v1785_v57, %v7888_v6 }
 0x16e   : > { %v1686_v52 = vrot.slane %v1672_v24, %v7888_v6  ;;  %v6950_v7 = vpop.f32.mrf.mxu0  ;;  %v1687_v1 = vcombine.high %v1679_v59, %v1679_v59  ;;  %v1695_v8 = vrot.slane %v1679_v59, %v7888_v6  ;;  %v1819_v53 = vcombine.high %v1661_v15, %v1661_v15  ;;  %v6960_v10 = vpop.f32.mrf.mxu1 }
 0x16f   : > { %v1814_v12 = vrot.slane %v1786_v50, %v7888_v6  ;;  %v1816_v35 = vcombine.high %v8286_v41, %v8286_v41  ;;  %v2077_v28 = vcombine.low %v1793_v23, %v1807_v56  ;;  %v1826_v21 = vrot.slane %v1661_v15, %v7888_v6 }
 0x170   : > { %v6530_v25 = vcombine.high %v1793_v23, %v1807_v56  ;;  %v1688_v29 = vcombine.high %v1686_v52, %v1686_v52  ;;  %v1702_v61 = vrot.slane %v1686_v52, %v7888_v6  ;;  %v1709_v16 = vrot.slane %v1687_v1, %v7888_v6 }
 0x171   : > { %v8300_v31 = vrot.slane %v2077_v28, %v7888_v6  ;;  %v2106_v13 = vrot.slane %v8286_v41, %v7888_v6  ;;  %v1818_v34 = vcombine.high %v1814_v12, %v1814_v12  ;;  %v2124_v43 = vcombine.low %v1814_v12, %v1816_v35 }
 0x172   : > { %v1716_v54 = vrot.slane %v1688_v29, %v7888_v6  ;;  %v1718_v40 = vcombine.high %v1702_v61, %v1702_v61  ;;  %v1980_v11 = vcombine.low %v1695_v8, %v1709_v16  ;;  %v6528_v33 = vcombine.high %v1695_v8, %v1709_v16 }
 0x173   : > { %v1833_v18 = vrot.slane %v1819_v53, %v7888_v6  ;;  %v1834_v62 = vcombine.high %v1826_v21, %v1826_v21  ;;  %v1842_v32 = vrot.slane %v1826_v21, %v7888_v6  ;;  %v2099_v51 = vrot.slane %v6530_v25, %v7888_v6 }
 0x174   : > { %v1982_v17 = vcombine.low %v1702_v61, %v1716_v54  ;;  %v1989_v26 = vrot.slane %v1980_v11, %v7888_v6  ;;  %v1996_v27 = vrot.slane %v6528_v33, %v7888_v6  ;;  %v2010_v38 = vrot.slane %v1718_v40, %v7888_v6 }
 0x175   : > { %v1835_v2 = vcombine.high %v1833_v18, %v1833_v18  ;;  %v1849_v45 = vrot.slane %v1833_v18, %v7888_v6  ;;  %v1856_v39 = vrot.slane %v1834_v62, %v7888_v6  ;;  %v1864_v9 = vcombine.high %v1842_v32, %v1842_v32 }
 0x176   : > { %v2003_v55 = vrot.slane %v1982_v17, %v7888_v6  ;;  %v2011_v0 = vcombine.low %v1989_v26, %v1996_v27  ;;  %v2125_v63 = vcombine.low %v1818_v34, %v1842_v32  ;;  %v2133_v47 = vrot.slane %v2124_v43, %v7888_v6  ;;  %v1402_v17 = vpop.f32.mrf.mxu0 }
 0x177   : > { %v1863_v20 = vrot.slane %v1835_v2, %v7888_v6  ;;  %v1866_v30 = vcombine.high %v1856_v39, %v1856_v39  ;;  %v1659_v48 = vmax.f32 %v1652_v36, 0.0  ;;  %v2126_v42 = vcombine.low %v1856_v39, %v1864_v9 }
 0x178   : > { %v2012_v14 = vcombine.low %v2003_v55, %v2010_v38  ;;  %v2019_v22 = vrot.slane %v2011_v0, %v7888_v6  ;;  %v2140_v49 = vrot.slane %v2125_v63, %v7888_v6  ;;  %v1720_v23 = vcombine.high %v1716_v54, %v1716_v54 }
 0x179   : > { %v2154_v57 = vrot.slane %v1866_v30, %v7888_v6  ;;  %v2172_v24 = vcombine.low %v1849_v45, %v1863_v20  ;;  %v6531_v37 = vcombine.high %v1849_v45, %v1863_v20  ;;  %v2147_v15 = vrot.slane %v2126_v42, %v7888_v6 }
 0x17a   : > { %v2026_v59 = vrot.slane %v2012_v14, %v7888_v6  ;;  %v2155_v50 = vcombine.low %v2133_v47, %v2140_v49  ;;  %v1721_v41 = vcombine.high %v1659_v48, %v1659_v48  ;;  %v1728_v7 = vrot.slane %v1659_v48, %v7888_v6  ;;  %v1626_v14 = vpop.f32.mrf.mxu1 }
 0x17b   : > { %v2181_v56 = vrot.slane %v2172_v24, %v7888_v6  ;;  %v2188_v52 = vrot.slane %v6531_v37, %v7888_v6  ;;  %v1657_v1 = vadd.f32 %v8270_v60, %v8281_v3  ;;  %v2156_v53 = vcombine.low %v2147_v15, %v2154_v57 }
 0x17c   : > { %v2027_v8 = vcombine.low %v2019_v22, %v2026_v59  ;;  %v2163_v10 = vrot.slane %v2155_v50, %v7888_v6  ;;  %v1735_v12 = vrot.slane %v1721_v41, %v7888_v6  ;;  %v2108_v35 = vcombine.low %v2099_v51, %v2106_v13 }
 0x17d   : > { %v1736_v28 = vcombine.high %v1728_v7, %v1728_v7  ;;  %v1744_v21 = vrot.slane %v1728_v7, %v7888_v6  ;;  %v1664_v25 = vmax.f32 %v1657_v1, 0.0  ;;  %v2170_v61 = vrot.slane %v2156_v53, %v7888_v6 }
 0x17e   : > { %v2323_v29 = vpack.c.bf16 %v2027_v8, %v2027_v8  ;;  %v2203_v16 = vcombine.low %v2181_v56, %v2188_v52  ;;  %v1737_v34 = vcombine.high %v1735_v12, %v1735_v12  ;;  %v1751_v36 = vrot.slane %v1735_v12, %v7888_v6 }
 0x17f   : > { %v1758_v3 = vrot.slane %v1736_v28, %v7888_v6  ;;  %v1766_v54 = vcombine.high %v1744_v21, %v1744_v21  ;;  %v2028_v40 = vcombine.low %v1720_v23, %v1744_v21  ;;  %v2171_v33 = vcombine.low %v2163_v10, %v2170_v61 }
 0x180   : > { %v2341_v11 = vrot.slane %v2323_v29, %v7888_v6  ;;  %v1765_v13 = vrot.slane %v1737_v34, %v7888_v6  ;;  %v1972_v43 = vrot.slane %v1664_v25, %v7888_v6  ;;  %v1417_v51 = vadd.f32 %v8277_v19, %v8290_v58 }
 0x181   : > { %v1768_v18 = vcombine.high %v1758_v3, %v1758_v3  ;;  %v2029_v62 = vcombine.low %v1758_v3, %v1766_v54  ;;  %v2037_v32 = vrot.slane %v2028_v40, %v7888_v6  ;;  %v2122_v26 = vrot.slane %v2108_v35, %v7888_v6 }
 0x182   : > { %v2342_v27 = vcombine.high %v2341_v11, %v2341_v11  ;;  %v2326_v38 = vpack.c.bf16 %v2171_v33, %v2171_v33  ;;  %v6529_v2 = vcombine.high %v1751_v36, %v1765_v13  ;;  %v1979_v55 = vrot.slane %v1972_v43, %v7888_v6 }
 0x183   : > { %v2030_v45 = vcombine.low %v1768_v18, %v1751_v36  ;;  %v2044_v39 = vrot.slane %v2029_v62, %v7888_v6  ;;  %v1641_v0 = vadd.f32 %v8283_v44, %v1417_v51  ;;  %v8344_v9 = vrot.slane %v2203_v16, %v7888_v6 }
 0x184   : > { %v8347_v63 = vrot.slane %v2326_v38, %v7888_v6  ;;  %v2085_v19 = vrot.slane %v6529_v2, %v7888_v6  ;;  %v1418_v58 = vadd.f32 %v1402_v17, %v8265_v46  ;;  %v2058_v30 = vrot.slane %v1765_v13, %v7888_v6 }
 0x185   : > { %v2051_v20 = vrot.slane %v2030_v45, %v7888_v6  ;;  %v2059_v47 = vcombine.low %v2037_v32, %v2044_v39  ;;  %v1655_v48 = vadd.f32 %v8270_v60, %v1641_v0  ;;  %v8355_v44 = vrot.slane %v2342_v27, %v7888_v6 }
 0x186   : > { %v2107_v22 = vcombine.low %v2085_v19, %v8300_v31  ;;  %v8359_v42 = vrot.slane %v1979_v55, %v7888_v6  ;;  %v1642_v49 = vadd.f32 %v1626_v14, %v1418_v58  ;;  %v2411_v46 = vcombine.high %v8347_v63, %v8347_v63 }
 0x187   : > { %v2060_v57 = vcombine.low %v2051_v20, %v2058_v30  ;;  %v1662_v24 = vmax.f32 %v1655_v48, 0.0  ;;  %v8364_v37 = vrot.slane %v2341_v11, %v7888_v6  ;;  %v8368_v23 = vrot.slane %v8347_v63, %v7888_v6 }
 0x188   : > { %v2067_v59 = vrot.slane %v2059_v47, %v7888_v6  ;;  %v2115_v31 = vrot.slane %v2107_v22, %v7888_v6  ;;  %v1656_v15 = vadd.f32 %v8270_v60, %v1642_v49  ;;  %v2453_v53 = vunpack.i.h.s16 %v8355_v44 }
 0x189   : > { %v2074_v50 = vrot.slane %v2060_v57, %v7888_v6  ;;  %v1868_v41 = vcombine.high %v1662_v24, %v1662_v24  ;;  %v1875_v56 = vrot.slane %v1662_v24, %v7888_v6  ;;  %v8377_v52 = vcombine.high %v8364_v37, %v8364_v37 }
 0x18a   : > { %v2123_v7 = vcombine.low %v2115_v31, %v2122_v26  ;;  %v1663_v1 = vmax.f32 %v1656_v15, 0.0  ;;  %v2451_v8 = vunpack.i.h.s16 %v8364_v37  ;;  %v2466_v29 = vunpack.i.h.s16 %v8368_v23 }
 0x18b   : > { %v2075_v10 = vcombine.low %v2067_v59, %v2074_v50  ;;  %v1882_v12 = vrot.slane %v1868_v41, %v7888_v6  ;;  %v1883_v35 = vcombine.high %v1875_v56, %v1875_v56  ;;  %v1891_v60 = vrot.slane %v1875_v56, %v7888_v6 }
 0x18c   : > { %v2325_v28 = vpack.c.bf16 %v2123_v7, %v2123_v7  ;;  %v1917_v21 = vcombine.high %v1663_v1, %v1663_v1  ;;  %v1924_v25 = vrot.slane %v1663_v1, %v7888_v6 }
 0x18d   : > { %v2324_v61 = vpack.c.bf16 %v2075_v10, %v2075_v10  ;;  %v1884_v16 = vcombine.high %v1882_v12, %v1882_v12  ;;  %v1898_v34 = vrot.slane %v1882_v12, %v7888_v6  ;;  %v1905_v36 = vrot.slane %v1883_v35, %v7888_v6 }
 0x18e   : > { %v2387_v3 = vrot.slane %v2325_v28, %v7888_v6  ;;  %v1913_v54 = vcombine.high %v1891_v60, %v1891_v60  ;;  %v1931_v40 = vrot.slane %v1917_v21, %v7888_v6  ;;  %v1932_v11 = vcombine.high %v1924_v25, %v1924_v25 }
 0x18f   : > { %v2364_v33 = vrot.slane %v2324_v61, %v7888_v6  ;;  %v1912_v13 = vrot.slane %v1884_v16, %v7888_v6  ;;  %v1914_v43 = vcombine.high %v1898_v34, %v1898_v34  ;;  %v1915_v18 = vcombine.high %v1905_v36, %v1905_v36 }
 0x190   : > { %v2388_v62 = vcombine.high %v2387_v3, %v2387_v3  ;;  %v8392_v32 = vrot.slane %v2387_v3, %v7888_v6  ;;  %v2174_v51 = vcombine.low %v1891_v60, %v1905_v36  ;;  %v2202_v17 = vrot.slane %v1913_v54, %v7888_v6 }
 0x191   : > { %v2365_v26 = vcombine.high %v2364_v33, %v2364_v33  ;;  %v8396_v27 = vrot.slane %v2364_v33, %v7888_v6  ;;  %v2220_v38 = vcombine.low %v1915_v18, %v1898_v34  ;;  %v2221_v2 = vcombine.low %v1912_v13, %v1914_v43 }
 0x192   : > { %v8399_v45 = vrot.slane %v2388_v62, %v7888_v6  ;;  %v2195_v39 = vrot.slane %v2174_v51, %v7888_v6  ;;  %v1916_v55 = vcombine.high %v1912_v13, %v1912_v13  ;;  %v1933_v0 = vcombine.high %v1931_v40, %v1931_v40 }
 0x193   : > { %v8403_v19 = vrot.slane %v2365_v26, %v7888_v6  ;;  %v2229_v58 = vrot.slane %v2220_v38, %v7888_v6  ;;  %v2236_v20 = vrot.slane %v2221_v2, %v7888_v6  ;;  %v1940_v30 = vrot.slane %v1924_v25, %v7888_v6 }
 0x194   : > { %v2204_v47 = vcombine.low %v2195_v39, %v2202_v17  ;;  %v1947_v48 = vrot.slane %v1931_v40, %v7888_v6  ;;  %v1954_v14 = vrot.slane %v1932_v11, %v7888_v6  ;;  %v1961_v22 = vrot.slane %v1933_v0, %v7888_v6 }
 0x195   : > { %v2251_v49 = vcombine.low %v2229_v58, %v2236_v20  ;;  %v2222_v57 = vcombine.low %v1916_v55, %v1940_v30  ;;  %v8413_v24 = vcombine.high %v8396_v27, %v8396_v27  ;;  %v8417_v59 = vcombine.high %v8392_v32, %v8392_v32 }
 0x196   : > { %v2218_v31 = vrot.slane %v2204_v47, %v7888_v6  ;;  %v2250_v15 = vrot.slane %v1954_v14, %v7888_v6  ;;  %v6532_v50 = vcombine.high %v1940_v30, %v1954_v14  ;;  %v2269_v41 = vcombine.low %v1947_v48, %v1961_v22 }
 0x197   : > { %v2259_v56 = vrot.slane %v2251_v49, %v7888_v6  ;;  %v2243_v7 = vrot.slane %v2222_v57, %v7888_v6  ;;  %v6533_v1 = vcombine.high %v1947_v48, %v1961_v22  ;;  %v2456_v10 = vunpack.i.h.s16 %v8396_v27 }
 0x198   : > { %v2219_v12 = vcombine.low %v8344_v9, %v2218_v31  ;;  %v2277_v35 = vrot.slane %v6532_v50, %v7888_v6  ;;  %v2284_v60 = vrot.slane %v2269_v41, %v7888_v6  ;;  %v2461_v28 = vunpack.i.h.s16 %v8392_v32 }
 0x199   : > { %v2252_v21 = vcombine.low %v2243_v7, %v2250_v15  ;;  %v2291_v25 = vrot.slane %v6533_v1, %v7888_v6  ;;  %v2463_v61 = vunpack.i.h.s16 %v8399_v45  ;;  %v2491_v16 = vunpack.i.h.s16 %v8377_v52 }
 0x19a   : > { %v2327_v34 = vpack.c.bf16 %v2219_v12, %v2219_v12  ;;  %v2299_v36 = vcombine.low %v2277_v35, %v2284_v60  ;;  %v2493_v3 = vunpack.i.h.s16 %v8417_v59  ;;  %v6534_v9 = vpack.i.b16 %v8355_v44, %v2451_v8 }
 0x19b   : > { %v2266_v54 = vrot.slane %v2252_v21, %v7888_v6  ;;  %v2300_v40 = vcombine.low %v2291_v25, %v8359_v42  ;;  %v6535_v11 = vpack.i.b16 %v8377_v52, %v2453_v53  ;;  %v2515_v33 = vpack.i.b16 %v2456_v10, %v2491_v16 }
 0x19c   : > { %v2433_v13 = vrot.slane %v2327_v34, %v7888_v6  ;;  %v2307_v43 = vrot.slane %v2299_v36, %v7888_v6  ;;  %v8445_v18 = vpack.i.b16 %v8399_v45, %v2461_v28  ;;  %v8448_v8 = vpack.i.b16 %v8417_v59, %v2463_v61 }
 0x19d   : > { %v2267_v62 = vcombine.low %v2259_v56, %v2266_v54  ;;  %v2314_v42 = vrot.slane %v2300_v40, %v7888_v6  ;;  %v8455_v53 = vpack.i.b16 %v2466_v29, %v2493_v3  ;;  %v2526_v51 = vcombine.low %v6534_v9, %v6535_v11 }
 0x19e   : > { %v2527_v17 = vcombine.low %v2515_v33, %v8403_v19  ;;  %v2528_v26 = vcombine.low %v8413_v24, %v8445_v18  ;;  %v8468_v55 = vrot.slane %v2411_v46, %v7888_v6  ;;  %v2434_v0 = vcombine.high %v2433_v13, %v2433_v13 }
 0x19f   : > { %v8460_v38 = vcombine.low %v2307_v43, %v2314_v42  ;;  %v2328_v2 = vpack.c.bf16 %v2267_v62, %v2267_v62  ;;  %v2529_v39 = vcombine.low %v8448_v8, %v8455_v53  ;;  %v2536_v58 = vrot.slane %v2526_v51, %v7888_v6 }
 0x1a0   : > { %v2543_v20 = vrot.slane %v2527_v17, %v7888_v6  ;;  %v2550_v47 = vrot.slane %v2528_v26, %v7888_v6  ;;  %v2458_v14 = vunpack.i.h.s16 %v8403_v19  ;;  %v6548_v63 = vpack.i.b16 %v8396_v27, %v8377_v52 }
 0x1a1   : > { %v8473_v30 = vrot.slane %v2328_v2, %v7888_v6  ;;  %v2557_v48 = vrot.slane %v2529_v39, %v7888_v6  ;;  %v8481_v46 = vpack.i.b16 %v8403_v19, %v2456_v10  ;;  %v8485_v49 = vpack.i.b16 %v8368_v23, %v8417_v59 }
 0x1a2   : > { %v2558_v22 = vcombine.low %v2536_v58, %v2543_v20  ;;  %v8488_v57 = vrot.slane %v2433_v13, %v7888_v6  ;;  %v8493_v50 = vpack.i.b16 %v8413_v24, %v2458_v14  ;;  %v8496_v41 = vrot.slane %v2434_v0, %v7888_v6 }
 0x1a3   : > { %v3147_v31 = vcombine.high %v8473_v30, %v8473_v30  ;;  %v2559_v15 = vcombine.low %v2550_v47, %v2557_v48  ;;  %v2726_v56 = vcombine.low %v8364_v37, %v8355_v44  ;;  %v2727_v7 = vcombine.low %v6548_v63, %v8481_v46 }
 0x1a4   : > { %v2729_v1 = vcombine.low %v8399_v45, %v8485_v49  ;;  %v8505_v10 = vcombine.high %v8368_v23, %v8368_v23  ;;  %v2566_v12 = vrot.slane %v2558_v22, %v7888_v6  ;;  %v8512_v60 = vpack.i.b16 %v8468_v55, %v2466_v29 }
 0x1a5   : > { %v2573_v35 = vrot.slane %v2559_v15, %v7888_v6  ;;  %v8515_v37 = vrot.slane %v3147_v31, %v7888_v6  ;;  %v2728_v21 = vcombine.low %v8493_v50, %v8392_v32  ;;  %v2736_v25 = vrot.slane %v2726_v56, %v7888_v6 }
 0x1a6   : > { %v2743_v61 = vrot.slane %v2727_v7, %v7888_v6  ;;  %v2757_v34 = vrot.slane %v2729_v1, %v7888_v6  ;;  %v8524_v36 = vcombine.high %v8488_v57, %v8488_v57  ;;  %v2468_v29 = vunpack.i.h.s16 %v8468_v55 }
 0x1a7   : > { %v2574_v16 = vcombine.low %v2566_v12, %v2573_v35  ;;  %v2750_v9 = vrot.slane %v2728_v21, %v7888_v6  ;;  %v2776_v40 = vcombine.low %v8488_v57, %v8496_v41  ;;  %v2471_v11 = vunpack.i.h.s16 %v8488_v57 }
 0x1a8   : > { %v2758_v54 = vcombine.low %v2736_v25, %v2743_v61  ;;  %v2474_v33 = vunpack.i.l.s16 %v8524_v36  ;;  %v8533_v13 = vpack.i.b16 %v8505_v10, %v2468_v29  ;;  %v2473_v43 = vunpack.i.h.s16 %v8496_v41 }
 0x1a9   : > { %6977 = vmatprep.mubr.bf16.mxu0 %v2574_v16  ;;  %v8537_v62 = vunpack.i.h.s16 %v8524_v36  ;;  %v2759_v42 = vcombine.low %v2750_v9, %v2757_v34  ;;  %v2790_v17 = vrot.slane %v2776_v40, %v7888_v6  ;;  %v8544_v26 = vpack.i.b16 %v8496_v41, %v2471_v11 }
 0x1aa   : > { %v2766_v51 = vrot.slane %v2758_v54, %v7888_v6  ;;  %v2775_v2 = vcombine.low %v8512_v60, %v8533_v13  ;;  %v2797_v39 = vrot.slane %v2474_v33, %v7888_v6  ;;  %v8550_v0 = vpack.i.b16 %v8524_v36, %v2473_v43 }
 0x1ab   : > { %v2575_v58 = vcombine.low %v8468_v55, %v8505_v10  ;;  %v2773_v20 = vrot.slane %v2759_v42, %v7888_v6  ;;  %v2597_v47 = vrot.slane %v8537_v62, %v7888_v6  ;;  %v6574_v48 = vpack.i.b16 %v8392_v32, %v8413_v24 }
 0x1ac   : > { %v6575_v14 = vpack.i.b16 %v8488_v57, %v8505_v10  ;;  %v2783_v22 = vrot.slane %v2775_v2, %v7888_v6  ;;  %v2812_v63 = vrot.slane %v2797_v39, %v7888_v6  ;;  %v2576_v31 = vcombine.low %v8544_v26, %v8550_v0 }
 0x1ad   : > { %v2583_v15 = vrot.slane %v2575_v58, %v7888_v6  ;;  %v2774_v56 = vcombine.low %v2766_v51, %v2773_v20  ;;  %v2612_v7 = vrot.slane %v2597_v47, %v7888_v6  ;;  %v3192_v1 = vcombine.low %v8396_v27, %v8403_v19  ;;  %v7418_v20 = vld [vmem:[#allocation6 + $0xf0] sm:$0xff]  }
 0x1ae   : > { %v3193_v12 = vcombine.low %v6574_v48, %v8445_v18  ;;  %v2798_v35 = vcombine.low %v2783_v22, %v2790_v17  ;;  %v8571_v21 = vrot.slane %v2576_v31, %v7888_v6  ;;  %v3194_v25 = vcombine.low %v8448_v8, %v8368_v23 }
 0x1af   : > { %v3195_v61 = vcombine.low %v8468_v55, %v6575_v14  ;;  %6997 = vmatprep.mubr.bf16.mxu1 %v2774_v56  ;;  %v3202_v16 = vrot.slane %v3192_v1, %v7888_v6  ;;  %v2492_v29 = vunpack.i.h.s16 %v8413_v24  ;;  %v2913_v27 = vcombine.high %v8355_v44, %v8355_v44  ;;  %v7419_v56 = vld [vmem:[#allocation6 + $0xb0] sm:$0xff]  }
 0x1b0   : > { %v3209_v34 = vrot.slane %v3193_v12, %v7888_v6  ;;  %v2805_v9 = vrot.slane %v2798_v35, %v7888_v6  ;;  %v2598_v54 = vcombine.low %v2583_v15, %v8571_v21  ;;  %v3216_v40 = vrot.slane %v3194_v25, %v7888_v6 }
 0x1b1   : > { %v3223_v23 = vrot.slane %v3195_v61, %v7888_v6  ;;  %v8587_v43 = vcombine.high %v8403_v19, %v8403_v19  ;;  %v2915_v42 = vcombine.high %v8399_v45, %v8399_v45  ;;  %v6562_v51 = vpack.i.b16 %v8403_v19, %v2913_v27  ;;  %v7420_v61 = vld [vmem:[#allocation6 + $0xe8] sm:$0xff]  }
 0x1b2   : > { %v3224_v33 = vcombine.low %v3202_v16, %v3209_v34  ;;  %v2813_v17 = vcombine.low %v2805_v9, %v2812_v63  ;;  %v2605_v2 = vrot.slane %v2598_v54, %v7888_v6  ;;  %v2948_v58 = vcombine.low %v8355_v44, %v8377_v52 }
 0x1b3   : > { %v3225_v39 = vcombine.low %v3216_v40, %v3223_v23  ;;  %v6563_v48 = vpack.i.b16 %v8587_v43, %v2492_v29  ;;  %v8600_v14 = vpack.i.b16 %v8468_v55, %v2915_v42  ;;  %v2949_v22 = vcombine.low %v6562_v51, %v8493_v50 }
 0x1b4   : > { %v3232_v47 = vrot.slane %v3224_v33, %v7888_v6  ;;  %6998 = vmatmul.mubr.bf16.vlgmr.msra.gmra.mxu1 %v2813_v17  ;;  %v2613_v63 = vcombine.low %v2605_v2, %v2612_v7  ;;  %v2958_v15 = vrot.slane %v2948_v58, %v7888_v6  ;;  %v8607_v44 = vrot.slane %v8473_v30, %v7888_v6  ;;  %v7422_v17 = vld [vmem:[#allocation6 + $0xe0] sm:$0xff]  }
 0x1b5   : > { %v3239_v31 = vrot.slane %v3225_v39, %v7888_v6  ;;  %7022 = vmatpush3.bf16.msra.mxu1 %v8259_v4  ;;  %v2950_v52 = vcombine.low %v6563_v48, %v8399_v45  ;;  %v2951_v1 = vcombine.low %v8417_v59, %v8600_v14  ;;  %v2965_v12 = vrot.slane %v2949_v22, %v7888_v6 }
 0x1b6   : > { %v2494_v7 = vunpack.i.h.s16 %v8505_v10  ;;  %v2329_v35 = vpack.c.bf16 %v8460_v38, %v8460_v38  ;;  %6978 = vmatmul.mubr.bf16.vlgmr.msra.gmra.mxu0 %v2613_v63  ;;  %7023 = vmatprep.subr.bf16.mxu1 %v7418_v20  ;;  %v3241_v30 = vcombine.low %v8607_v44, %v8515_v37  ;;  %v2916_v27 = vcombine.high %v8468_v55, %v8468_v55  ;;  %v7421_v38 = vld [vmem:[#allocation6 + $0xa8] sm:$0xff]   ;;  %v7423_v63 = vld [vmem:[#allocation6 + $0xa0] sm:$0xff]  }
 0x1b7   : > { %v3240_v25 = vcombine.low %v3232_v47, %v3239_v31  ;;  %7002 = vmatpush3.bf16.msra.mxu0 %v8262_v5  ;;  %v2972_v4 = vrot.slane %v2950_v52, %v7888_v6  ;;  %v2979_v16 = vrot.slane %v2951_v1, %v7888_v6  ;;  %v2980_v34 = vcombine.low %v2958_v15, %v2965_v12 }
 0x1b8   : > { %7003 = vmatprep.subr.bf16.mxu0 %v7419_v56  ;;  %v8626_v9 = vcombine.high %v8607_v44, %v8607_v44  ;;  %v8630_v54 = vcombine.high %v8496_v41, %v8496_v41  ;;  %v2998_v5 = vcombine.low %v8496_v41, %v8524_v36  ;;  %v8635_v33 = vpack.i.b16 %v2916_v27, %v2494_v7 }
 0x1b9   : > { %7037 = vmatprep.mubr.bf16.mxu1 %v3240_v25  ;;  %v2981_v40 = vcombine.low %v2972_v4, %v2979_v16  ;;  %v2988_v23 = vrot.slane %v2980_v34, %v7888_v6  ;;  %7024 = vmatpush3.bf16.msra.mxu1 %v7418_v20  ;;  %v6594_v51 = vpack.i.b16 %v8399_v45, %v8587_v43  ;;  %v7425_v4 = vld [vmem:[#allocation6 + $0x98] sm:$0xff]  }
 0x1ba   : > { %7025 = vmatprep.subr.bf16.mxu1 %v7420_v61  ;;  %v3248_v2 = vrot.slane %v3241_v30, %v7888_v6  ;;  %v2922_v39 = vunpack.i.l.s16 %v8630_v54  ;;  %v8642_v58 = vrot.slane %v2998_v5, %v7888_v6  ;;  %v2997_v20 = vcombine.low %v8533_v13, %v8635_v33 }
 0x1bb   : > { %v2995_v47 = vrot.slane %v2981_v40, %v7888_v6  ;;  %7004 = vmatpush3.bf16.msra.mxu0 %v7419_v56  ;;  %v6595_v48 = vpack.i.b16 %v2915_v42, %v2493_v3  ;;  %v6596_v43 = vpack.i.b16 %v8496_v41, %v2916_v27  ;;  %v3804_v22 = vrot.slane %v2329_v35, %v7888_v6  ;;  %v7424_v3 = vld [vmem:[#allocation6 + $0xd8] sm:$0xff]  }
 0x1bc   : > { %7005 = vmatprep.subr.bf16.mxu0 %v7421_v38  ;;  %v3167_v31 = vunpack.i.l.s16 %v8626_v9  ;;  %v3606_v15 = vcombine.low %v8403_v19, %v8413_v24  ;;  %v3005_v56 = vrot.slane %v2997_v20, %v7888_v6  ;;  %v3607_v1 = vcombine.low %v6594_v51, %v8448_v8  ;;  %v7426_v24 = vld [vmem:[#allocation6 + $0xd0] sm:$0xff]  }
 0x1bd   : > { %v2996_v52 = vcombine.low %v2988_v23, %v2995_v47  ;;  %7026 = vmatpush3.bf16.msra.mxu1 %v7420_v61  ;;  %v3608_v12 = vcombine.low %v6595_v48, %v8468_v55  ;;  %v3256_v42 = vcombine.low %v8571_v21, %v3248_v2  ;;  %v3019_v35 = vrot.slane %v2922_v39, %v7888_v6  ;;  %v7427_v2 = vld [vmem:[#allocation6 + $0x90] sm:$0xff]  }
 0x1be   : > { %7027 = vmatprep.subr.bf16.mxu1 %v7422_v17  ;;  %v3609_v25 = vcombine.low %v8505_v10, %v6596_v43  ;;  %v3020_v19 = vcombine.low %v3005_v56, %v8642_v58  ;;  %v3623_v61 = vrot.slane %v3607_v1, %v7888_v6  ;;  %v3393_v21 = vpack.i.b16 %v2461_v28, %v2492_v29 }
 0x1bf   : > { %7017 = vmatprep.mubr.bf16.mxu0 %v2996_v52  ;;  %7006 = vmatpush3.bf16.msra.mxu0 %v7421_v38  ;;  %v3630_v30 = vrot.slane %v3608_v12, %v7888_v6  ;;  %v3394_v34 = vpack.i.b16 %v2471_v11, %v2494_v7  ;;  %v3398_v27 = vcombine.low %v8481_v46, %v8493_v50 }
 0x1c0   : > { %7007 = vmatprep.subr.bf16.mxu0 %v7423_v63  ;;  %v3637_v16 = vrot.slane %v3609_v25, %v7888_v6  ;;  %v3805_v38 = vcombine.high %v3804_v22, %v3804_v22  ;;  %v3255_v5 = vrot.slane %v3167_v31, %v7888_v6  ;;  %v3616_v40 = vrot.slane %v3606_v15, %v7888_v6  ;;  %v7428_v15 = vld [vmem:[#allocation6 + $0xc8] sm:$0xff]  }
 0x1c1   : > { %7028 = vmatpush3.bf16.msra.mxu1 %v7422_v17  ;;  %v3400_v23 = vcombine.low %v8417_v59, %v8512_v60  ;;  %v3263_v51 = vrot.slane %v3256_v42, %v7888_v6  ;;  %v3399_v28 = vcombine.low %v3393_v21, %v8399_v45  ;;  %v3401_v11 = vcombine.low %v8533_v13, %v3394_v34  ;;  %v7430_v34 = vld [vmem:[#allocation6 + $0xc0] sm:$0xff]  }
 0x1c2   : > { %7029 = vmatprep.subr.bf16.mxu1 %v7424_v3  ;;  %v3408_v29 = vrot.slane %v3398_v27, %v7888_v6  ;;  %v3027_v46 = vrot.slane %v3020_v19, %v7888_v6  ;;  %v3034_v50 = vrot.slane %v3019_v35, %v7888_v6  ;;  %v3638_v7 = vcombine.low %v3616_v40, %v3623_v61 }
 0x1c3   : > { %7008 = vmatpush3.bf16.msra.mxu0 %v7423_v63  ;;  %v3166_v17 = vunpack.i.h.s16 %v8515_v37  ;;  %v3639_v39 = vcombine.low %v3630_v30, %v3637_v16  ;;  %v3415_v47 = vrot.slane %v3399_v28, %v7888_v6  ;;  %v3422_v20 = vrot.slane %v3400_v23, %v7888_v6 }
 0x1c4   : > { %7009 = vmatprep.subr.bf16.mxu0 %v7425_v4  ;;  %v3429_v48 = vrot.slane %v3401_v11, %v7888_v6  ;;  %v3270_v43 = vrot.slane %v3255_v5, %v7888_v6  ;;  %v3164_v63 = vunpack.i.h.s16 %v8607_v44  ;;  %v8689_v31 = vrot.slane %v3804_v22, %v7888_v6  ;;  %v7429_v22 = vld [vmem:[#allocation6 + $0x88] sm:$0xff]  }
 0x1c5   : > { %7030 = vmatpush3.bf16.msra.mxu1 %v7424_v3  ;;  %v3430_v52 = vcombine.low %v3408_v29, %v3415_v47  ;;  %v8692_v1 = vrot.slane %v3805_v38, %v7888_v6  ;;  %v8698_v3 = vcombine.high %v8515_v37, %v8515_v37  ;;  %v8701_v42 = vpack.i.b16 %v8626_v9, %v3166_v17 }
 0x1c6   : > { %7031 = vmatprep.subr.bf16.mxu1 %v7426_v24  ;;  %v3431_v56 = vcombine.low %v3422_v20, %v3429_v48  ;;  %v8694_v12 = vcombine.low %v3263_v51, %v3270_v43  ;;  %v8703_v35 = vcombine.low %v3027_v46, %v3034_v50  ;;  %v3646_v25 = vrot.slane %v3638_v7, %v7888_v6  ;;  %v7431_v51 = vld [vmem:[#allocation6 + $0x80] sm:$0xff]   ;;  %v7432_v46 = vld [vmem:[#allocation6 + $0x178] sm:$0xff]  }
 0x1c7   : > { %7010 = vmatpush3.bf16.msra.mxu0 %v7425_v4  ;;  %v3653_v19 = vrot.slane %v3639_v39, %v7888_v6  ;;  %v3656_v61 = vcombine.low %v8515_v37, %v8626_v9  ;;  %v3375_v30 = vunpack.i.h.s16 %v8626_v9  ;;  %v6584_v4 = vpack.i.b16 %v8515_v37, %v3164_v63  ;;  %v7433_v39 = vld [vmem:[#allocation6 + $0x138] sm:$0xff]   ;;  %v7452_v9 = vld [vmem:[#allocation6 + $0x1e8] sm:$0xff]  }
 0x1c8   : > { %7011 = vmatprep.subr.bf16.mxu0 %v7427_v2  ;;  %v4048_v16 = vpack.i.b16 %v3164_v63, %v8537_v62  ;;  %v4052_v21 = vcombine.low %v8445_v18, %v8448_v8  ;;  %v8715_v27 = vrot.slane %v3430_v52, %v7888_v6  ;;  %v8718_v38 = vrot.slane %v3431_v56, %v7888_v6 }
 0x1c9   : > { %7032 = vmatpush3.bf16.msra.mxu1 %v7426_v24  ;;  %v4053_v5 = vcombine.low %v8455_v53, %v8468_v55  ;;  %v4054_v40 = vcombine.low %v8505_v10, %v8544_v26  ;;  %v3447_v23 = vcombine.low %v6584_v4, %v8701_v42  ;;  %v6606_v8 = vpack.i.b16 %v8607_v44, %v8524_v36 }
 0x1ca   : > { %7033 = vmatprep.subr.bf16.mxu1 %v7428_v15  ;;  %v4055_v24 = vcombine.low %v8550_v0, %v4048_v16  ;;  %v4062_v18 = vrot.slane %v4052_v21, %v7888_v6  ;;  %v3654_v28 = vcombine.low %v3646_v25, %v3653_v19  ;;  %v8730_v11 = vrot.slane %v3656_v61, %v7888_v6 }
 0x1cb   : > { %7012 = vmatpush3.bf16.msra.mxu0 %v7427_v2  ;;  %v4069_v53 = vrot.slane %v4053_v5, %v7888_v6  ;;  %v3847_v55 = vcombine.low %v8392_v32, %v8399_v45  ;;  %v4076_v10 = vrot.slane %v4054_v40, %v7888_v6  ;;  %v3848_v29 = vcombine.low %v8485_v49, %v8512_v60 }
 0x1cc   : > { %7013 = vmatprep.subr.bf16.mxu0 %v7429_v22  ;;  %v4083_v26 = vrot.slane %v4055_v24, %v7888_v6  ;;  %v3849_v44 = vcombine.low %v8533_v13, %v8488_v57  ;;  %v3446_v50 = vcombine.low %v8715_v27, %v8718_v38  ;;  %v8746_v32 = vpack.i.b16 %v8698_v3, %v3375_v30  ;;  %v7435_v38 = vld [vmem:[#allocation6 + $0x130] sm:$0xff]  }
 0x1cd   : > { %7034 = vmatpush3.bf16.msra.mxu1 %v7428_v15  ;;  %v4084_v7 = vcombine.low %v4062_v18, %v4069_v53  ;;  %v3850_v17 = vcombine.low %v8496_v41, %v6606_v8  ;;  %v8750_v2 = vrot.slane %v3447_v23, %v7888_v6  ;;  %v3857_v57 = vrot.slane %v3847_v55, %v7888_v6 }
 0x1ce   : > { %7035 = vmatprep.subr.bf16.mxu1 %v7430_v34  ;;  %v4085_v49 = vcombine.low %v4076_v10, %v4083_v26  ;;  %v3864_v60 = vrot.slane %v3848_v29, %v7888_v6  ;;  %v3871_v47 = vrot.slane %v3849_v44, %v7888_v6  ;;  %v8758_v48 = vcombine.high %v8689_v31, %v8689_v31 }
 0x1cf   : > { %7014 = vmatpush3.bf16.msra.mxu0 %v7429_v22  ;;  %v3878_v20 = vrot.slane %v3850_v17, %v7888_v6  ;;  %v3822_v43 = vunpack.i.h.s16 %v8689_v31  ;;  %v8762_v63 = vrot.slane %v4084_v7, %v7888_v6  ;;  %v3824_v56 = vunpack.i.h.s16 %v8692_v1  ;;  %v7434_v22 = vld [vmem:[#allocation6 + $0x170] sm:$0xff]  }
 0x1d0   : > { %7015 = vmatprep.subr.bf16.mxu0 %v7431_v51  ;;  %v8765_v15 = vrot.slane %v4085_v49, %v7888_v6  ;;  %v3879_v52 = vcombine.low %v3857_v57, %v3864_v60  ;;  %v4030_v19 = vunpack.i.h.s16 %v8758_v48  ;;  %v3825_v4 = vunpack.i.l.s16 %v8758_v48 }
 0x1d1   : > { %7036 = vmatpush3.bf16.msra.mxu1 %v7430_v34  ;;  %v3880_v25 = vcombine.low %v3871_v47, %v3878_v20  ;;  %v6615_v61 = vpack.i.b16 %v8692_v1, %v3822_v43  ;;  %v6616_v34 = vpack.i.b16 %v8758_v48, %v3824_v56  ;;  %v3896_v27 = vcombine.low %v8689_v31, %v8692_v1  ;;  %v7436_v31 = vld [vmem:[#allocation6 + $0x168] sm:$0xff]   ;;  %v7440_v43 = vld [vmem:[#allocation6 + $0x158] sm:$0xff]  }
 0x1d2   : > { %7061 = vmatprep.subr.bf16.mxu1 %v7432_v46  ;;  %v4100_v16 = vcombine.low %v8762_v63, %v8765_v15  ;;  %v3887_v21 = vrot.slane %v3879_v52, %v7888_v6  ;;  %v4115_v40 = vrot.slane %v4030_v19, %v7888_v6  ;;  %v3910_v23 = vrot.slane %v3825_v4, %v7888_v6  ;;  %v7442_v4 = vld [vmem:[#allocation6 + $0x150] sm:$0xff]   ;;  %v7457_v63 = vld [vmem:[#allocation6 + $0x198] sm:$0xff]  }
 0x1d3   : > { %7016 = vmatpush3.bf16.msra.mxu0 %v7431_v51  ;;  %v3894_v5 = vrot.slane %v3880_v25, %v7888_v6  ;;  %v4101_v24 = vcombine.low %v6615_v61, %v6616_v34  ;;  %v3903_v18 = vrot.slane %v3896_v27, %v7888_v6  ;;  %v6625_v8 = vpack.i.b16 %v8515_v37, %v8630_v54  ;;  %v7437_v37 = vld [vmem:[#allocation6 + $0x128] sm:$0xff]   ;;  %v7458_v15 = vld [vmem:[#allocation6 + $0x1d0] sm:$0xff]  }
 0x1d4   : > { %7038 = vmatmul.mubr.bf16.vlgmr.msra.gmra.mxu1 %v8694_v12  ;;  %7041 = vmatprep.subr.bf16.mxu0 %v7433_v39  ;;  %v4130_v51 = vrot.slane %v4115_v40, %v7888_v6  ;;  %v3925_v53 = vrot.slane %v3910_v23, %v7888_v6  ;;  %v4258_v10 = vcombine.low %v8399_v45, %v8417_v59  ;;  %v7444_v34 = vld [vmem:[#allocation6 + $0x148] sm:$0xff]   ;;  %v3582_v27 = vunpack.i.l.s16 %v8698_v3  ;;  %v7446_v40 = vld [vmem:[#allocation6 + $0x140] sm:$0xff]  }
 0x1d5   : > { %7062 = vmatpush3.bf16.msra.mxu1 %v7432_v46  ;;  %7077 = vmatprep.mubr.bf16.mxu1 %v3654_v28  ;;  %v8785_v12 = vcombine.low %v3887_v21, %v3894_v5  ;;  %v4108_v28 = vrot.slane %v4101_v24, %v7888_v6  ;;  %v3911_v55 = vcombine.low %v8750_v2, %v3903_v18  ;;  %v7443_v21 = vld [vmem:[#allocation6 + $0x110] sm:$0xff]   ;;  %v7445_v5 = vld [vmem:[#allocation6 + $0x108] sm:$0xff]   ;;  %v7447_v24 = vld [vmem:[#allocation6 + $0x100] sm:$0xff]  }
 0x1d6   : > { %7018 = vmatmul.mubr.bf16.vlgmr.msra.gmra.mxu0 %v8703_v35  ;;  %7063 = vmatprep.subr.bf16.mxu1 %v7434_v22  ;;  %v4259_v35 = vcombine.low %v8600_v14, %v8533_v13  ;;  %v4260_v26 = vcombine.low %v8635_v33, %v8496_v41  ;;  %v4261_v29 = vcombine.low %v8524_v36, %v6625_v8  ;;  %v7438_v13 = vld [vmem:[#allocation6 + $0x160] sm:$0xff]  }
 0x1d7   : > { %7042 = vmatpush3.bf16.msra.mxu0 %v7433_v39  ;;  %7057 = vmatprep.mubr.bf16.mxu0 %v3446_v50  ;;  %v4235_v44 = vcombine.high %v8692_v1, %v8692_v1  ;;  %v4116_v46 = vcombine.low %v8730_v11, %v4108_v28  ;;  %v3918_v50 = vrot.slane %v3911_v55, %v7888_v6 }
 0x1d8   : > { %7043 = vmatprep.subr.bf16.mxu0 %v7435_v38  ;;  %v4268_v45 = vrot.slane %v4258_v10, %v7888_v6  ;;  %v4307_v59 = vcombine.low %v8701_v42, %v8746_v32  ;;  %v4275_v14 = vrot.slane %v4259_v35, %v7888_v6  ;;  %v4282_v41 = vrot.slane %v4260_v26, %v7888_v6  ;;  %v7439_v42 = vld [vmem:[#allocation6 + $0x120] sm:$0xff]   ;;  %v7451_v10 = vld [vmem:[#allocation6 + $0x1b0] sm:$0xff]   ;;  %v7456_v26 = vld [vmem:[#allocation6 + $0x1d8] sm:$0xff]  }
 0x1d9   : > { %7064 = vmatpush3.bf16.msra.mxu1 %v7434_v22  ;;  %v4289_v36 = vrot.slane %v4261_v29, %v7888_v6  ;;  %v4236_v33 = vunpack.i.l.s16 %v4235_v44  ;;  %v4123_v7 = vrot.slane %v4116_v46, %v7888_v6  ;;  %v8809_v17 = vcombine.low %v3918_v50, %v3925_v53  ;;  %v7441_v22 = vld [vmem:[#allocation6 + $0x118] sm:$0xff]   ;;  %v7455_v35 = vld [vmem:[#allocation6 + $0x1a0] sm:$0xff]   ;;  %v7461_v29 = vld [vmem:[#allocation6 + $0x188] sm:$0xff]  }
 0x1da   : > { %7065 = vmatprep.subr.bf16.mxu1 %v7436_v31  ;;  %v4308_v49 = vcombine.low %v8692_v1, %v8758_v48  ;;  %v4315_v57 = vrot.slane %v4307_v59, %v7888_v6  ;;  %v4290_v32 = vcombine.low %v4268_v45, %v4275_v14  ;;  %v6597_v52 = vpack.i.b16 %v8630_v54, %v8537_v62  ;;  %v7449_v53 = vld [vmem:[#allocation6 + $0x1b8] sm:$0xff]   ;;  %v7462_v44 = vld [vmem:[#allocation6 + $0x1c0] sm:$0xff]   ;;  %v7465_v45 = vld [vmem:[#allocation6 + $0x230] sm:$0xff]  }
 0x1db   : > { %7044 = vmatpush3.bf16.msra.mxu0 %v7435_v38  ;;  %v4291_v60 = vcombine.low %v4282_v41, %v4289_v36  ;;  %v8814_v39 = vcombine.low %v4123_v7, %v4130_v51  ;;  %v4329_v20 = vrot.slane %v4236_v33, %v7888_v6  ;;  %v3462_v18 = vcombine.low %v8642_v58, %v8750_v2  ;;  %v7450_v2 = vld [vmem:[#allocation6 + $0x1f0] sm:$0xff]   ;;  %v7463_v46 = vld [vmem:[#allocation6 + $0x180] sm:$0xff]   ;;  %v7464_v50 = vld [vmem:[#allocation6 + $0x238] sm:$0xff]  }
 0x1dc   : > { %7045 = vmatprep.subr.bf16.mxu0 %v7437_v37  ;;  %v4322_v47 = vrot.slane %v4308_v49, %v7888_v6  ;;  %v4298_v1 = vrot.slane %v4290_v32, %v7888_v6  ;;  %v3655_v62 = vcombine.low %v8550_v0, %v6597_v52  ;;  %v3677_v0 = vrot.slane %v3582_v27, %v7888_v6  ;;  %v7466_v59 = vld [vmem:[#allocation6 + $0x228] sm:$0xff]   ;;  %v7468_v14 = vld [vmem:[#allocation6 + $0x218] sm:$0xff]   ;;  %v7469_v41 = vld [vmem:[#allocation6 + $0x210] sm:$0xff]  }
 0x1dd   : > { %7066 = vmatpush3.bf16.msra.mxu1 %v7436_v31  ;;  %v4305_v48 = vrot.slane %v4291_v60, %v7888_v6  ;;  %v8828_v61 = vrot.slane %v4329_v20, %v7888_v6  ;;  %v7448_v31 = vld [vmem:[#allocation6 + $0x1f8] sm:$0xff]   ;;  %v3461_v51 = vrot.slane %v3375_v30, %v7888_v6  ;;  %v7453_v30 = vld [vmem:[#allocation6 + $0x1a8] sm:$0xff]   ;;  %v7471_v33 = vld [vmem:[#allocation6 + $0x200] sm:$0xff]  }
 0x1de   : > { %7067 = vmatprep.subr.bf16.mxu1 %v7438_v13  ;;  %v4330_v56 = vcombine.low %v4315_v57, %v4322_v47  ;;  %v3663_v38 = vrot.slane %v3655_v62, %v7888_v6  ;;  %v3692_v8 = vrot.slane %v3677_v0, %v7888_v6  ;;  %v7470_v36 = vld [vmem:[#allocation6 + $0x208] sm:$0xff]   ;;  %v7474_v62 = vld [vmem:[#allocation7 + $0x30] sm:$0xff]   ;;  %v7478_v27 = vld [vmem:[#allocation7 + $0x20] sm:$0xff]  }
 0x1df   : > { %7046 = vmatpush3.bf16.msra.mxu0 %v7437_v37  ;;  %v8822_v25 = vcombine.low %v4298_v1, %v4305_v48  ;;  %v3476_v58 = vrot.slane %v3461_v51, %v7888_v6  ;;  %v7454_v37 = vld [vmem:[#allocation6 + $0x1e0] sm:$0xff]   ;;  %v7485_v51 = vld [vmem:[#allocation7 + $0x48] sm:$0xff]  }
 0x1e0   : > { %7047 = vmatprep.subr.bf16.mxu0 %v7439_v42  ;;  %v8825_v19 = vrot.slane %v4330_v56, %v7888_v6  ;;  %v3678_v23 = vcombine.low %v3663_v38, %v8730_v11  ;;  %v3469_v11 = vrot.slane %v3462_v18, %v7888_v6  ;;  %v7479_v38 = vld [vmem:[#allocation7 + $0x60] sm:$0xff]  }
 0x1e1   : > { %7068 = vmatpush3.bf16.msra.mxu1 %v7438_v13  ;;  %v7467_v13 = vld [vmem:[#allocation6 + $0x220] sm:$0xff]  }
 0x1e2   : > { %7069 = vmatprep.subr.bf16.mxu1 %v7440_v43  ;;  %v4345_v54 = vcombine.low %v8825_v19, %v8828_v61  ;;  %v3685_v3 = vrot.slane %v3678_v23, %v7888_v6  ;;  %v3477_v55 = vcombine.low %v3469_v11, %v3476_v58  ;;  %v7472_v19 = vld [vmem:[#allocation7 + $0x38] sm:$0xff]   ;;  %v7482_v23 = vld [vmem:[#allocation7 + $0x10] sm:$0xff]  }
 0x1e3   : > { %7048 = vmatpush3.bf16.msra.mxu0 %v7439_v42  ;;  %v7473_v61 = vld [vmem:[#allocation7 + $0x78] sm:$0xff]  }
 0x1e4   : > { %7049 = vmatprep.subr.bf16.mxu0 %v7441_v22  ;;  %v3693_v28 = vcombine.low %v3685_v3, %v3692_v8 }
 0x1e5   : > { %7070 = vmatpush3.bf16.msra.mxu1 %v7440_v43 }
 0x1e6   : > { %7071 = vmatprep.subr.bf16.mxu1 %v7442_v4 }
 0x1e7   : > { %7050 = vmatpush3.bf16.msra.mxu0 %v7441_v22 }
 0x1e8   : > { %7051 = vmatprep.subr.bf16.mxu0 %v7443_v21 }
 0x1e9   : > { %7072 = vmatpush3.bf16.msra.mxu1 %v7442_v4  ;;  %v7701_v4 = vmov 0.0  }
 0x1ea   : > { %7073 = vmatprep.subr.bf16.mxu1 %v7444_v34 }
 0x1eb   : > { %7052 = vmatpush3.bf16.msra.mxu0 %v7443_v21  ;;  %v7476_v21 = vld [vmem:[#allocation7 + $0x28] sm:$0xff]  }
 0x1ec   : > { %7053 = vmatprep.subr.bf16.mxu0 %v7445_v5 }
 0x1ed   : > { %7074 = vmatpush3.bf16.msra.mxu1 %v7444_v34  ;;  %v7477_v34 = vld [vmem:[#allocation7 + $0x68] sm:$0xff]  }
 0x1ee   : > { %7075 = vmatprep.subr.bf16.mxu1 %v7446_v40 }
 0x1ef   : > { %7054 = vmatpush3.bf16.msra.mxu0 %v7445_v5  ;;  %v7480_v5 = vld [vmem:[#allocation7 + $0x18] sm:$0xff]  }
 0x1f0   : > { %7055 = vmatprep.subr.bf16.mxu0 %v7447_v24 }
 0x1f1   : > { %7076 = vmatpush3.bf16.msra.mxu1 %v7446_v40  ;;  %v7481_v40 = vld [vmem:[#allocation7 + $0x58] sm:$0xff]  }
 0x1f2   : > { %7101 = vmatprep.subr.bf16.mxu1 %v7448_v31 }
 0x1f3   : > { %7056 = vmatpush3.bf16.msra.mxu0 %v7447_v24  ;;  %v7483_v24 = vld [vmem:[#allocation7 + $0x50] sm:$0xff]  }
 0x1f4   : > { %7078 = vmatmul.mubr.bf16.vlgmr.msra.gmra.mxu1 %v3693_v28  ;;  %7081 = vmatprep.subr.bf16.mxu0 %v7449_v53 }
 0x1f5   : > { %7102 = vmatpush3.bf16.msra.mxu1 %v7448_v31  ;;  %7117 = vmatprep.mubr.bf16.mxu1 %v4100_v16  ;;  %v7459_v16 = vld [vmem:[#allocation6 + $0x190] sm:$0xff]   ;;  %v7484_v31 = vld [vmem:[#allocation7 + $0x8] sm:$0xff]  }
 0x1f6   : > { %7058 = vmatmul.mubr.bf16.vlgmr.msra.gmra.mxu0 %v3477_v55  ;;  %7103 = vmatprep.subr.bf16.mxu1 %v7450_v2  ;;  %v7487_v55 = vld [vmem:[#allocation7 + $0x40] sm:$0xff]  }
 0x1f7   : > { %7082 = vmatpush3.bf16.msra.mxu0 %v7449_v53  ;;  %7097 = vmatprep.mubr.bf16.mxu0 %v8785_v12  ;;  %v7460_v12 = vld [vmem:[#allocation6 + $0x1c8] sm:$0xff]  }
 0x1f8   : > { %7083 = vmatprep.subr.bf16.mxu0 %v7451_v10 }
 0x1f9   : > { %7104 = vmatpush3.bf16.msra.mxu1 %v7450_v2  ;;  %v7486_v2 = vld [vmem:[#allocation7] sm:$0xff]  }
 0x1fa   : > { %7105 = vmatprep.subr.bf16.mxu1 %v7452_v9 }
 0x1fb   : > { %7084 = vmatpush3.bf16.msra.mxu0 %v7451_v10 }
 0x1fc   : > { %7085 = vmatprep.subr.bf16.mxu0 %v7453_v30 }
 0x1fd   : > { %7106 = vmatpush3.bf16.msra.mxu1 %v7452_v9 }
 0x1fe   : > { %7107 = vmatprep.subr.bf16.mxu1 %v7454_v37 }
 0x1ff   : > { %7086 = vmatpush3.bf16.msra.mxu0 %v7453_v30 }
 0x200   : > { %7087 = vmatprep.subr.bf16.mxu0 %v7455_v35 }
 0x201   : > { %7108 = vmatpush3.bf16.msra.mxu1 %v7454_v37 }
 0x202   : > { %7109 = vmatprep.subr.bf16.mxu1 %v7456_v26 }
 0x203   : > { %7088 = vmatpush3.bf16.msra.mxu0 %v7455_v35 }
 0x204   : > { %7089 = vmatprep.subr.bf16.mxu0 %v7457_v63 }
 0x205   : > { %7110 = vmatpush3.bf16.msra.mxu1 %v7456_v26 }
 0x206   : > { %7111 = vmatprep.subr.bf16.mxu1 %v7458_v15 }
 0x207   : > { %7090 = vmatpush3.bf16.msra.mxu0 %v7457_v63 }
 0x208   : > { %7091 = vmatprep.subr.bf16.mxu0 %v7459_v16 }
 0x209   : > { %7112 = vmatpush3.bf16.msra.mxu1 %v7458_v15 }
 0x20a   : > { %7113 = vmatprep.subr.bf16.mxu1 %v7460_v12 }
 0x20b   : > { %7092 = vmatpush3.bf16.msra.mxu0 %v7459_v16 }
 0x20c   : > { %7093 = vmatprep.subr.bf16.mxu0 %v7461_v29 }
 0x20d   : > { %7114 = vmatpush3.bf16.msra.mxu1 %v7460_v12 }
 0x20e   : > { %7115 = vmatprep.subr.bf16.mxu1 %v7462_v44 }
 0x20f   : > { %7094 = vmatpush3.bf16.msra.mxu0 %v7461_v29 }
 0x210   : > { %7095 = vmatprep.subr.bf16.mxu0 %v7463_v46 }
 0x211   : > { %7116 = vmatpush3.bf16.msra.mxu1 %v7462_v44 }
 0x212   : > { %7141 = vmatprep.subr.bf16.mxu1 %v7701_v4 }
 0x213   : > { %7096 = vmatpush3.bf16.msra.mxu0 %v7463_v46 }
 0x214   : > { %7118 = vmatmul.mubr.bf16.vlgmr.msra.gmra.mxu1 %v8814_v39  ;;  %7121 = vmatprep.subr.bf16.mxu0 %v7464_v50 }
 0x215   : > { %7142 = vmatpush3.bf16.msra.mxu1 %v7473_v61  ;;  %7157 = vmatprep.mubr.msk.bf16.mxu1 %vm7702_vm1, %v7701_v4 }
 0x216   : > { %7098 = vmatmul.mubr.bf16.vlgmr.msra.gmra.mxu0 %v8809_v17  ;;  %7143 = vmatprep.subr.bf16.mxu1 %v7701_v4 }
 0x217   : > { %7122 = vmatpush3.bf16.msra.mxu0 %v7464_v50  ;;  %7137 = vmatprep.mubr.bf16.mxu0 %v8822_v25 }
 0x218   : > { %7123 = vmatprep.subr.bf16.mxu0 %v7465_v45 }
 0x21b   : > { %7124 = vmatpush3.bf16.msra.mxu0 %v7465_v45 }
 0x21c   : > { %7125 = vmatprep.subr.bf16.mxu0 %v7466_v59 }
 0x21f   : > { %7126 = vmatpush3.bf16.msra.mxu0 %v7466_v59 }
 0x220   : > { %7127 = vmatprep.subr.bf16.mxu0 %v7467_v13 }
 0x223   : > { %7128 = vmatpush3.bf16.msra.mxu0 %v7467_v13 }
 0x224   : > { %7129 = vmatprep.subr.bf16.mxu0 %v7468_v14 }
 0x227   : > { %7130 = vmatpush3.bf16.msra.mxu0 %v7468_v14 }
 0x228   : > { %7131 = vmatprep.subr.bf16.mxu0 %v7469_v41 }
 0x22b   : > { %7132 = vmatpush3.bf16.msra.mxu0 %v7469_v41 }
 0x22c   : > { %7133 = vmatprep.subr.bf16.mxu0 %v7470_v36 }
 0x22f   : > { %7134 = vmatpush3.bf16.msra.mxu0 %v7470_v36 }
 0x230   : > { %7135 = vmatprep.subr.bf16.mxu0 %v7471_v33 }
 0x233   : > { %7136 = vmatpush3.bf16.msra.mxu0 %v7471_v33 }
 0x234   : > { %7161 = vmatprep.subr.bf16.mxu0 %v7701_v4 }
 0x236   : > { %7138 = vmatmul.mubr.bf16.vlgmr.msra.gmra.mxu0 %v4345_v54  ;;  %v7475_v54 = vld [vmem:[#allocation7 + $0x70] sm:$0xff]  }
 0x237   : > { %7162 = vmatpush3.bf16.msra.mxu0 %v7472_v19  ;;  %7177 = vmatprep.mubr.msk.bf16.mxu0 %vm7702_vm1, %v7701_v4 }
 0x238   : > { %7163 = vmatprep.subr.bf16.mxu0 %v7701_v4  ;;  %7144 = vmatpush3.bf16.msra.mxu1 %v7475_v54 }
 0x239   : > { %7145 = vmatprep.subr.bf16.mxu1 %v7701_v4 }
 0x23b   : > { %7164 = vmatpush3.bf16.msra.mxu0 %v7474_v62 }
 0x23c   : > { %7165 = vmatprep.subr.bf16.mxu0 %v7701_v4  ;;  %7146 = vmatpush3.bf16.msra.mxu1 %v7477_v34 }
 0x23d   : > { %7147 = vmatprep.subr.bf16.mxu1 %v7701_v4 }
 0x23f   : > { %7166 = vmatpush3.bf16.msra.mxu0 %v7476_v21 }
 0x240   : > { %7167 = vmatprep.subr.bf16.mxu0 %v7701_v4  ;;  %7148 = vmatpush3.bf16.msra.mxu1 %v7479_v38 }
 0x241   : > { %7149 = vmatprep.subr.bf16.mxu1 %v7701_v4 }
 0x243   : > { %7168 = vmatpush3.bf16.msra.mxu0 %v7478_v27 }
 0x244   : > { %7169 = vmatprep.subr.bf16.mxu0 %v7701_v4  ;;  %7150 = vmatpush3.bf16.msra.mxu1 %v7481_v40 }
 0x245   : > { %7151 = vmatprep.subr.bf16.mxu1 %v7701_v4 }
 0x247   : > { %7170 = vmatpush3.bf16.msra.mxu0 %v7480_v5 }
 0x248   : > { %7171 = vmatprep.subr.bf16.mxu0 %v7701_v4  ;;  %7152 = vmatpush3.bf16.msra.mxu1 %v7483_v24 }
 0x249   : > { %7153 = vmatprep.subr.bf16.mxu1 %v7701_v4 }
 0x24b   : > { %7172 = vmatpush3.bf16.msra.mxu0 %v7482_v23 }
 0x24c   : > { %7173 = vmatprep.subr.bf16.mxu0 %v7701_v4  ;;  %7154 = vmatpush3.bf16.msra.mxu1 %v7485_v51 }
 0x24d   : > { %7155 = vmatprep.subr.bf16.mxu1 %v7701_v4 }
 0x24f   : > { %7174 = vmatpush3.bf16.msra.mxu0 %v7484_v31 }
 0x250   : > { %7175 = vmatprep.subr.bf16.mxu0 %v7701_v4  ;;  %7156 = vmatpush3.bf16.msra.mxu1 %v7487_v55 }
 0x251   : > { %7181 = vmatprep.subr.bf16.mxu1 %v7701_v4 }
 0x253   : > { %7176 = vmatpush3.bf16.msra.mxu0 %v7486_v2 }
 0x254   : > { %7201 = vmatprep.subr.bf16.mxu0 %v7701_v4 }
 0x274   : > { %v8856_v7 = vpop.f32.mrf.mxu1 }
 0x276   : > { %v8858_v17 = vpop.f32.mrf.mxu0  ;;  %v8860_v49 = vpop.f32.mrf.mxu1 }
 0x277   : > { %v2907_v46 = vadd.f32 %v8856_v7, %v8858_v17 }
 0x278   : > { %v8862_v57 = vpop.f32.mrf.mxu0  ;;  %v7000_v42 = vpop.f32.mrf.mxu1 }
 0x279   : > { %v2899_v50 = vadd.f32 %v8860_v49, %v8862_v57 }
 0x27a   : > { %v6980_v32 = vpop.f32.mrf.mxu0  ;;  %v8864_v39 = vpop.f32.mrf.mxu1 }
 0x27b   : > { %v2910_v60 = vadd.f32 %v7000_v42, %v6980_v32 }
 0x27c   : > { %v8866_v47 = vpop.f32.mrf.mxu0 }
 0x27d   : > { %v2902_v14 = vadd.f32 %v8864_v39, %v8866_v47 }
 0x294   : > { %v8868_v20 = vpop.f32.mrf.mxu1 }
 0x296   : > { %v8870_v43 = vpop.f32.mrf.mxu0  ;;  %v8872_v52 = vpop.f32.mrf.mxu1 }
 0x297   : > { %v3137_v45 = vadd.f32 %v8870_v43, %v2907_v46 }
 0x298   : > { %v8874_v1 = vpop.f32.mrf.mxu0  ;;  %v7040_v22 = vpop.f32.mrf.mxu1 }
 0x299   : > { %v3135_v59 = vadd.f32 %v8874_v1, %v2899_v50  ;;  %v3373_v13 = vadd.f32 %v8868_v20, %v3137_v45  ;;  %v6635_v20 = vld [vmem:[%s9228_s4] ss:$0 sm:$0xff] }
 0x29a   : > { %v7020_v48 = vpop.f32.mrf.mxu0  ;;  %v3359_v0 = vpop.f32.mrf.mxu1 }
 0x29b   : > { %v3138_v56 = vadd.f32 %v7020_v48, %v2910_v60  ;;  %v3371_v36 = vadd.f32 %v8872_v52, %v3135_v59 }
 0x29c   : > { %v3123_v18 = vpop.f32.mrf.mxu0 }
 0x29d   : > { %v3374_v25 = vadd.f32 %v7040_v22, %v3138_v56  ;;  %v3136_v33 = vadd.f32 %v3123_v18, %v2902_v14 }
 0x29f   : > { %v3372_v60 = vadd.f32 %v3359_v0, %v3136_v33 }
 0x2b4   : > { %v7079_v3 = vpop.f32.mrf.mxu1 }
 0x2b6   : > { %v7059_v8 = vpop.f32.mrf.mxu0  ;;  %v3778_v11 = vpop.f32.mrf.mxu1 }
 0x2b7   : > { %v3579_v41 = vadd.f32 %v7059_v8, %v3373_v13 }
 0x2b8   : > { %v3562_v53 = vpop.f32.mrf.mxu0  ;;  %v7080_v10 = vpop.f32.mrf.mxu1 }
 0x2b9   : > { %v3577_v42 = vadd.f32 %v3562_v53, %v3371_v36  ;;  %v3795_v32 = vadd.f32 %v7079_v3, %v3579_v41 }
 0x2ba   : > { %v7060_v28 = vpop.f32.mrf.mxu0  ;;  %v3781_v30 = vpop.f32.mrf.mxu1 }
 0x2bb   : > { %v3580_v58 = vadd.f32 %v7060_v28, %v3374_v25  ;;  %v3793_v17 = vadd.f32 %v3778_v11, %v3577_v42 }
 0x2bc   : > { %v3565_v37 = vpop.f32.mrf.mxu0 }
 0x2bd   : > { %v3796_v9 = vadd.f32 %v7080_v10, %v3580_v58  ;;  %v3578_v48 = vadd.f32 %v3565_v37, %v3372_v60 }
 0x2bf   : > { %v3794_v56 = vadd.f32 %v3781_v30, %v3578_v48 }
 0x2d4   : > { %v7119_v35 = vpop.f32.mrf.mxu1 }
 0x2d6   : > { %v7099_v26 = vpop.f32.mrf.mxu0  ;;  %v4216_v63 = vpop.f32.mrf.mxu1 }
 0x2d7   : > { %v4028_v7 = vadd.f32 %v7099_v26, %v3795_v32 }
 0x2d8   : > { %v4011_v15 = vpop.f32.mrf.mxu0  ;;  %v7120_v29 = vpop.f32.mrf.mxu1 }
 0x2d9   : > { %v4026_v49 = vadd.f32 %v4011_v15, %v3793_v17  ;;  %v4233_v43 = vadd.f32 %v7119_v35, %v4028_v7 }
 0x2da   : > { %v7100_v16 = vpop.f32.mrf.mxu0  ;;  %v4219_v62 = vpop.f32.mrf.mxu1 }
 0x2db   : > { %v4029_v12 = vadd.f32 %v7100_v16, %v3796_v9  ;;  %v4231_v47 = vadd.f32 %v4216_v63, %v4026_v49 }
 0x2dc   : > { %v4014_v57 = vpop.f32.mrf.mxu0 }
 0x2dd   : > { %v4234_v44 = vadd.f32 %v7120_v29, %v4029_v12  ;;  %v4027_v22 = vadd.f32 %v4014_v57, %v3794_v56 }
 0x2df   : > { %v4232_v27 = vadd.f32 %v4219_v62, %v4027_v22 }
 0x2f6   : > { %v7139_v1 = vpop.f32.mrf.mxu0 }
 0x2f7   : > { %v4447_v39 = vadd.f32 %v7139_v1, %v4233_v43 }
 0x2f8   : > { %v4430_v52 = vpop.f32.mrf.mxu0 }
 0x2f9   : > { %v4458_v25 = vadd.f32 %v6635_v20, %v4447_v39  ;;  %v4445_v19 = vadd.f32 %v4430_v52, %v4231_v47 }
 0x2fa   : > { %v7140_v61 = vpop.f32.mrf.mxu0 }
 0x2fb   : > { %v4462_v54 = vmax.f32 %v4458_v25, 0.0  ;;  %v4456_v21 = vadd.f32 %v6635_v20, %v4445_v19  ;;  %v4448_v34 = vadd.f32 %v7140_v61, %v4234_v44 }
 0x2fc   : > { %v4433_v38 = vpop.f32.mrf.mxu0 }
 0x2fd   : > { %v4566_v5 = vcombine.high %v4462_v54, %v4462_v54  ;;  %v4460_v40 = vmax.f32 %v4456_v21, 0.0  ;;  %v4459_v0 = vadd.f32 %v6635_v20, %v4448_v34  ;;  %v4446_v23 = vadd.f32 %v4433_v38, %v4232_v27 }
 0x2fe   : > { %v4573_v53 = vrot.slane %v4462_v54, %v7888_v6 }
 0x2ff   : > { %v4580_v24 = vrot.slane %v4566_v5, %v7888_v6  ;;  %v4468_v18 = vcombine.high %v4460_v40, %v4460_v40  ;;  %v4475_v3 = vrot.slane %v4460_v40, %v7888_v6  ;;  %v4457_v8 = vadd.f32 %v6635_v20, %v4446_v23 }
 0x300   : > { %v4581_v26 = vcombine.high %v4573_v53, %v4573_v53  ;;  %v4589_v44 = vrot.slane %v4573_v53, %v7888_v6  ;;  %v4463_v46 = vmax.f32 %v4459_v0, 0.0 }
 0x301   : > { %v4582_v31 = vcombine.high %v4580_v24, %v4580_v24  ;;  %v4482_v51 = vrot.slane %v4468_v18, %v7888_v6  ;;  %v4483_v11 = vcombine.high %v4475_v3, %v4475_v3  ;;  %v4491_v58 = vrot.slane %v4475_v3, %v7888_v6 }
 0x302   : > { %v4461_v10 = vmax.f32 %v4457_v8, 0.0  ;;  %v4596_v15 = vrot.slane %v4580_v24, %v7888_v6  ;;  %v4603_v41 = vrot.slane %v4581_v26, %v7888_v6  ;;  %v4611_v48 = vcombine.high %v4589_v44, %v4589_v44 }
 0x303   : > { %v4484_v28 = vcombine.high %v4482_v51, %v4482_v51  ;;  %v4498_v2 = vrot.slane %v4482_v51, %v7888_v6  ;;  %v4505_v55 = vrot.slane %v4483_v11, %v7888_v6  ;;  %v4610_v9 = vrot.slane %v4582_v31, %v7888_v6 }
 0x304   : > { %v4517_v50 = vcombine.high %v4461_v10, %v4461_v10  ;;  %v4524_v14 = vrot.slane %v4461_v10, %v7888_v6  ;;  %v4621_v49 = vrot.slane %v4463_v46, %v7888_v6  ;;  %v4747_v21 = vcombine.low %v4603_v41, %v4611_v48 }
 0x305   : > { %v4512_v30 = vrot.slane %v4484_v28, %v7888_v6  ;;  %v4629_v37 = vcombine.low %v4491_v58, %v4505_v55  ;;  %v6636_v35 = vcombine.high %v4491_v58, %v4505_v55  ;;  %v4514_v63 = vcombine.high %v4498_v2, %v4498_v2 }
 0x306   : > { %v4651_v29 = vrot.slane %v4498_v2, %v7888_v6  ;;  %v4785_v45 = vcombine.low %v4596_v15, %v4610_v9  ;;  %v6638_v36 = vcombine.high %v4596_v15, %v4610_v9  ;;  %v4531_v42 = vrot.slane %v4517_v50, %v7888_v6 }
 0x307   : > { %v4637_v16 = vrot.slane %v4629_v37, %v7888_v6  ;;  %v4644_v12 = vrot.slane %v6636_v35, %v7888_v6  ;;  %v4516_v13 = vcombine.high %v4512_v30, %v4512_v30  ;;  %v4668_v33 = vcombine.low %v4512_v30, %v4514_v63 }
 0x308   : > { %v4666_v60 = vrot.slane %v4651_v29, %v7888_v6  ;;  %v4532_v7 = vcombine.high %v4524_v14, %v4524_v14  ;;  %v4540_v17 = vrot.slane %v4524_v14, %v7888_v6  ;;  %v4533_v57 = vcombine.high %v4531_v42, %v4531_v42 }
 0x309   : > { %v4652_v59 = vcombine.low %v4637_v16, %v4644_v12  ;;  %v4547_v43 = vrot.slane %v4531_v42, %v7888_v6  ;;  %v4793_v56 = vrot.slane %v4785_v45, %v7888_v6  ;;  %v4800_v47 = vrot.slane %v6638_v36, %v7888_v6 }
 0x30a   : > { %v4554_v20 = vrot.slane %v4532_v7, %v7888_v6  ;;  %v4669_v39 = vcombine.low %v4516_v13, %v4540_v17  ;;  %v4561_v22 = vrot.slane %v4533_v57, %v7888_v6  ;;  %v4676_v25 = vrot.slane %v4668_v33, %v7888_v6 }
 0x30b   : > { %v4659_v32 = vrot.slane %v4652_v59, %v7888_v6  ;;  %v4563_v52 = vcombine.high %v4547_v43, %v4547_v43  ;;  %v4613_v38 = vcombine.high %v4603_v41, %v4603_v41  ;;  %v4628_v40 = vrot.slane %v4621_v49, %v7888_v6 }
 0x30c   : > { %v4683_v61 = vrot.slane %v4669_v39, %v7888_v6  ;;  %v4690_v62 = vrot.slane %v4554_v20, %v7888_v6  ;;  %v6637_v54 = vcombine.high %v4540_v17, %v4554_v20  ;;  %v4565_v34 = vcombine.high %v4561_v22, %v4561_v22 }
 0x30d   : > { %v4667_v1 = vcombine.low %v4659_v32, %v4666_v60  ;;  %v4708_v27 = vcombine.low %v4547_v43, %v4561_v22  ;;  %v4729_v18 = vrot.slane %v4563_v52, %v7888_v6  ;;  %v4808_v3 = vcombine.low %v4793_v56, %v4800_v47 }
 0x30e   : > { %v4691_v0 = vcombine.low %v4676_v25, %v4683_v61  ;;  %v4715_v23 = vrot.slane %v6637_v54, %v7888_v6  ;;  %v4705_v31 = vrot.slane %v4690_v62, %v7888_v6  ;;  %v4746_v51 = vcombine.low %v4565_v34, %v4589_v44 }
 0x30f   : > { %v4829_v19 = vpack.c.bf16 %v4667_v1, %v4667_v1  ;;  %v4722_v24 = vrot.slane %v4708_v27, %v7888_v6  ;;  %v4761_v11 = vrot.slane %v4747_v21, %v7888_v6  ;;  %v4768_v58 = vrot.slane %v4613_v38, %v7888_v6 }
 0x310   : > { %v4698_v8 = vrot.slane %v4691_v0, %v7888_v6  ;;  %v4807_v2 = vrot.slane %v4628_v40, %v7888_v6  ;;  %v4754_v10 = vrot.slane %v4746_v51, %v7888_v6  ;;  %v4744_v30 = vrot.slane %v4729_v18, %v7888_v6 }
 0x311   : > { %v4843_v5 = vrot.slane %v4829_v19, %v7888_v6  ;;  %v4730_v28 = vcombine.low %v4715_v23, %v4722_v24  ;;  %v4815_v37 = vrot.slane %v4808_v3, %v7888_v6  ;;  %v4783_v12 = vrot.slane %v4768_v58, %v7888_v6 }
 0x312   : > { %v4706_v55 = vcombine.low %v4698_v8, %v4705_v31  ;;  %v4769_v35 = vcombine.low %v4754_v10, %v4761_v11  ;;  %v4822_v29 = vrot.slane %v4807_v2, %v7888_v6  ;;  %v7488_v31 = vld [vmem:[#allocation7 + $0xf8] sm:$0xff]  }
 0x313   : > { %v4844_v53 = vcombine.high %v4843_v5, %v4843_v5  ;;  %v4737_v9 = vrot.slane %v4730_v28, %v7888_v6  ;;  %v8955_v63 = vrot.slane %v4843_v5, %v7888_v6 }
 0x314   : > { %v4830_v26 = vpack.c.bf16 %v4706_v55, %v4706_v55  ;;  %v4776_v44 = vrot.slane %v4769_v35, %v7888_v6  ;;  %v4823_v45 = vcombine.low %v4815_v37, %v4822_v29  ;;  %v7490_v37 = vld [vmem:[#allocation7 + $0xf0] sm:$0xff]  }
 0x315   : > { %v8958_v15 = vrot.slane %v4844_v53, %v7888_v6  ;;  %v4745_v16 = vcombine.low %v4737_v9, %v4744_v30  ;;  %v4904_v36 = vunpack.i.h.s16 %v8955_v63  ;;  %v7489_v9 = vld [vmem:[#allocation7 + $0xb8] sm:$0xff]  }
 0x316   : > { %v4865_v46 = vrot.slane %v4830_v26, %v7888_v6  ;;  %v4784_v59 = vcombine.low %v4776_v44, %v4783_v12  ;;  %v4833_v49 = vpack.c.bf16 %v4823_v45, %v4823_v45 }
 0x317   : > { %v4831_v50 = vpack.c.bf16 %v4745_v16, %v4745_v16  ;;  %v4928_v33 = vunpack.i.h.s16 %v8958_v15  ;;  %v6639_v39 = vpack.i.b16 %v8958_v15, %v4904_v36 }
 0x318   : > { %v4866_v13 = vcombine.high %v4865_v46, %v4865_v46  ;;  %v8965_v14 = vrot.slane %v4865_v46, %v7888_v6  ;;  %v4832_v42 = vpack.c.bf16 %v4784_v59, %v4784_v59  ;;  %v5866_v62 = vrot.slane %v4833_v49, %v7888_v6  ;;  %v7491_v46 = vld [vmem:[#allocation7 + $0xb0] sm:$0xff]   ;;  %v7492_v59 = vld [vmem:[#allocation7 + $0xe8] sm:$0xff]  }
 0x319   : > { %v4887_v41 = vrot.slane %v4831_v50, %v7888_v6 }
 0x31a   : > { %v8971_v32 = vrot.slane %v4866_v13, %v7888_v6  ;;  %v4907_v60 = vunpack.i.h.s16 %v8965_v14  ;;  %v6649_v7 = vpack.i.b16 %v8965_v14, %v8958_v15  ;;  %v5382_v22 = vrot.slane %v4832_v42, %v7888_v6 }
 0x31b   : > { %v4888_v17 = vcombine.high %v4887_v41, %v4887_v41  ;;  %v8977_v48 = vrot.slane %v4887_v41, %v7888_v6  ;;  %v5867_v24 = vcombine.high %v5866_v62, %v5866_v62  ;;  %v9011_v8 = vrot.slane %v5866_v62, %v7888_v6 }
 0x31c   : > { %v8980_v57 = vpack.i.b16 %v8971_v32, %v4907_v60  ;;  %v5087_v43 = vcombine.low %v8955_v63, %v6649_v7  ;;  %v4949_v56 = vpack.i.b16 %v4907_v60, %v4928_v33  ;;  %v5383_v5 = vcombine.high %v5382_v22, %v5382_v22 }
 0x31d   : > { %v8984_v1 = vrot.slane %v4888_v17, %v7888_v6  ;;  %v4910_v20 = vunpack.i.h.s16 %v8977_v48  ;;  %v9014_v11 = vrot.slane %v5382_v22, %v7888_v6  ;;  %v4929_v55 = vunpack.i.h.s16 %v8971_v32  ;;  %v7494_v22 = vld [vmem:[#allocation7 + $0xe0] sm:$0xff]  }
 0x31e   : > { %v5088_v47 = vcombine.low %v8980_v57, %v8977_v48  ;;  %v4953_v61 = vcombine.low %v6639_v39, %v4949_v56  ;;  %v5095_v54 = vrot.slane %v5087_v43, %v7888_v6  ;;  %v9017_v28 = vrot.slane %v5383_v5, %v7888_v6 }
 0x31f   : > { %v4911_v52 = vunpack.i.l.s16 %v8984_v1  ;;  %v8993_v25 = vunpack.i.h.s16 %v8984_v1  ;;  %v8996_v19 = vpack.i.b16 %v8984_v1, %v4910_v20  ;;  %v5881_v10 = vrot.slane %v5867_v24, %v7888_v6 }
 0x320   : > { %v5102_v21 = vrot.slane %v5088_v47, %v7888_v6  ;;  %v4961_v40 = vrot.slane %v4953_v61, %v7888_v6  ;;  %v5399_v35 = vunpack.i.h.s16 %v9014_v11  ;;  %v5883_v26 = vunpack.i.h.s16 %v9011_v8 }
 0x321   : > { %v5109_v34 = vrot.slane %v4911_v52, %v7888_v6  ;;  %v4954_v27 = vcombine.low %v8971_v32, %v8996_v19  ;;  %v4975_v23 = vrot.slane %v8993_v25, %v7888_v6  ;;  %v5553_v16 = vunpack.i.h.s16 %v9017_v28 }
 0x322   : > { %v5110_v38 = vcombine.low %v5095_v54, %v5102_v21  ;;  %v5571_v12 = vpack.i.b16 %v4910_v20, %v4929_v55  ;;  %v6678_v29 = vpack.i.b16 %v9017_v28, %v5399_v35  ;;  %v6054_v44 = vpack.i.b16 %v5399_v35, %v8993_v25 }
 0x323   : > { %v4968_v0 = vrot.slane %v4954_v27, %v7888_v6  ;;  %v5124_v3 = vrot.slane %v5109_v34, %v7888_v6  ;;  %v4990_v2 = vrot.slane %v4975_v23, %v7888_v6  ;;  %v9037_v50 = vcombine.high %v9014_v11, %v9014_v11  ;;  %v7495_v23 = vld [vmem:[#allocation7 + $0xa0] sm:$0xff]  }
 0x324   : > { %v5117_v18 = vrot.slane %v5110_v38, %v7888_v6  ;;  %v6036_v45 = vunpack.i.h.s16 %v5881_v10  ;;  %v5574_v13 = vcombine.low %v8980_v57, %v5571_v12  ;;  %v5575_v41 = vcombine.low %v8984_v1, %v6678_v29 }
 0x325   : > { %v4976_v51 = vcombine.low %v4961_v40, %v4968_v0  ;;  %v6706_v36 = vpack.i.b16 %v5881_v10, %v5883_v26  ;;  %v5216_v33 = vcombine.high %v8955_v63, %v8955_v63  ;;  %v6716_v42 = vpack.i.b16 %v9037_v50, %v5553_v16  ;;  %v7493_v63 = vld [vmem:[#allocation7 + $0xa8] sm:$0xff]  }
 0x326   : > { %v5125_v53 = vcombine.low %v5117_v18, %v5124_v3  ;;  %v6057_v60 = vcombine.low %v8996_v19, %v6054_v44  ;;  %v6188_v7 = vcombine.high %v9011_v8, %v9011_v8  ;;  %v9052_v17 = vrot.slane %v5574_v13, %v7888_v6  ;;  %v7499_v13 = vld [vmem:[#allocation7 + $0x90] sm:$0xff]  }
 0x327   : > { %v4983_v58 = vrot.slane %v4976_v51, %v7888_v6  ;;  %v9055_v49 = vrot.slane %v5575_v41, %v7888_v6  ;;  %v6058_v57 = vcombine.low %v9017_v28, %v6706_v36  ;;  %v5884_v43 = vunpack.i.l.s16 %v5881_v10 }
 0x328   : > { %7178 = vmatmul.mubr.bf16.vlgmr.msra.gmra.mxu0 %v5125_v53  ;;  %v9060_v56 = vcombine.high %v8977_v48, %v8977_v48  ;;  %v6065_v20 = vrot.slane %v6057_v60, %v7888_v6  ;;  %v6079_v39 = vrot.slane %v6036_v45, %v7888_v6  ;;  %v6697_v47 = vpack.i.b16 %v9014_v11, %v8984_v1 }
 0x329   : > { %7202 = vmatpush3.bf16.msra.mxu0 %v7488_v31  ;;  %v4991_v30 = vcombine.low %v4983_v58, %v4990_v2  ;;  %7217 = vmatprep.mubr.msk.bf16.mxu0 %vm7702_vm1, %v7701_v4  ;;  %v5597_v52 = vcombine.low %v9052_v17, %v9055_v49  ;;  %v6072_v61 = vrot.slane %v6058_v57, %v7888_v6  ;;  %v6189_v21 = vunpack.i.l.s16 %v6188_v7  ;;  %v7496_v31 = vld [vmem:[#allocation7 + $0xd8] sm:$0xff]   ;;  %v7523_v17 = vld [vmem:[#allocation7 + $0x1b0] sm:$0xff]   ;;  %v7525_v49 = vld [vmem:[#allocation7 + $0x1a8] sm:$0xff]  }
 0x32a   : > { %7203 = vmatprep.subr.bf16.mxu0 %v7701_v4  ;;  %v5906_v62 = vcombine.low %v6678_v29, %v9011_v8  ;;  %v5905_v54 = vcombine.low %v8977_v48, %v6697_v47  ;;  %v6715_v34 = vpack.i.b16 %v9017_v28, %v9060_v56  ;;  %v6212_v27 = vcombine.low %v6716_v42, %v5881_v10  ;;  %v7500_v42 = vld [vmem:[#allocation7 + $0xc8] sm:$0xff]  }
 0x32b   : > { %7158 = vmatmul.mubr.bf16.vlgmr.msra.gmra.mxu1 %v4991_v30  ;;  %v9077_v38 = vcombine.high %v8965_v14, %v8965_v14  ;;  %v6080_v5 = vcombine.low %v6065_v20, %v6072_v61  ;;  %v5927_v0 = vrot.slane %v5884_v43, %v7888_v6  ;;  %v6669_v24 = vpack.i.b16 %v8977_v48, %v8971_v32  ;;  %v7501_v43 = vld [vmem:[#allocation7 + $0x88] sm:$0xff]   ;;  %v7502_v20 = vld [vmem:[#allocation7 + $0xc0] sm:$0xff]  }
 0x32c   : > { %7182 = vmatpush3.bf16.msra.mxu1 %v7489_v9  ;;  %7197 = vmatprep.mubr.msk.bf16.mxu1 %vm7702_vm1, %v7701_v4  ;;  %v5920_v40 = vrot.slane %v5906_v62, %v7888_v6  ;;  %v5913_v18 = vrot.slane %v5905_v54, %v7888_v6  ;;  %v6211_v3 = vcombine.low %v8984_v1, %v6715_v34  ;;  %v5400_v41 = vunpack.i.l.s16 %v9017_v28  ;;  %v7503_v61 = vld [vmem:[#allocation7 + $0x80] sm:$0xff]   ;;  %v7504_v54 = vld [vmem:[#allocation7 + $0x178] sm:$0xff]  }
 0x32d   : > { %7204 = vmatpush3.bf16.msra.mxu0 %v7490_v37  ;;  %7183 = vmatprep.subr.bf16.mxu1 %v7701_v4  ;;  %v6226_v8 = vrot.slane %v6212_v27, %v7888_v6  ;;  %v6660_v51 = vpack.i.b16 %v9077_v38, %v4929_v55  ;;  %v6087_v53 = vrot.slane %v6080_v5, %v7888_v6  ;;  %v7497_v55 = vld [vmem:[#allocation7 + $0x98] sm:$0xff]   ;;  %v5221_v57 = vunpack.i.l.s16 %v9060_v56 }
 0x32e   : > { %7205 = vmatprep.subr.bf16.mxu0 %v7701_v4  ;;  %v6094_v58 = vrot.slane %v6079_v39, %v7888_v6  ;;  %v5423_v48 = vcombine.low %v8996_v19, %v9014_v11  ;;  %v5928_v2 = vcombine.low %v5913_v18, %v5920_v40  ;;  %v6219_v10 = vrot.slane %v6211_v3, %v7888_v6  ;;  %v7498_v19 = vld [vmem:[#allocation7 + $0xd0] sm:$0xff]   ;;  %v7505_v5 = vld [vmem:[#allocation7 + $0x138] sm:$0xff]   ;;  %v7509_v18 = vld [vmem:[#allocation7 + $0x128] sm:$0xff]  }
 0x32f   : > { %v6233_v9 = vrot.slane %v6189_v21, %v7888_v6  ;;  %v6659_v30 = vpack.i.b16 %v8971_v32, %v5216_v33  ;;  %v5422_v35 = vcombine.low %v8965_v14, %v6669_v24  ;;  %v5942_v12 = vrot.slane %v5927_v0, %v7888_v6  ;;  %v7506_v0 = vld [vmem:[#allocation7 + $0x170] sm:$0xff]   ;;  %v7508_v24 = vld [vmem:[#allocation7 + $0x168] sm:$0xff]   ;;  %v7510_v3 = vld [vmem:[#allocation7 + $0x160] sm:$0xff]  }
 0x330   : > { %7184 = vmatpush3.bf16.msra.mxu1 %v7491_v46  ;;  %v9098_v37 = vcombine.low %v6087_v53, %v6094_v58  ;;  %v5935_v26 = vrot.slane %v5928_v2, %v7888_v6  ;;  %v6234_v29 = vcombine.low %v6219_v10, %v6226_v8  ;;  %v5245_v11 = vcombine.low %v6660_v51, %v8984_v1  ;;  %v7512_v53 = vld [vmem:[#allocation7 + $0x158] sm:$0xff]  }
 0x331   : > { %7206 = vmatpush3.bf16.msra.mxu0 %v7492_v59  ;;  %7185 = vmatprep.subr.bf16.mxu1 %v7701_v4  ;;  %v5437_v44 = vrot.slane %v5423_v48, %v7888_v6  ;;  %v6248_v14 = vrot.slane %v6233_v9, %v7888_v6  ;;  %v5244_v59 = vcombine.low %v8958_v15, %v6659_v30  ;;  %v7513_v48 = vld [vmem:[#allocation7 + $0x118] sm:$0xff]   ;;  %v7516_v9 = vld [vmem:[#allocation7 + $0x148] sm:$0xff]  }
 0x332   : > { %7207 = vmatprep.subr.bf16.mxu0 %v7701_v4  ;;  %v9107_v46 = vcombine.low %v5935_v26, %v5942_v12  ;;  %v6241_v45 = vrot.slane %v6234_v29, %v7888_v6  ;;  %v5430_v36 = vrot.slane %v5422_v35, %v7888_v6  ;;  %v5259_v60 = vrot.slane %v5245_v11, %v7888_v6  ;;  %v7517_v30 = vld [vmem:[#allocation7 + $0x108] sm:$0xff]   ;;  %v7518_v35 = vld [vmem:[#allocation7 + $0x140] sm:$0xff]  }
 0x333   : > { %v5252_v15 = vrot.slane %v5244_v59, %v7888_v6  ;;  %v6688_v8 = vpack.i.b16 %v9060_v56, %v8993_v25  ;;  %v6687_v51 = vpack.i.b16 %v8984_v1, %v9077_v38  ;;  %v7514_v25 = vld [vmem:[#allocation7 + $0x150] sm:$0xff]   ;;  %v5706_v38 = vunpack.i.l.s16 %v9037_v50  ;;  %v7519_v12 = vld [vmem:[#allocation7 + $0x100] sm:$0xff]  }
 0x334   : > { %7186 = vmatpush3.bf16.msra.mxu1 %v7493_v63  ;;  %v9114_v33 = vcombine.low %v6241_v45, %v6248_v14  ;;  %v5445_v7 = vcombine.low %v5430_v36, %v5437_v44  ;;  %v5444_v63 = vrot.slane %v5400_v41, %v7888_v6  ;;  %v7515_v56 = vld [vmem:[#allocation7 + $0x110] sm:$0xff]   ;;  %v5596_v26 = vrot.slane %v5553_v16, %v7888_v6  ;;  %v7527_v59 = vld [vmem:[#allocation7 + $0x1a0] sm:$0xff]   ;;  %v7529_v41 = vld [vmem:[#allocation7 + $0x198] sm:$0xff]  }
 0x335   : > { %7208 = vmatpush3.bf16.msra.mxu0 %v7494_v22  ;;  %7187 = vmatprep.subr.bf16.mxu1 %v7701_v4  ;;  %v5267_v39 = vcombine.low %v5252_v15, %v5259_v60  ;;  %v5266_v22 = vrot.slane %v5221_v57, %v7888_v6  ;;  %v5729_v58 = vcombine.low %v6688_v8, %v9017_v28  ;;  %v7521_v28 = vld [vmem:[#allocation7 + $0x1b8] sm:$0xff]   ;;  %v7522_v14 = vld [vmem:[#allocation7 + $0x1f0] sm:$0xff]   ;;  %v7532_v60 = vld [vmem:[#allocation7 + $0x1c8] sm:$0xff]  }
 0x336   : > { %7209 = vmatprep.subr.bf16.mxu0 %v7701_v4  ;;  %v5452_v47 = vrot.slane %v5445_v7, %v7888_v6  ;;  %v5459_v62 = vrot.slane %v5444_v63, %v7888_v6  ;;  %v5728_v2 = vcombine.low %v8971_v32, %v6687_v51  ;;  %v5604_v11 = vrot.slane %v5597_v52, %v7888_v6  ;;  %v7526_v52 = vld [vmem:[#allocation7 + $0x1e0] sm:$0xff]   ;;  %v7530_v36 = vld [vmem:[#allocation7 + $0x1d0] sm:$0xff]   ;;  %v7533_v7 = vld [vmem:[#allocation7 + $0x188] sm:$0xff]  }
 0x337   : > { %v5274_v21 = vrot.slane %v5267_v39, %v7888_v6  ;;  %v5281_v27 = vrot.slane %v5266_v22, %v7888_v6  ;;  %v5743_v1 = vrot.slane %v5729_v58, %v7888_v6  ;;  %v5611_v45 = vrot.slane %v5596_v26, %v7888_v6  ;;  %v7534_v57 = vld [vmem:[#allocation7 + $0x1c0] sm:$0xff]   ;;  %v7537_v63 = vld [vmem:[#allocation7 + $0x230] sm:$0xff]  }
 0x338   : > { %7188 = vmatpush3.bf16.msra.mxu1 %v7495_v23  ;;  %v5460_v34 = vcombine.low %v5452_v47, %v5459_v62  ;;  %v7507_v23 = vld [vmem:[#allocation7 + $0x130] sm:$0xff]   ;;  %v5736_v10 = vrot.slane %v5728_v2, %v7888_v6  ;;  %v7535_v15 = vld [vmem:[#allocation7 + $0x180] sm:$0xff]   ;;  %v7542_v47 = vld [vmem:[#allocation7 + $0x208] sm:$0xff]  }
 0x339   : > { %7210 = vmatpush3.bf16.msra.mxu0 %v7496_v31  ;;  %7189 = vmatprep.subr.bf16.mxu1 %v7701_v4  ;;  %v5282_v40 = vcombine.low %v5274_v21, %v5281_v27  ;;  %v7511_v31 = vld [vmem:[#allocation7 + $0x120] sm:$0xff]   ;;  %v5612_v16 = vcombine.low %v5604_v11, %v5611_v45 }
 0x33a   : > { %7211 = vmatprep.subr.bf16.mxu0 %v7701_v4  ;;  %v5751_v32 = vcombine.low %v5736_v10, %v5743_v1  ;;  %v7539_v39 = vld [vmem:[#allocation7 + $0x220] sm:$0xff]  }
 0x33b   : > { %v7543_v22 = vld [vmem:[#allocation7 + $0x200] sm:$0xff]  }
 0x33c   : > { %7190 = vmatpush3.bf16.msra.mxu1 %v7497_v55  ;;  %v5750_v55 = vrot.slane %v5706_v38, %v7888_v6  ;;  %v5758_v50 = vrot.slane %v5751_v32, %v7888_v6 }
 0x33d   : > { %7212 = vmatpush3.bf16.msra.mxu0 %v7498_v19  ;;  %7191 = vmatprep.subr.bf16.mxu1 %v7701_v4  ;;  %v7520_v19 = vld [vmem:[#allocation7 + $0x1f8] sm:$0xff]  }
 0x33e   : > { %7213 = vmatprep.subr.bf16.mxu0 %v7701_v4  ;;  %v5765_v29 = vrot.slane %v5750_v55, %v7888_v6  ;;  %v7524_v6 = vld [vmem:[#allocation7 + $0x1e8] sm:$0xff]  }
 0x340   : > { %7192 = vmatpush3.bf16.msra.mxu1 %v7499_v13  ;;  %v5766_v44 = vcombine.low %v5758_v50, %v5765_v29  ;;  %v7528_v13 = vld [vmem:[#allocation7 + $0x1d8] sm:$0xff]  }
 0x341   : > { %7214 = vmatpush3.bf16.msra.mxu0 %v7500_v42  ;;  %7193 = vmatprep.subr.bf16.mxu1 %v7701_v4  ;;  %v7531_v42 = vld [vmem:[#allocation7 + $0x190] sm:$0xff]  }
 0x342   : > { %7215 = vmatprep.subr.bf16.mxu0 %v7701_v4 }
 0x344   : > { %7194 = vmatpush3.bf16.msra.mxu1 %v7501_v43  ;;  %v7536_v43 = vld [vmem:[#allocation7 + $0x238] sm:$0xff]  }
 0x345   : > { %7216 = vmatpush3.bf16.msra.mxu0 %v7502_v20  ;;  %7195 = vmatprep.subr.bf16.mxu1 %v7701_v4  ;;  %v7538_v20 = vld [vmem:[#allocation7 + $0x228] sm:$0xff]  }
 0x346   : > { %7241 = vmatprep.subr.bf16.mxu0 %v7701_v4 }
 0x348   : > { %7196 = vmatpush3.bf16.msra.mxu1 %v7503_v61  ;;  %7218 = vmatmul.mubr.bf16.vlgmr.msra.gmra.mxu0 %v5460_v34 }
 0x349   : > { %7242 = vmatpush3.bf16.msra.mxu0 %v7504_v54  ;;  %7221 = vmatprep.subr.bf16.mxu1 %v7701_v4 }
 0x34a   : > { %7243 = vmatprep.subr.bf16.mxu0 %v7701_v4  ;;  %7257 = vmatprep.mubr.msk.bf16.mxu0 %vm7702_vm1, %v7701_v4 }
 0x34b   : > { %7198 = vmatmul.mubr.bf16.vlgmr.msra.gmra.mxu1 %v5282_v40 }
 0x34c   : > { %7222 = vmatpush3.bf16.msra.mxu1 %v7505_v5  ;;  %7237 = vmatprep.mubr.msk.bf16.mxu1 %vm7702_vm1, %v7701_v4 }
 0x34d   : > { %7244 = vmatpush3.bf16.msra.mxu0 %v7506_v0  ;;  %7223 = vmatprep.subr.bf16.mxu1 %v7701_v4 }
 0x34e   : > { %7245 = vmatprep.subr.bf16.mxu0 %v7701_v4 }
 0x350   : > { %7224 = vmatpush3.bf16.msra.mxu1 %v7507_v23 }
 0x351   : > { %7246 = vmatpush3.bf16.msra.mxu0 %v7508_v24  ;;  %7225 = vmatprep.subr.bf16.mxu1 %v7701_v4 }
 0x352   : > { %7247 = vmatprep.subr.bf16.mxu0 %v7701_v4 }
 0x354   : > { %7226 = vmatpush3.bf16.msra.mxu1 %v7509_v18 }
 0x355   : > { %7248 = vmatpush3.bf16.msra.mxu0 %v7510_v3  ;;  %7227 = vmatprep.subr.bf16.mxu1 %v7701_v4 }
 0x356   : > { %7249 = vmatprep.subr.bf16.mxu0 %v7701_v4 }
 0x358   : > { %7228 = vmatpush3.bf16.msra.mxu1 %v7511_v31 }
 0x359   : > { %7250 = vmatpush3.bf16.msra.mxu0 %v7512_v53  ;;  %7229 = vmatprep.subr.bf16.mxu1 %v7701_v4 }
 0x35a   : > { %7251 = vmatprep.subr.bf16.mxu0 %v7701_v4 }
 0x35c   : > { %7230 = vmatpush3.bf16.msra.mxu1 %v7513_v48 }
 0x35d   : > { %7252 = vmatpush3.bf16.msra.mxu0 %v7514_v25  ;;  %7231 = vmatprep.subr.bf16.mxu1 %v7701_v4 }
 0x35e   : > { %7253 = vmatprep.subr.bf16.mxu0 %v7701_v4 }
 0x360   : > { %7232 = vmatpush3.bf16.msra.mxu1 %v7515_v56 }
 0x361   : > { %7254 = vmatpush3.bf16.msra.mxu0 %v7516_v9  ;;  %7233 = vmatprep.subr.bf16.mxu1 %v7701_v4 }
 0x362   : > { %7255 = vmatprep.subr.bf16.mxu0 %v7701_v4 }
 0x364   : > { %7234 = vmatpush3.bf16.msra.mxu1 %v7517_v30 }
 0x365   : > { %7256 = vmatpush3.bf16.msra.mxu0 %v7518_v35  ;;  %7235 = vmatprep.subr.bf16.mxu1 %v7701_v4 }
 0x366   : > { %7281 = vmatprep.subr.bf16.mxu0 %v7701_v4 }
 0x368   : > { %7236 = vmatpush3.bf16.msra.mxu1 %v7519_v12  ;;  %7258 = vmatmul.mubr.bf16.vlgmr.msra.gmra.mxu0 %v5766_v44 }
 0x369   : > { %7282 = vmatpush3.bf16.msra.mxu0 %v7520_v19  ;;  %7261 = vmatprep.subr.bf16.mxu1 %v7701_v4 }
 0x36a   : > { %7283 = vmatprep.subr.bf16.mxu0 %v7701_v4  ;;  %7297 = vmatprep.mubr.msk.bf16.mxu0 %vm7702_vm1, %v7701_v4 }
 0x36b   : > { %7238 = vmatmul.mubr.bf16.vlgmr.msra.gmra.mxu1 %v5612_v16 }
 0x36c   : > { %7262 = vmatpush3.bf16.msra.mxu1 %v7521_v28  ;;  %7277 = vmatprep.mubr.msk.bf16.mxu1 %vm7702_vm1, %v7701_v4 }
 0x36d   : > { %7284 = vmatpush3.bf16.msra.mxu0 %v7522_v14  ;;  %7263 = vmatprep.subr.bf16.mxu1 %v7701_v4 }
 0x36e   : > { %7285 = vmatprep.subr.bf16.mxu0 %v7701_v4 }
 0x370   : > { %7264 = vmatpush3.bf16.msra.mxu1 %v7523_v17 }
 0x371   : > { %7286 = vmatpush3.bf16.msra.mxu0 %v7524_v6  ;;  %7265 = vmatprep.subr.bf16.mxu1 %v7701_v4 }
 0x372   : > { %7287 = vmatprep.subr.bf16.mxu0 %v7701_v4 }
 0x374   : > { %7266 = vmatpush3.bf16.msra.mxu1 %v7525_v49 }
 0x375   : > { %7288 = vmatpush3.bf16.msra.mxu0 %v7526_v52  ;;  %7267 = vmatprep.subr.bf16.mxu1 %v7701_v4  ;;  %v6725_v52 = vld [vmem:[%s9230_s6] ss:$0 sm:$0xff] }
 0x376   : > { %7289 = vmatprep.subr.bf16.mxu0 %v7701_v4 }
 0x378   : > { %7268 = vmatpush3.bf16.msra.mxu1 %v7527_v59 }
 0x379   : > { %7290 = vmatpush3.bf16.msra.mxu0 %v7528_v13  ;;  %7269 = vmatprep.subr.bf16.mxu1 %v7701_v4 }
 0x37a   : > { %7291 = vmatprep.subr.bf16.mxu0 %v7701_v4 }
 0x37c   : > { %7270 = vmatpush3.bf16.msra.mxu1 %v7529_v41 }
 0x37d   : > { %7292 = vmatpush3.bf16.msra.mxu0 %v7530_v36  ;;  %7271 = vmatprep.subr.bf16.mxu1 %v7701_v4 }
 0x37e   : > { %7293 = vmatprep.subr.bf16.mxu0 %v7701_v4 }
 0x380   : > { %7272 = vmatpush3.bf16.msra.mxu1 %v7531_v42 }
 0x381   : > { %7294 = vmatpush3.bf16.msra.mxu0 %v7532_v60  ;;  %7273 = vmatprep.subr.bf16.mxu1 %v7701_v4 }
 0x382   : > { %7295 = vmatprep.subr.bf16.mxu0 %v7701_v4 }
 0x384   : > { %7274 = vmatpush3.bf16.msra.mxu1 %v7533_v7 }
 0x385   : > { %7296 = vmatpush3.bf16.msra.mxu0 %v7534_v57  ;;  %7275 = vmatprep.subr.bf16.mxu1 %v7701_v4 }
 0x388   : > { %7276 = vmatpush3.bf16.msra.mxu1 %v7535_v15  ;;  %7298 = vmatmul.mubr.bf16.vlgmr.msra.gmra.mxu0 %v9098_v37  ;;  %v7540_v37 = vld [vmem:[#allocation7 + $0x218] sm:$0xff]  }
 0x389   : > { %7301 = vmatprep.subr.bf16.mxu1 %v7701_v4 }
 0x38b   : > { %7278 = vmatmul.mubr.bf16.vlgmr.msra.gmra.mxu1 %v9107_v46  ;;  %v7541_v46 = vld [vmem:[#allocation7 + $0x210] sm:$0xff]  }
 0x38c   : > { %7302 = vmatpush3.bf16.msra.mxu1 %v7536_v43  ;;  %7317 = vmatprep.mubr.msk.bf16.mxu1 %vm7702_vm1, %v7701_v4 }
 0x38d   : > { %7303 = vmatprep.subr.bf16.mxu1 %v7701_v4 }
 0x390   : > { %7304 = vmatpush3.bf16.msra.mxu1 %v7537_v63 }
 0x391   : > { %7305 = vmatprep.subr.bf16.mxu1 %v7701_v4 }
 0x394   : > { %7306 = vmatpush3.bf16.msra.mxu1 %v7538_v20 }
 0x395   : > { %7307 = vmatprep.subr.bf16.mxu1 %v7701_v4 }
 0x398   : > { %7308 = vmatpush3.bf16.msra.mxu1 %v7539_v39 }
 0x399   : > { %7309 = vmatprep.subr.bf16.mxu1 %v7701_v4 }
 0x39c   : > { %7310 = vmatpush3.bf16.msra.mxu1 %v7540_v37 }
 0x39d   : > { %7311 = vmatprep.subr.bf16.mxu1 %v7701_v4 }
 0x3a0   : > { %7312 = vmatpush3.bf16.msra.mxu1 %v7541_v46 }
 0x3a1   : > { %7313 = vmatprep.subr.bf16.mxu1 %v7701_v4 }
 0x3a4   : > { %7314 = vmatpush3.bf16.msra.mxu1 %v7542_v47 }
 0x3a5   : > { %7315 = vmatprep.subr.bf16.mxu1 %v7701_v4 }
 0x3a8   : > { %7316 = vmatpush3.bf16.msra.mxu1 %v7543_v22 }
 0x3ab   : > { %7318 = vmatmul.mubr.bf16.vlgmr.msra.gmra.mxu1 %v9114_v33 }
 0x3e8   : > { %v5209_v61 = vpop.f32.mrf.mxu0 }
 0x3ea   : > { %v7179_v62 = vpop.f32.mrf.mxu0 }
 0x3eb   : > { %v5075_v54 = vpop.f32.mrf.mxu1 }
 0x3ec   : > { %v5210_v21 = vadd.f32 %v5209_v61, %v5075_v54  ;;  %v5212_v34 = vpop.f32.mrf.mxu0 }
 0x3ed   : > { %v7159_v27 = vpop.f32.mrf.mxu1 }
 0x3ee   : > { %v7180_v5 = vpop.f32.mrf.mxu0 }
 0x3ef   : > { %v5078_v40 = vpop.f32.mrf.mxu1 }
 0x3f0   : > { %v5213_v0 = vadd.f32 %v5212_v34, %v5078_v40 }
 0x3f1   : > { %v7160_v23 = vpop.f32.mrf.mxu1 }
 0x408   : > { %v5544_v24 = vpop.f32.mrf.mxu0 }
 0x40a   : > { %v7219_v18 = vpop.f32.mrf.mxu0 }
 0x40b   : > { %v5366_v3 = vpop.f32.mrf.mxu1 }
 0x40c   : > { %v5373_v8 = vadd.f32 %v5366_v3, %v5210_v21  ;;  %v5547_v31 = vpop.f32.mrf.mxu0 }
 0x40d   : > { %v7199_v51 = vpop.f32.mrf.mxu1 }
 0x40e   : > { %v7220_v4 = vpop.f32.mrf.mxu0  ;;  %v5551_v53 = vadd.f32 %v5544_v24, %v5373_v8 }
 0x40f   : > { %v5369_v58 = vpop.f32.mrf.mxu1 }
 0x410   : > { %v5374_v33 = vadd.f32 %v5369_v58, %v5213_v0 }
 0x411   : > { %v7200_v48 = vpop.f32.mrf.mxu1 }
 0x412   : > { %v5552_v2 = vadd.f32 %v5547_v31, %v5374_v33 }
 0x428   : > { %v5850_v25 = vpop.f32.mrf.mxu0 }
 0x42a   : > { %v7259_v1 = vpop.f32.mrf.mxu0 }
 0x42b   : > { %v5696_v56 = vpop.f32.mrf.mxu1 }
 0x42c   : > { %v5853_v38 = vpop.f32.mrf.mxu0  ;;  %v5703_v44 = vadd.f32 %v5696_v56, %v5551_v53 }
 0x42d   : > { %v7239_v10 = vpop.f32.mrf.mxu1 }
 0x42e   : > { %v7260_v9 = vpop.f32.mrf.mxu0  ;;  %v5857_v28 = vadd.f32 %v5850_v25, %v5703_v44 }
 0x42f   : > { %v5699_v32 = vpop.f32.mrf.mxu1 }
 0x430   : > { %v5704_v45 = vadd.f32 %v5699_v32, %v5552_v2 }
 0x431   : > { %v7240_v30 = vpop.f32.mrf.mxu1 }
 0x432   : > { %v5858_v14 = vadd.f32 %v5853_v38, %v5704_v45 }
 0x448   : > { %v6179_v55 = vpop.f32.mrf.mxu0 }
 0x44a   : > { %v7299_v35 = vpop.f32.mrf.mxu0 }
 0x44b   : > { %v6027_v50 = vpop.f32.mrf.mxu1 }
 0x44c   : > { %v6182_v26 = vpop.f32.mrf.mxu0  ;;  %v6034_v16 = vadd.f32 %v6027_v50, %v5857_v28 }
 0x44d   : > { %v7279_v12 = vpop.f32.mrf.mxu1 }
 0x44e   : > { %v7300_v29 = vpop.f32.mrf.mxu0  ;;  %v6186_v6 = vadd.f32 %v6179_v55, %v6034_v16 }
 0x44f   : > { %v6030_v19 = vpop.f32.mrf.mxu1 }
 0x450   : > { %v6035_v17 = vadd.f32 %v6030_v19, %v5858_v14 }
 0x451   : > { %v7280_v11 = vpop.f32.mrf.mxu1 }
 0x452   : > { %v6187_v36 = vadd.f32 %v6182_v26, %v6035_v17 }
 0x46b   : > { %v6333_v49 = vpop.f32.mrf.mxu1 }
 0x46c   : > { %v6340_v59 = vadd.f32 %v6333_v49, %v6186_v6 }
 0x46d   : > { %v7319_v13 = vpop.f32.mrf.mxu1 }
 0x46e   : > { %v6349_v41 = vadd.f32 %v6725_v52, %v6340_v59 }
 0x46f   : > { %v6336_v42 = vpop.f32.mrf.mxu1 }
 0x470   : > { %v6351_v60 = vmax.f32 %v6349_v41, 0.0  ;;  %v6341_v7 = vadd.f32 %v6336_v42, %v6187_v36 }
 0x471   : > { %v7320_v57 = vpop.f32.mrf.mxu1 }
 0x472   : > { %6353 = vst [vmem:[%s342_s18] sm:$0xff] %v6351_v60  ;;  %v6350_v15 = vadd.f32 %v6725_v52, %v6341_v7 }
 0x474   : > { %v6352_v43 = vmax.f32 %v6350_v15, 0.0 }
 0x476   : > { %6354 = vst [vmem:[%s342_s18 + $0x8] sm:$0x1] %v6352_v43 }
 0x477 PF: > { %p19_p8 = scmp.ge.s32.totalorder %s7822_s9, 4   ;;  %s9245_s24 = smov %s7684_s25 }
 0x478   : > { %s9246_s25 = smov %s7688_s26  ;;  %s9247_s26 = smov %s7832_s12 }
 0x479   : > { %s9248_s27 = smov %s7822_s9  ;;  %21 = sbr.rel (!%p19_p8) target bundleno = 5 (0x5), region = 119 }
 0x47e   :  { %6376 = vsyncpa [#allocation3], 1 }
 0x47f   :  { %6378 = vsyncpa [#allocation3 + $0x1], 1 }
 0x480   :  { %6379 = vsyncpa [#allocation5], 1 }
 0x481   :  { %6380 = vsyncpa [#allocation8], 1 }

</bundles_post_ra>
